<compile_context>
chip_gen: v6e
topology: v6e:2x2x1
jax: 0.10.0
libtpu: 0.0.40
codegen_flags: <defaults>
</compile_context>

<pallas_src>
import math
import jax
import jax.numpy as jnp
from jax.experimental import pallas as pl
from jax.experimental.pallas import tpu as pltpu

# ----- hyperparameters from the PyTorch script -----
LETTER = [c for c in 'SE?abcdefghijklmnopqrstuvwxyz']
N_VOCAB = len(LETTER)          # 29 (source vocab == target vocab)
SRC_EMB = 16
TGT_EMB = 18
ENC_HID = 17
DEC_HID = 19
N_STEP = 5                     # max word length in seq_data
TRG_LEN = N_STEP + 1           # 6
LANE = 128

VMEM_SPEC = pl.BlockSpec(memory_space=pltpu.MemorySpace.VMEM)

# -------------------- packed weight layout (one [rows, 128] buffer) -----------
_W_SHAPES = (
    ('enc_f_Wi', (SRC_EMB, 3 * ENC_HID)),
    ('enc_f_Wh', (ENC_HID, 3 * ENC_HID)),
    ('enc_f_bi', (1, 3 * ENC_HID)),
    ('enc_f_bh', (1, 3 * ENC_HID)),
    ('enc_b_Wi', (SRC_EMB, 3 * ENC_HID)),
    ('enc_b_Wh', (ENC_HID, 3 * ENC_HID)),
    ('enc_b_bi', (1, 3 * ENC_HID)),
    ('enc_b_bh', (1, 3 * ENC_HID)),
    ('fc_W', (2 * ENC_HID, DEC_HID)),
    ('fc_b', (1, DEC_HID)),
    ('att_Wq', (DEC_HID, 2 * ENC_HID)),
    ('dec_Wi', (TGT_EMB + 2 * ENC_HID, 3 * DEC_HID)),
    ('dec_Wh', (DEC_HID, 3 * DEC_HID)),
    ('dec_bi', (1, 3 * DEC_HID)),
    ('dec_bh', (1, 3 * DEC_HID)),
    ('out_W', (DEC_HID + 2 * ENC_HID + TGT_EMB, N_VOCAB)),
    ('out_b', (1, N_VOCAB)),
)


def _round8(n):
    return ((n + 7) // 8) * 8


def _build_layout():
    offs, off = {}, 0
    for name, (r, _) in _W_SHAPES:
        offs[name] = (off, r)          # sublane-aligned (multiple-of-8) offsets
        off += _round8(r)
    return offs, off


_W_OFFS, _W_ROWS = _build_layout()     # 360 rows x 128 lanes x f32 ~= 180 KiB


# -------------------- fused encoder + decoder kernel --------------------
def seq2seq_kernel(src_emb_ref, tgt_emb_ref, w_ref, pred_ref):
    T, B, _ = src_emb_ref.shape
    trg_len = tgt_emb_ref.shape[0]
    H, D = ENC_HID, DEC_HID

    def w(name):
        off, rows = _W_OFFS[name]
        return w_ref[off:off + rows, :]        # [rows, 128], zero-padded lanes

    def gru_cell(x, h, Wi, Wh, bi, bh, hid):
        # fused 3-gate matmuls; gates sliced from the [B, 3*hid(+pad)] result
        gi = jnp.dot(x, Wi, preferred_element_type=jnp.float32) + bi
        gh = jnp.dot(h, Wh, preferred_element_type=jnp.float32) + bh
        r = jax.nn.sigmoid(gi[:, 0:hid] + gh[:, 0:hid])
        z = jax.nn.sigmoid(gi[:, hid:2 * hid] + gh[:, hid:2 * hid])
        n = jnp.tanh(gi[:, 2 * hid:3 * hid] + r * gh[:, 2 * hid:3 * hid])
        return (1.0 - z) * n + z * h

    # ---------------- encoder: bidirectional GRU, statically unrolled ---------
    Wi_f, Wh_f = w('enc_f_Wi'), w('enc_f_Wh')
    bi_f, bh_f = w('enc_f_bi'), w('enc_f_bh')
    Wi_b, Wh_b = w('enc_b_Wi'), w('enc_b_Wh')
    bi_b, bh_b = w('enc_b_bi'), w('enc_b_bh')

    h_f = jnp.zeros((B, H), jnp.float32)
    h_b = jnp.zeros((B, H), jnp.float32)
    fwd_out = [None] * T
    bwd_out = [None] * T
    for t in range(T):                         # unrolled: static indices
        h_f = gru_cell(src_emb_ref[t], h_f, Wi_f, Wh_f, bi_f, bh_f, H)
        h_b = gru_cell(src_emb_ref[T - 1 - t], h_b, Wi_b, Wh_b, bi_b, bh_b, H)
        fwd_out[t] = h_f
        bwd_out[T - 1 - t] = h_b

    # s0 = tanh(fc(cat(h_fwd_final, h_bwd_final)))
    h_cat = jnp.concatenate([h_f, h_b], axis=1)                      # [B, 2H]
    s = jnp.tanh(jnp.dot(h_cat, w('fc_W'), preferred_element_type=jnp.float32)
                 + w('fc_b'))[:, :D]                                 # [B, D]

    # enc_output: K[b, t] = [fwd_t | bwd_t]  (kept in registers/VMEM, no HBM trip)
    K = jnp.stack(
        [jnp.concatenate([fwd_out[t], bwd_out[t]], axis=1) for t in range(T)],
        axis=1)                                                      # [B, T, 2H]
    inv_sqrt_d = 1.0 / math.sqrt(float(2 * H))

    # ---------------- decoder: trg_len attention + GRU + fc steps, unrolled ---
    Wq = w('att_Wq')
    Wi_d, Wh_d = w('dec_Wi'), w('dec_Wh')
    bi_d, bh_d = w('dec_bi'), w('dec_bh')
    Wout, bout = w('out_W'), w('out_b')

    for t in range(trg_len):                   # teacher forcing: ground-truth emb
        emb_d = tgt_emb_ref[t]                                       # [B, E]

        # attention (MXU): scores = Q K^T / sqrt(d); c = softmax(scores) V
        Q = jnp.dot(s, Wq, preferred_element_type=jnp.float32)[:, :2 * H]
        sc = jnp.einsum('bqd,bkd->bqk', Q[:, None, :], K,
                        preferred_element_type=jnp.float32) * inv_sqrt_d  # [B,1,T]
        sc = sc - jnp.max(sc, axis=-1, keepdims=True)
        e = jnp.exp(sc)
        attn = e * pl.reciprocal(jnp.sum(e, axis=-1, keepdims=True), approx=True)
        c = jnp.einsum('bqk,bkd->bqd', attn, K,
                       preferred_element_type=jnp.float32)[:, 0, :]       # [B, 2H]

        # GRU cell: rnn_input = cat(embedded, c), hidden = s  (fused gates)
        rnn_in = jnp.concatenate([emb_d, c], axis=1)                 # [B, E+2H]
        gi = jnp.dot(rnn_in, Wi_d, preferred_element_type=jnp.float32) + bi_d
        gh = jnp.dot(s, Wh_d, preferred_element_type=jnp.float32) + bh_d
        r = jax.nn.sigmoid(gi[:, 0:D] + gh[:, 0:D])
        z = jax.nn.sigmoid(gi[:, D:2 * D] + gh[:, D:2 * D])
        n = jnp.tanh(gi[:, 2 * D:3 * D] + r * gh[:, 2 * D:3 * D])
        s = (1.0 - z) * n + z * s              # new hidden == dec_output (1-step GRU)

        # pred = fc_out(cat(dec_output, c, embedded)); lane-dense [B, 128] store
        fc_in = jnp.concatenate([s, c, emb_d], axis=1)               # [B, D+2H+E]
        pred_ref[t] = (jnp.dot(fc_in, Wout, preferred_element_type=jnp.float32)
                       + bout)


# -------------------- wrapper --------------------
def seq2seq_forward(params, src, trg):
    # training_mode=True, teacher_forcing_ratio=1.0 -> always feed trg[:, t]
    B, trg_len = trg.shape
    src_emb = jnp.transpose(jnp.take(params['emb_src'], src, axis=0), (1, 0, 2))  # [T, B, SRC_EMB]
    tgt_emb = jnp.transpose(jnp.take(params['emb_tgt'], trg, axis=0), (1, 0, 2))  # [trg_len, B, TGT_EMB]

    slab = pl.pallas_call(
        seq2seq_kernel,
        out_shape=jax.ShapeDtypeStruct((trg_len, B, LANE), jnp.float32),
        in_specs=[VMEM_SPEC, VMEM_SPEC, VMEM_SPEC],
        out_specs=VMEM_SPEC,
    )(src_emb, tgt_emb, params['wpack'])

    return jnp.transpose(slab[:, :, :N_VOCAB], (1, 0, 2))            # [B, trg_len, N_VOCAB]


# -------------------- deterministic parameter init --------------------
def _scale(name):
    if name.startswith('enc_'):
        return 1.0 / math.sqrt(ENC_HID)
    if name.startswith('fc_'):
        return 1.0 / math.sqrt(2 * ENC_HID)
    if name.startswith('att_') or name.startswith('dec_'):
        return 1.0 / math.sqrt(DEC_HID)
    return 1.0 / math.sqrt(DEC_HID + 2 * ENC_HID + TGT_EMB)


def init_params(seed=0):
    keys = jax.random.split(jax.random.PRNGKey(seed), len(_W_SHAPES) + 2)
    blocks = []
    for i, (name, (r, c)) in enumerate(_W_SHAPES):
        blk = _scale(name) * jax.random.normal(keys[i], (r, c), jnp.float32)
        blk = jnp.pad(blk, ((0, _round8(r) - r), (0, LANE - c)))     # pad to [8k, 128]
        blocks.append(blk)
    return {
        'wpack': jnp.concatenate(blocks, axis=0),                    # [_W_ROWS, 128]
        'emb_src': jax.random.normal(keys[-2], (N_VOCAB, SRC_EMB), jnp.float32),
        'emb_tgt': jax.random.normal(keys[-1], (N_VOCAB, TGT_EMB), jnp.float32),
    }


if __name__ == "__main__":
    params = init_params(0)
    B = 4
    k1, k2 = jax.random.split(jax.random.PRNGKey(0))
    src = jax.random.randint(k1, (B, N_STEP), 0, N_VOCAB, dtype=jnp.int32)          # [4, 5]
    trg_tokens = jax.random.randint(k2, (B, TRG_LEN), 0, N_VOCAB, dtype=jnp.int32)  # [4, 6]

    out = jax.jit(seq2seq_forward)(params, src, trg_tokens)
    out = jax.block_until_ready(out)
    assert out.shape == (B, TRG_LEN, N_VOCAB) and out.dtype == jnp.float32
    print("KERNEL_OK")
</pallas_src>

<mosaic_0001>
module attributes {stable_mosaic.version = 11 : i64} {
  func.func @seq2seq_kernel(%arg0: memref<5x4x16xf32, #tpu.memory_space<vmem>>, %arg1: memref<6x4x18xf32, #tpu.memory_space<vmem>>, %arg2: memref<360x128xf32, #tpu.memory_space<vmem>>, %arg3: memref<6x4x128xf32, #tpu.memory_space<vmem>>) attributes {dimension_semantics = [], scalar_prefetch = 0 : i64, scratch_operands = 0 : i64, tpu.core_type = #tpu.core_type<tc>} {
    %c0 = arith.constant 0 : index
    %c0_0 = arith.constant 0 : index
    %0 = vector.load %arg2[%c0, %c0_0] : memref<360x128xf32, #tpu.memory_space<vmem>>, vector<16x128xf32>
    %c16 = arith.constant 16 : index
    %c0_1 = arith.constant 0 : index
    %1 = vector.load %arg2[%c16, %c0_1] : memref<360x128xf32, #tpu.memory_space<vmem>>, vector<17x128xf32>
    %c40 = arith.constant 40 : index
    %c0_2 = arith.constant 0 : index
    %2 = vector.load %arg2[%c40, %c0_2] : memref<360x128xf32, #tpu.memory_space<vmem>>, vector<1x128xf32>
    %c48 = arith.constant 48 : index
    %c0_3 = arith.constant 0 : index
    %3 = vector.load %arg2[%c48, %c0_3] : memref<360x128xf32, #tpu.memory_space<vmem>>, vector<1x128xf32>
    %c56 = arith.constant 56 : index
    %c0_4 = arith.constant 0 : index
    %4 = vector.load %arg2[%c56, %c0_4] : memref<360x128xf32, #tpu.memory_space<vmem>>, vector<16x128xf32>
    %c72 = arith.constant 72 : index
    %c0_5 = arith.constant 0 : index
    %5 = vector.load %arg2[%c72, %c0_5] : memref<360x128xf32, #tpu.memory_space<vmem>>, vector<17x128xf32>
    %c96 = arith.constant 96 : index
    %c0_6 = arith.constant 0 : index
    %6 = vector.load %arg2[%c96, %c0_6] : memref<360x128xf32, #tpu.memory_space<vmem>>, vector<1x128xf32>
    %c104 = arith.constant 104 : index
    %c0_7 = arith.constant 0 : index
    %7 = vector.load %arg2[%c104, %c0_7] : memref<360x128xf32, #tpu.memory_space<vmem>>, vector<1x128xf32>
    %cst = arith.constant 0.000000e+00 : f32
    %8 = vector.broadcast %cst : f32 to vector<4x17xf32>
    %cst_8 = arith.constant 0.000000e+00 : f32
    %9 = vector.broadcast %cst_8 : f32 to vector<4x17xf32>
    %c0_9 = arith.constant 0 : index
    %c0_10 = arith.constant 0 : index
    %c0_11 = arith.constant 0 : index
    %10 = vector.load %arg0[%c0_9, %c0_10, %c0_11] : memref<5x4x16xf32, #tpu.memory_space<vmem>>, vector<1x4x16xf32>
    %11 = vector.shape_cast %10 : vector<1x4x16xf32> to vector<4x16xf32>
    %cst_12 = arith.constant dense<0.000000e+00> : vector<4x128xf32>
    %12 = tpu.matmul %11, %0, %cst_12 {dimension_numbers = #tpu.dot_dimension_numbers<[1], [0], [0], [1], [0, 0, 1, 1], [], []>} : vector<4x16xf32>, vector<16x128xf32>, vector<4x128xf32> -> vector<4x128xf32>
    %13 = vector.broadcast %2 : vector<1x128xf32> to vector<4x128xf32>
    %14 = arith.addf %12, %13 : vector<4x128xf32>
    %cst_13 = arith.constant dense<0.000000e+00> : vector<4x128xf32>
    %15 = tpu.matmul %8, %1, %cst_13 {dimension_numbers = #tpu.dot_dimension_numbers<[1], [0], [0], [1], [0, 0, 1, 1], [], []>} : vector<4x17xf32>, vector<17x128xf32>, vector<4x128xf32> -> vector<4x128xf32>
    %16 = vector.broadcast %3 : vector<1x128xf32> to vector<4x128xf32>
    %17 = arith.addf %15, %16 : vector<4x128xf32>
    %18 = vector.extract_strided_slice %14 {offsets = [0, 0], sizes = [4, 17], strides = [1, 1]} : vector<4x128xf32> to vector<4x17xf32>
    %19 = vector.extract_strided_slice %17 {offsets = [0, 0], sizes = [4, 17], strides = [1, 1]} : vector<4x128xf32> to vector<4x17xf32>
    %20 = arith.addf %18, %19 : vector<4x17xf32>
    %21 = arith.negf %20 : vector<4x17xf32>
    %22 = math.exp %21 : vector<4x17xf32>
    %cst_14 = arith.constant 1.000000e+00 : f32
    %23 = vector.broadcast %cst_14 : f32 to vector<4x17xf32>
    %24 = arith.addf %23, %22 : vector<4x17xf32>
    %25 = arith.divf %23, %24 : vector<4x17xf32>
    %26 = vector.extract_strided_slice %14 {offsets = [0, 17], sizes = [4, 17], strides = [1, 1]} : vector<4x128xf32> to vector<4x17xf32>
    %27 = vector.extract_strided_slice %17 {offsets = [0, 17], sizes = [4, 17], strides = [1, 1]} : vector<4x128xf32> to vector<4x17xf32>
    %28 = arith.addf %26, %27 : vector<4x17xf32>
    %29 = arith.negf %28 : vector<4x17xf32>
    %30 = math.exp %29 : vector<4x17xf32>
    %cst_15 = arith.constant 1.000000e+00 : f32
    %31 = vector.broadcast %cst_15 : f32 to vector<4x17xf32>
    %32 = arith.addf %31, %30 : vector<4x17xf32>
    %33 = arith.divf %31, %32 : vector<4x17xf32>
    %34 = vector.extract_strided_slice %14 {offsets = [0, 34], sizes = [4, 17], strides = [1, 1]} : vector<4x128xf32> to vector<4x17xf32>
    %35 = vector.extract_strided_slice %17 {offsets = [0, 34], sizes = [4, 17], strides = [1, 1]} : vector<4x128xf32> to vector<4x17xf32>
    %36 = arith.mulf %25, %35 : vector<4x17xf32>
    %37 = arith.addf %34, %36 : vector<4x17xf32>
    %38 = math.tanh %37 : vector<4x17xf32>
    %cst_16 = arith.constant 1.000000e+00 : f32
    %39 = vector.broadcast %cst_16 : f32 to vector<4x17xf32>
    %40 = arith.subf %39, %33 : vector<4x17xf32>
    %41 = arith.mulf %40, %38 : vector<4x17xf32>
    %42 = arith.mulf %33, %8 : vector<4x17xf32>
    %43 = arith.addf %41, %42 : vector<4x17xf32>
    %c4 = arith.constant 4 : index
    %c0_17 = arith.constant 0 : index
    %c0_18 = arith.constant 0 : index
    %44 = vector.load %arg0[%c4, %c0_17, %c0_18] : memref<5x4x16xf32, #tpu.memory_space<vmem>>, vector<1x4x16xf32>
    %45 = vector.shape_cast %44 : vector<1x4x16xf32> to vector<4x16xf32>
    %cst_19 = arith.constant dense<0.000000e+00> : vector<4x128xf32>
    %46 = tpu.matmul %45, %4, %cst_19 {dimension_numbers = #tpu.dot_dimension_numbers<[1], [0], [0], [1], [0, 0, 1, 1], [], []>} : vector<4x16xf32>, vector<16x128xf32>, vector<4x128xf32> -> vector<4x128xf32>
    %47 = vector.broadcast %6 : vector<1x128xf32> to vector<4x128xf32>
    %48 = arith.addf %46, %47 : vector<4x128xf32>
    %cst_20 = arith.constant dense<0.000000e+00> : vector<4x128xf32>
    %49 = tpu.matmul %9, %5, %cst_20 {dimension_numbers = #tpu.dot_dimension_numbers<[1], [0], [0], [1], [0, 0, 1, 1], [], []>} : vector<4x17xf32>, vector<17x128xf32>, vector<4x128xf32> -> vector<4x128xf32>
    %50 = vector.broadcast %7 : vector<1x128xf32> to vector<4x128xf32>
    %51 = arith.addf %49, %50 : vector<4x128xf32>
    %52 = vector.extract_strided_slice %48 {offsets = [0, 0], sizes = [4, 17], strides = [1, 1]} : vector<4x128xf32> to vector<4x17xf32>
    %53 = vector.extract_strided_slice %51 {offsets = [0, 0], sizes = [4, 17], strides = [1, 1]} : vector<4x128xf32> to vector<4x17xf32>
    %54 = arith.addf %52, %53 : vector<4x17xf32>
    %55 = arith.negf %54 : vector<4x17xf32>
    %56 = math.exp %55 : vector<4x17xf32>
    %cst_21 = arith.constant 1.000000e+00 : f32
    %57 = vector.broadcast %cst_21 : f32 to vector<4x17xf32>
    %58 = arith.addf %57, %56 : vector<4x17xf32>
    %59 = arith.divf %57, %58 : vector<4x17xf32>
    %60 = vector.extract_strided_slice %48 {offsets = [0, 17], sizes = [4, 17], strides = [1, 1]} : vector<4x128xf32> to vector<4x17xf32>
    %61 = vector.extract_strided_slice %51 {offsets = [0, 17], sizes = [4, 17], strides = [1, 1]} : vector<4x128xf32> to vector<4x17xf32>
    %62 = arith.addf %60, %61 : vector<4x17xf32>
    %63 = arith.negf %62 : vector<4x17xf32>
    %64 = math.exp %63 : vector<4x17xf32>
    %cst_22 = arith.constant 1.000000e+00 : f32
    %65 = vector.broadcast %cst_22 : f32 to vector<4x17xf32>
    %66 = arith.addf %65, %64 : vector<4x17xf32>
    %67 = arith.divf %65, %66 : vector<4x17xf32>
    %68 = vector.extract_strided_slice %48 {offsets = [0, 34], sizes = [4, 17], strides = [1, 1]} : vector<4x128xf32> to vector<4x17xf32>
    %69 = vector.extract_strided_slice %51 {offsets = [0, 34], sizes = [4, 17], strides = [1, 1]} : vector<4x128xf32> to vector<4x17xf32>
    %70 = arith.mulf %59, %69 : vector<4x17xf32>
    %71 = arith.addf %68, %70 : vector<4x17xf32>
    %72 = math.tanh %71 : vector<4x17xf32>
    %cst_23 = arith.constant 1.000000e+00 : f32
    %73 = vector.broadcast %cst_23 : f32 to vector<4x17xf32>
    %74 = arith.subf %73, %67 : vector<4x17xf32>
    %75 = arith.mulf %74, %72 : vector<4x17xf32>
    %76 = arith.mulf %67, %9 : vector<4x17xf32>
    %77 = arith.addf %75, %76 : vector<4x17xf32>
    %c1 = arith.constant 1 : index
    %c0_24 = arith.constant 0 : index
    %c0_25 = arith.constant 0 : index
    %78 = vector.load %arg0[%c1, %c0_24, %c0_25] : memref<5x4x16xf32, #tpu.memory_space<vmem>>, vector<1x4x16xf32>
    %79 = vector.shape_cast %78 : vector<1x4x16xf32> to vector<4x16xf32>
    %cst_26 = arith.constant dense<0.000000e+00> : vector<4x128xf32>
    %80 = tpu.matmul %79, %0, %cst_26 {dimension_numbers = #tpu.dot_dimension_numbers<[1], [0], [0], [1], [0, 0, 1, 1], [], []>} : vector<4x16xf32>, vector<16x128xf32>, vector<4x128xf32> -> vector<4x128xf32>
    %81 = vector.broadcast %2 : vector<1x128xf32> to vector<4x128xf32>
    %82 = arith.addf %80, %81 : vector<4x128xf32>
    %cst_27 = arith.constant dense<0.000000e+00> : vector<4x128xf32>
    %83 = tpu.matmul %43, %1, %cst_27 {dimension_numbers = #tpu.dot_dimension_numbers<[1], [0], [0], [1], [0, 0, 1, 1], [], []>} : vector<4x17xf32>, vector<17x128xf32>, vector<4x128xf32> -> vector<4x128xf32>
    %84 = vector.broadcast %3 : vector<1x128xf32> to vector<4x128xf32>
    %85 = arith.addf %83, %84 : vector<4x128xf32>
    %86 = vector.extract_strided_slice %82 {offsets = [0, 0], sizes = [4, 17], strides = [1, 1]} : vector<4x128xf32> to vector<4x17xf32>
    %87 = vector.extract_strided_slice %85 {offsets = [0, 0], sizes = [4, 17], strides = [1, 1]} : vector<4x128xf32> to vector<4x17xf32>
    %88 = arith.addf %86, %87 : vector<4x17xf32>
    %89 = arith.negf %88 : vector<4x17xf32>
    %90 = math.exp %89 : vector<4x17xf32>
    %cst_28 = arith.constant 1.000000e+00 : f32
    %91 = vector.broadcast %cst_28 : f32 to vector<4x17xf32>
    %92 = arith.addf %91, %90 : vector<4x17xf32>
    %93 = arith.divf %91, %92 : vector<4x17xf32>
    %94 = vector.extract_strided_slice %82 {offsets = [0, 17], sizes = [4, 17], strides = [1, 1]} : vector<4x128xf32> to vector<4x17xf32>
    %95 = vector.extract_strided_slice %85 {offsets = [0, 17], sizes = [4, 17], strides = [1, 1]} : vector<4x128xf32> to vector<4x17xf32>
    %96 = arith.addf %94, %95 : vector<4x17xf32>
    %97 = arith.negf %96 : vector<4x17xf32>
    %98 = math.exp %97 : vector<4x17xf32>
    %cst_29 = arith.constant 1.000000e+00 : f32
    %99 = vector.broadcast %cst_29 : f32 to vector<4x17xf32>
    %100 = arith.addf %99, %98 : vector<4x17xf32>
    %101 = arith.divf %99, %100 : vector<4x17xf32>
    %102 = vector.extract_strided_slice %82 {offsets = [0, 34], sizes = [4, 17], strides = [1, 1]} : vector<4x128xf32> to vector<4x17xf32>
    %103 = vector.extract_strided_slice %85 {offsets = [0, 34], sizes = [4, 17], strides = [1, 1]} : vector<4x128xf32> to vector<4x17xf32>
    %104 = arith.mulf %93, %103 : vector<4x17xf32>
    %105 = arith.addf %102, %104 : vector<4x17xf32>
    %106 = math.tanh %105 : vector<4x17xf32>
    %cst_30 = arith.constant 1.000000e+00 : f32
    %107 = vector.broadcast %cst_30 : f32 to vector<4x17xf32>
    %108 = arith.subf %107, %101 : vector<4x17xf32>
    %109 = arith.mulf %108, %106 : vector<4x17xf32>
    %110 = arith.mulf %101, %43 : vector<4x17xf32>
    %111 = arith.addf %109, %110 : vector<4x17xf32>
    %c3 = arith.constant 3 : index
    %c0_31 = arith.constant 0 : index
    %c0_32 = arith.constant 0 : index
    %112 = vector.load %arg0[%c3, %c0_31, %c0_32] : memref<5x4x16xf32, #tpu.memory_space<vmem>>, vector<1x4x16xf32>
    %113 = vector.shape_cast %112 : vector<1x4x16xf32> to vector<4x16xf32>
    %cst_33 = arith.constant dense<0.000000e+00> : vector<4x128xf32>
    %114 = tpu.matmul %113, %4, %cst_33 {dimension_numbers = #tpu.dot_dimension_numbers<[1], [0], [0], [1], [0, 0, 1, 1], [], []>} : vector<4x16xf32>, vector<16x128xf32>, vector<4x128xf32> -> vector<4x128xf32>
    %115 = vector.broadcast %6 : vector<1x128xf32> to vector<4x128xf32>
    %116 = arith.addf %114, %115 : vector<4x128xf32>
    %cst_34 = arith.constant dense<0.000000e+00> : vector<4x128xf32>
    %117 = tpu.matmul %77, %5, %cst_34 {dimension_numbers = #tpu.dot_dimension_numbers<[1], [0], [0], [1], [0, 0, 1, 1], [], []>} : vector<4x17xf32>, vector<17x128xf32>, vector<4x128xf32> -> vector<4x128xf32>
    %118 = vector.broadcast %7 : vector<1x128xf32> to vector<4x128xf32>
    %119 = arith.addf %117, %118 : vector<4x128xf32>
    %120 = vector.extract_strided_slice %116 {offsets = [0, 0], sizes = [4, 17], strides = [1, 1]} : vector<4x128xf32> to vector<4x17xf32>
    %121 = vector.extract_strided_slice %119 {offsets = [0, 0], sizes = [4, 17], strides = [1, 1]} : vector<4x128xf32> to vector<4x17xf32>
    %122 = arith.addf %120, %121 : vector<4x17xf32>
    %123 = arith.negf %122 : vector<4x17xf32>
    %124 = math.exp %123 : vector<4x17xf32>
    %cst_35 = arith.constant 1.000000e+00 : f32
    %125 = vector.broadcast %cst_35 : f32 to vector<4x17xf32>
    %126 = arith.addf %125, %124 : vector<4x17xf32>
    %127 = arith.divf %125, %126 : vector<4x17xf32>
    %128 = vector.extract_strided_slice %116 {offsets = [0, 17], sizes = [4, 17], strides = [1, 1]} : vector<4x128xf32> to vector<4x17xf32>
    %129 = vector.extract_strided_slice %119 {offsets = [0, 17], sizes = [4, 17], strides = [1, 1]} : vector<4x128xf32> to vector<4x17xf32>
    %130 = arith.addf %128, %129 : vector<4x17xf32>
    %131 = arith.negf %130 : vector<4x17xf32>
    %132 = math.exp %131 : vector<4x17xf32>
    %cst_36 = arith.constant 1.000000e+00 : f32
    %133 = vector.broadcast %cst_36 : f32 to vector<4x17xf32>
    %134 = arith.addf %133, %132 : vector<4x17xf32>
    %135 = arith.divf %133, %134 : vector<4x17xf32>
    %136 = vector.extract_strided_slice %116 {offsets = [0, 34], sizes = [4, 17], strides = [1, 1]} : vector<4x128xf32> to vector<4x17xf32>
    %137 = vector.extract_strided_slice %119 {offsets = [0, 34], sizes = [4, 17], strides = [1, 1]} : vector<4x128xf32> to vector<4x17xf32>
    %138 = arith.mulf %127, %137 : vector<4x17xf32>
    %139 = arith.addf %136, %138 : vector<4x17xf32>
    %140 = math.tanh %139 : vector<4x17xf32>
    %cst_37 = arith.constant 1.000000e+00 : f32
    %141 = vector.broadcast %cst_37 : f32 to vector<4x17xf32>
    %142 = arith.subf %141, %135 : vector<4x17xf32>
    %143 = arith.mulf %142, %140 : vector<4x17xf32>
    %144 = arith.mulf %135, %77 : vector<4x17xf32>
    %145 = arith.addf %143, %144 : vector<4x17xf32>
    %c2 = arith.constant 2 : index
    %c0_38 = arith.constant 0 : index
    %c0_39 = arith.constant 0 : index
    %146 = vector.load %arg0[%c2, %c0_38, %c0_39] : memref<5x4x16xf32, #tpu.memory_space<vmem>>, vector<1x4x16xf32>
    %147 = vector.shape_cast %146 : vector<1x4x16xf32> to vector<4x16xf32>
    %cst_40 = arith.constant dense<0.000000e+00> : vector<4x128xf32>
    %148 = tpu.matmul %147, %0, %cst_40 {dimension_numbers = #tpu.dot_dimension_numbers<[1], [0], [0], [1], [0, 0, 1, 1], [], []>} : vector<4x16xf32>, vector<16x128xf32>, vector<4x128xf32> -> vector<4x128xf32>
    %149 = vector.broadcast %2 : vector<1x128xf32> to vector<4x128xf32>
    %150 = arith.addf %148, %149 : vector<4x128xf32>
    %cst_41 = arith.constant dense<0.000000e+00> : vector<4x128xf32>
    %151 = tpu.matmul %111, %1, %cst_41 {dimension_numbers = #tpu.dot_dimension_numbers<[1], [0], [0], [1], [0, 0, 1, 1], [], []>} : vector<4x17xf32>, vector<17x128xf32>, vector<4x128xf32> -> vector<4x128xf32>
    %152 = vector.broadcast %3 : vector<1x128xf32> to vector<4x128xf32>
    %153 = arith.addf %151, %152 : vector<4x128xf32>
    %154 = vector.extract_strided_slice %150 {offsets = [0, 0], sizes = [4, 17], strides = [1, 1]} : vector<4x128xf32> to vector<4x17xf32>
    %155 = vector.extract_strided_slice %153 {offsets = [0, 0], sizes = [4, 17], strides = [1, 1]} : vector<4x128xf32> to vector<4x17xf32>
    %156 = arith.addf %154, %155 : vector<4x17xf32>
    %157 = arith.negf %156 : vector<4x17xf32>
    %158 = math.exp %157 : vector<4x17xf32>
    %cst_42 = arith.constant 1.000000e+00 : f32
    %159 = vector.broadcast %cst_42 : f32 to vector<4x17xf32>
    %160 = arith.addf %159, %158 : vector<4x17xf32>
    %161 = arith.divf %159, %160 : vector<4x17xf32>
    %162 = vector.extract_strided_slice %150 {offsets = [0, 17], sizes = [4, 17], strides = [1, 1]} : vector<4x128xf32> to vector<4x17xf32>
    %163 = vector.extract_strided_slice %153 {offsets = [0, 17], sizes = [4, 17], strides = [1, 1]} : vector<4x128xf32> to vector<4x17xf32>
    %164 = arith.addf %162, %163 : vector<4x17xf32>
    %165 = arith.negf %164 : vector<4x17xf32>
    %166 = math.exp %165 : vector<4x17xf32>
    %cst_43 = arith.constant 1.000000e+00 : f32
    %167 = vector.broadcast %cst_43 : f32 to vector<4x17xf32>
    %168 = arith.addf %167, %166 : vector<4x17xf32>
    %169 = arith.divf %167, %168 : vector<4x17xf32>
    %170 = vector.extract_strided_slice %150 {offsets = [0, 34], sizes = [4, 17], strides = [1, 1]} : vector<4x128xf32> to vector<4x17xf32>
    %171 = vector.extract_strided_slice %153 {offsets = [0, 34], sizes = [4, 17], strides = [1, 1]} : vector<4x128xf32> to vector<4x17xf32>
    %172 = arith.mulf %161, %171 : vector<4x17xf32>
    %173 = arith.addf %170, %172 : vector<4x17xf32>
    %174 = math.tanh %173 : vector<4x17xf32>
    %cst_44 = arith.constant 1.000000e+00 : f32
    %175 = vector.broadcast %cst_44 : f32 to vector<4x17xf32>
    %176 = arith.subf %175, %169 : vector<4x17xf32>
    %177 = arith.mulf %176, %174 : vector<4x17xf32>
    %178 = arith.mulf %169, %111 : vector<4x17xf32>
    %179 = arith.addf %177, %178 : vector<4x17xf32>
    %c2_45 = arith.constant 2 : index
    %c0_46 = arith.constant 0 : index
    %c0_47 = arith.constant 0 : index
    %180 = vector.load %arg0[%c2_45, %c0_46, %c0_47] : memref<5x4x16xf32, #tpu.memory_space<vmem>>, vector<1x4x16xf32>
    %181 = vector.shape_cast %180 : vector<1x4x16xf32> to vector<4x16xf32>
    %cst_48 = arith.constant dense<0.000000e+00> : vector<4x128xf32>
    %182 = tpu.matmul %181, %4, %cst_48 {dimension_numbers = #tpu.dot_dimension_numbers<[1], [0], [0], [1], [0, 0, 1, 1], [], []>} : vector<4x16xf32>, vector<16x128xf32>, vector<4x128xf32> -> vector<4x128xf32>
    %183 = vector.broadcast %6 : vector<1x128xf32> to vector<4x128xf32>
    %184 = arith.addf %182, %183 : vector<4x128xf32>
    %cst_49 = arith.constant dense<0.000000e+00> : vector<4x128xf32>
    %185 = tpu.matmul %145, %5, %cst_49 {dimension_numbers = #tpu.dot_dimension_numbers<[1], [0], [0], [1], [0, 0, 1, 1], [], []>} : vector<4x17xf32>, vector<17x128xf32>, vector<4x128xf32> -> vector<4x128xf32>
    %186 = vector.broadcast %7 : vector<1x128xf32> to vector<4x128xf32>
    %187 = arith.addf %185, %186 : vector<4x128xf32>
    %188 = vector.extract_strided_slice %184 {offsets = [0, 0], sizes = [4, 17], strides = [1, 1]} : vector<4x128xf32> to vector<4x17xf32>
    %189 = vector.extract_strided_slice %187 {offsets = [0, 0], sizes = [4, 17], strides = [1, 1]} : vector<4x128xf32> to vector<4x17xf32>
    %190 = arith.addf %188, %189 : vector<4x17xf32>
    %191 = arith.negf %190 : vector<4x17xf32>
    %192 = math.exp %191 : vector<4x17xf32>
    %cst_50 = arith.constant 1.000000e+00 : f32
    %193 = vector.broadcast %cst_50 : f32 to vector<4x17xf32>
    %194 = arith.addf %193, %192 : vector<4x17xf32>
    %195 = arith.divf %193, %194 : vector<4x17xf32>
    %196 = vector.extract_strided_slice %184 {offsets = [0, 17], sizes = [4, 17], strides = [1, 1]} : vector<4x128xf32> to vector<4x17xf32>
    %197 = vector.extract_strided_slice %187 {offsets = [0, 17], sizes = [4, 17], strides = [1, 1]} : vector<4x128xf32> to vector<4x17xf32>
    %198 = arith.addf %196, %197 : vector<4x17xf32>
    %199 = arith.negf %198 : vector<4x17xf32>
    %200 = math.exp %199 : vector<4x17xf32>
    %cst_51 = arith.constant 1.000000e+00 : f32
    %201 = vector.broadcast %cst_51 : f32 to vector<4x17xf32>
    %202 = arith.addf %201, %200 : vector<4x17xf32>
    %203 = arith.divf %201, %202 : vector<4x17xf32>
    %204 = vector.extract_strided_slice %184 {offsets = [0, 34], sizes = [4, 17], strides = [1, 1]} : vector<4x128xf32> to vector<4x17xf32>
    %205 = vector.extract_strided_slice %187 {offsets = [0, 34], sizes = [4, 17], strides = [1, 1]} : vector<4x128xf32> to vector<4x17xf32>
    %206 = arith.mulf %195, %205 : vector<4x17xf32>
    %207 = arith.addf %204, %206 : vector<4x17xf32>
    %208 = math.tanh %207 : vector<4x17xf32>
    %cst_52 = arith.constant 1.000000e+00 : f32
    %209 = vector.broadcast %cst_52 : f32 to vector<4x17xf32>
    %210 = arith.subf %209, %203 : vector<4x17xf32>
    %211 = arith.mulf %210, %208 : vector<4x17xf32>
    %212 = arith.mulf %203, %145 : vector<4x17xf32>
    %213 = arith.addf %211, %212 : vector<4x17xf32>
    %c3_53 = arith.constant 3 : index
    %c0_54 = arith.constant 0 : index
    %c0_55 = arith.constant 0 : index
    %214 = vector.load %arg0[%c3_53, %c0_54, %c0_55] : memref<5x4x16xf32, #tpu.memory_space<vmem>>, vector<1x4x16xf32>
    %215 = vector.shape_cast %214 : vector<1x4x16xf32> to vector<4x16xf32>
    %cst_56 = arith.constant dense<0.000000e+00> : vector<4x128xf32>
    %216 = tpu.matmul %215, %0, %cst_56 {dimension_numbers = #tpu.dot_dimension_numbers<[1], [0], [0], [1], [0, 0, 1, 1], [], []>} : vector<4x16xf32>, vector<16x128xf32>, vector<4x128xf32> -> vector<4x128xf32>
    %217 = vector.broadcast %2 : vector<1x128xf32> to vector<4x128xf32>
    %218 = arith.addf %216, %217 : vector<4x128xf32>
    %cst_57 = arith.constant dense<0.000000e+00> : vector<4x128xf32>
    %219 = tpu.matmul %179, %1, %cst_57 {dimension_numbers = #tpu.dot_dimension_numbers<[1], [0], [0], [1], [0, 0, 1, 1], [], []>} : vector<4x17xf32>, vector<17x128xf32>, vector<4x128xf32> -> vector<4x128xf32>
    %220 = vector.broadcast %3 : vector<1x128xf32> to vector<4x128xf32>
    %221 = arith.addf %219, %220 : vector<4x128xf32>
    %222 = vector.extract_strided_slice %218 {offsets = [0, 0], sizes = [4, 17], strides = [1, 1]} : vector<4x128xf32> to vector<4x17xf32>
    %223 = vector.extract_strided_slice %221 {offsets = [0, 0], sizes = [4, 17], strides = [1, 1]} : vector<4x128xf32> to vector<4x17xf32>
    %224 = arith.addf %222, %223 : vector<4x17xf32>
    %225 = arith.negf %224 : vector<4x17xf32>
    %226 = math.exp %225 : vector<4x17xf32>
    %cst_58 = arith.constant 1.000000e+00 : f32
    %227 = vector.broadcast %cst_58 : f32 to vector<4x17xf32>
    %228 = arith.addf %227, %226 : vector<4x17xf32>
    %229 = arith.divf %227, %228 : vector<4x17xf32>
    %230 = vector.extract_strided_slice %218 {offsets = [0, 17], sizes = [4, 17], strides = [1, 1]} : vector<4x128xf32> to vector<4x17xf32>
    %231 = vector.extract_strided_slice %221 {offsets = [0, 17], sizes = [4, 17], strides = [1, 1]} : vector<4x128xf32> to vector<4x17xf32>
    %232 = arith.addf %230, %231 : vector<4x17xf32>
    %233 = arith.negf %232 : vector<4x17xf32>
    %234 = math.exp %233 : vector<4x17xf32>
    %cst_59 = arith.constant 1.000000e+00 : f32
    %235 = vector.broadcast %cst_59 : f32 to vector<4x17xf32>
    %236 = arith.addf %235, %234 : vector<4x17xf32>
    %237 = arith.divf %235, %236 : vector<4x17xf32>
    %238 = vector.extract_strided_slice %218 {offsets = [0, 34], sizes = [4, 17], strides = [1, 1]} : vector<4x128xf32> to vector<4x17xf32>
    %239 = vector.extract_strided_slice %221 {offsets = [0, 34], sizes = [4, 17], strides = [1, 1]} : vector<4x128xf32> to vector<4x17xf32>
    %240 = arith.mulf %229, %239 : vector<4x17xf32>
    %241 = arith.addf %238, %240 : vector<4x17xf32>
    %242 = math.tanh %241 : vector<4x17xf32>
    %cst_60 = arith.constant 1.000000e+00 : f32
    %243 = vector.broadcast %cst_60 : f32 to vector<4x17xf32>
    %244 = arith.subf %243, %237 : vector<4x17xf32>
    %245 = arith.mulf %244, %242 : vector<4x17xf32>
    %246 = arith.mulf %237, %179 : vector<4x17xf32>
    %247 = arith.addf %245, %246 : vector<4x17xf32>
    %c1_61 = arith.constant 1 : index
    %c0_62 = arith.constant 0 : index
    %c0_63 = arith.constant 0 : index
    %248 = vector.load %arg0[%c1_61, %c0_62, %c0_63] : memref<5x4x16xf32, #tpu.memory_space<vmem>>, vector<1x4x16xf32>
    %249 = vector.shape_cast %248 : vector<1x4x16xf32> to vector<4x16xf32>
    %cst_64 = arith.constant dense<0.000000e+00> : vector<4x128xf32>
    %250 = tpu.matmul %249, %4, %cst_64 {dimension_numbers = #tpu.dot_dimension_numbers<[1], [0], [0], [1], [0, 0, 1, 1], [], []>} : vector<4x16xf32>, vector<16x128xf32>, vector<4x128xf32> -> vector<4x128xf32>
    %251 = vector.broadcast %6 : vector<1x128xf32> to vector<4x128xf32>
    %252 = arith.addf %250, %251 : vector<4x128xf32>
    %cst_65 = arith.constant dense<0.000000e+00> : vector<4x128xf32>
    %253 = tpu.matmul %213, %5, %cst_65 {dimension_numbers = #tpu.dot_dimension_numbers<[1], [0], [0], [1], [0, 0, 1, 1], [], []>} : vector<4x17xf32>, vector<17x128xf32>, vector<4x128xf32> -> vector<4x128xf32>
    %254 = vector.broadcast %7 : vector<1x128xf32> to vector<4x128xf32>
    %255 = arith.addf %253, %254 : vector<4x128xf32>
    %256 = vector.extract_strided_slice %252 {offsets = [0, 0], sizes = [4, 17], strides = [1, 1]} : vector<4x128xf32> to vector<4x17xf32>
    %257 = vector.extract_strided_slice %255 {offsets = [0, 0], sizes = [4, 17], strides = [1, 1]} : vector<4x128xf32> to vector<4x17xf32>
    %258 = arith.addf %256, %257 : vector<4x17xf32>
    %259 = arith.negf %258 : vector<4x17xf32>
    %260 = math.exp %259 : vector<4x17xf32>
    %cst_66 = arith.constant 1.000000e+00 : f32
    %261 = vector.broadcast %cst_66 : f32 to vector<4x17xf32>
    %262 = arith.addf %261, %260 : vector<4x17xf32>
    %263 = arith.divf %261, %262 : vector<4x17xf32>
    %264 = vector.extract_strided_slice %252 {offsets = [0, 17], sizes = [4, 17], strides = [1, 1]} : vector<4x128xf32> to vector<4x17xf32>
    %265 = vector.extract_strided_slice %255 {offsets = [0, 17], sizes = [4, 17], strides = [1, 1]} : vector<4x128xf32> to vector<4x17xf32>
    %266 = arith.addf %264, %265 : vector<4x17xf32>
    %267 = arith.negf %266 : vector<4x17xf32>
    %268 = math.exp %267 : vector<4x17xf32>
    %cst_67 = arith.constant 1.000000e+00 : f32
    %269 = vector.broadcast %cst_67 : f32 to vector<4x17xf32>
    %270 = arith.addf %269, %268 : vector<4x17xf32>
    %271 = arith.divf %269, %270 : vector<4x17xf32>
    %272 = vector.extract_strided_slice %252 {offsets = [0, 34], sizes = [4, 17], strides = [1, 1]} : vector<4x128xf32> to vector<4x17xf32>
    %273 = vector.extract_strided_slice %255 {offsets = [0, 34], sizes = [4, 17], strides = [1, 1]} : vector<4x128xf32> to vector<4x17xf32>
    %274 = arith.mulf %263, %273 : vector<4x17xf32>
    %275 = arith.addf %272, %274 : vector<4x17xf32>
    %276 = math.tanh %275 : vector<4x17xf32>
    %cst_68 = arith.constant 1.000000e+00 : f32
    %277 = vector.broadcast %cst_68 : f32 to vector<4x17xf32>
    %278 = arith.subf %277, %271 : vector<4x17xf32>
    %279 = arith.mulf %278, %276 : vector<4x17xf32>
    %280 = arith.mulf %271, %213 : vector<4x17xf32>
    %281 = arith.addf %279, %280 : vector<4x17xf32>
    %c4_69 = arith.constant 4 : index
    %c0_70 = arith.constant 0 : index
    %c0_71 = arith.constant 0 : index
    %282 = vector.load %arg0[%c4_69, %c0_70, %c0_71] : memref<5x4x16xf32, #tpu.memory_space<vmem>>, vector<1x4x16xf32>
    %283 = vector.shape_cast %282 : vector<1x4x16xf32> to vector<4x16xf32>
    %cst_72 = arith.constant dense<0.000000e+00> : vector<4x128xf32>
    %284 = tpu.matmul %283, %0, %cst_72 {dimension_numbers = #tpu.dot_dimension_numbers<[1], [0], [0], [1], [0, 0, 1, 1], [], []>} : vector<4x16xf32>, vector<16x128xf32>, vector<4x128xf32> -> vector<4x128xf32>
    %285 = vector.broadcast %2 : vector<1x128xf32> to vector<4x128xf32>
    %286 = arith.addf %284, %285 : vector<4x128xf32>
    %cst_73 = arith.constant dense<0.000000e+00> : vector<4x128xf32>
    %287 = tpu.matmul %247, %1, %cst_73 {dimension_numbers = #tpu.dot_dimension_numbers<[1], [0], [0], [1], [0, 0, 1, 1], [], []>} : vector<4x17xf32>, vector<17x128xf32>, vector<4x128xf32> -> vector<4x128xf32>
    %288 = vector.broadcast %3 : vector<1x128xf32> to vector<4x128xf32>
    %289 = arith.addf %287, %288 : vector<4x128xf32>
    %290 = vector.extract_strided_slice %286 {offsets = [0, 0], sizes = [4, 17], strides = [1, 1]} : vector<4x128xf32> to vector<4x17xf32>
    %291 = vector.extract_strided_slice %289 {offsets = [0, 0], sizes = [4, 17], strides = [1, 1]} : vector<4x128xf32> to vector<4x17xf32>
    %292 = arith.addf %290, %291 : vector<4x17xf32>
    %293 = arith.negf %292 : vector<4x17xf32>
    %294 = math.exp %293 : vector<4x17xf32>
    %cst_74 = arith.constant 1.000000e+00 : f32
    %295 = vector.broadcast %cst_74 : f32 to vector<4x17xf32>
    %296 = arith.addf %295, %294 : vector<4x17xf32>
    %297 = arith.divf %295, %296 : vector<4x17xf32>
    %298 = vector.extract_strided_slice %286 {offsets = [0, 17], sizes = [4, 17], strides = [1, 1]} : vector<4x128xf32> to vector<4x17xf32>
    %299 = vector.extract_strided_slice %289 {offsets = [0, 17], sizes = [4, 17], strides = [1, 1]} : vector<4x128xf32> to vector<4x17xf32>
    %300 = arith.addf %298, %299 : vector<4x17xf32>
    %301 = arith.negf %300 : vector<4x17xf32>
    %302 = math.exp %301 : vector<4x17xf32>
    %cst_75 = arith.constant 1.000000e+00 : f32
    %303 = vector.broadcast %cst_75 : f32 to vector<4x17xf32>
    %304 = arith.addf %303, %302 : vector<4x17xf32>
    %305 = arith.divf %303, %304 : vector<4x17xf32>
    %306 = vector.extract_strided_slice %286 {offsets = [0, 34], sizes = [4, 17], strides = [1, 1]} : vector<4x128xf32> to vector<4x17xf32>
    %307 = vector.extract_strided_slice %289 {offsets = [0, 34], sizes = [4, 17], strides = [1, 1]} : vector<4x128xf32> to vector<4x17xf32>
    %308 = arith.mulf %297, %307 : vector<4x17xf32>
    %309 = arith.addf %306, %308 : vector<4x17xf32>
    %310 = math.tanh %309 : vector<4x17xf32>
    %cst_76 = arith.constant 1.000000e+00 : f32
    %311 = vector.broadcast %cst_76 : f32 to vector<4x17xf32>
    %312 = arith.subf %311, %305 : vector<4x17xf32>
    %313 = arith.mulf %312, %310 : vector<4x17xf32>
    %314 = arith.mulf %305, %247 : vector<4x17xf32>
    %315 = arith.addf %313, %314 : vector<4x17xf32>
    %c0_77 = arith.constant 0 : index
    %c0_78 = arith.constant 0 : index
    %c0_79 = arith.constant 0 : index
    %316 = vector.load %arg0[%c0_77, %c0_78, %c0_79] : memref<5x4x16xf32, #tpu.memory_space<vmem>>, vector<1x4x16xf32>
    %317 = vector.shape_cast %316 : vector<1x4x16xf32> to vector<4x16xf32>
    %cst_80 = arith.constant dense<0.000000e+00> : vector<4x128xf32>
    %318 = tpu.matmul %317, %4, %cst_80 {dimension_numbers = #tpu.dot_dimension_numbers<[1], [0], [0], [1], [0, 0, 1, 1], [], []>} : vector<4x16xf32>, vector<16x128xf32>, vector<4x128xf32> -> vector<4x128xf32>
    %319 = vector.broadcast %6 : vector<1x128xf32> to vector<4x128xf32>
    %320 = arith.addf %318, %319 : vector<4x128xf32>
    %cst_81 = arith.constant dense<0.000000e+00> : vector<4x128xf32>
    %321 = tpu.matmul %281, %5, %cst_81 {dimension_numbers = #tpu.dot_dimension_numbers<[1], [0], [0], [1], [0, 0, 1, 1], [], []>} : vector<4x17xf32>, vector<17x128xf32>, vector<4x128xf32> -> vector<4x128xf32>
    %322 = vector.broadcast %7 : vector<1x128xf32> to vector<4x128xf32>
    %323 = arith.addf %321, %322 : vector<4x128xf32>
    %324 = vector.extract_strided_slice %320 {offsets = [0, 0], sizes = [4, 17], strides = [1, 1]} : vector<4x128xf32> to vector<4x17xf32>
    %325 = vector.extract_strided_slice %323 {offsets = [0, 0], sizes = [4, 17], strides = [1, 1]} : vector<4x128xf32> to vector<4x17xf32>
    %326 = arith.addf %324, %325 : vector<4x17xf32>
    %327 = arith.negf %326 : vector<4x17xf32>
    %328 = math.exp %327 : vector<4x17xf32>
    %cst_82 = arith.constant 1.000000e+00 : f32
    %329 = vector.broadcast %cst_82 : f32 to vector<4x17xf32>
    %330 = arith.addf %329, %328 : vector<4x17xf32>
    %331 = arith.divf %329, %330 : vector<4x17xf32>
    %332 = vector.extract_strided_slice %320 {offsets = [0, 17], sizes = [4, 17], strides = [1, 1]} : vector<4x128xf32> to vector<4x17xf32>
    %333 = vector.extract_strided_slice %323 {offsets = [0, 17], sizes = [4, 17], strides = [1, 1]} : vector<4x128xf32> to vector<4x17xf32>
    %334 = arith.addf %332, %333 : vector<4x17xf32>
    %335 = arith.negf %334 : vector<4x17xf32>
    %336 = math.exp %335 : vector<4x17xf32>
    %cst_83 = arith.constant 1.000000e+00 : f32
    %337 = vector.broadcast %cst_83 : f32 to vector<4x17xf32>
    %338 = arith.addf %337, %336 : vector<4x17xf32>
    %339 = arith.divf %337, %338 : vector<4x17xf32>
    %340 = vector.extract_strided_slice %320 {offsets = [0, 34], sizes = [4, 17], strides = [1, 1]} : vector<4x128xf32> to vector<4x17xf32>
    %341 = vector.extract_strided_slice %323 {offsets = [0, 34], sizes = [4, 17], strides = [1, 1]} : vector<4x128xf32> to vector<4x17xf32>
    %342 = arith.mulf %331, %341 : vector<4x17xf32>
    %343 = arith.addf %340, %342 : vector<4x17xf32>
    %344 = math.tanh %343 : vector<4x17xf32>
    %cst_84 = arith.constant 1.000000e+00 : f32
    %345 = vector.broadcast %cst_84 : f32 to vector<4x17xf32>
    %346 = arith.subf %345, %339 : vector<4x17xf32>
    %347 = arith.mulf %346, %344 : vector<4x17xf32>
    %348 = arith.mulf %339, %281 : vector<4x17xf32>
    %349 = arith.addf %347, %348 : vector<4x17xf32>
    %350 = tpu.concatenate %315, %349 in 1 : vector<4x17xf32>, vector<4x17xf32> -> vector<4x34xf32>
    %c112 = arith.constant 112 : index
    %c0_85 = arith.constant 0 : index
    %351 = vector.load %arg2[%c112, %c0_85] : memref<360x128xf32, #tpu.memory_space<vmem>>, vector<34x128xf32>
    %cst_86 = arith.constant dense<0.000000e+00> : vector<4x128xf32>
    %352 = tpu.matmul %350, %351, %cst_86 {dimension_numbers = #tpu.dot_dimension_numbers<[1], [0], [0], [1], [0, 0, 1, 1], [], []>} : vector<4x34xf32>, vector<34x128xf32>, vector<4x128xf32> -> vector<4x128xf32>
    %c152 = arith.constant 152 : index
    %c0_87 = arith.constant 0 : index
    %353 = vector.load %arg2[%c152, %c0_87] : memref<360x128xf32, #tpu.memory_space<vmem>>, vector<1x128xf32>
    %354 = vector.broadcast %353 : vector<1x128xf32> to vector<4x128xf32>
    %355 = arith.addf %352, %354 : vector<4x128xf32>
    %356 = math.tanh %355 : vector<4x128xf32>
    %357 = vector.extract_strided_slice %356 {offsets = [0, 0], sizes = [4, 19], strides = [1, 1]} : vector<4x128xf32> to vector<4x19xf32>
    %358 = tpu.concatenate %43, %349 in 1 : vector<4x17xf32>, vector<4x17xf32> -> vector<4x34xf32>
    %359 = tpu.concatenate %111, %281 in 1 : vector<4x17xf32>, vector<4x17xf32> -> vector<4x34xf32>
    %360 = tpu.concatenate %179, %213 in 1 : vector<4x17xf32>, vector<4x17xf32> -> vector<4x34xf32>
    %361 = tpu.concatenate %247, %145 in 1 : vector<4x17xf32>, vector<4x17xf32> -> vector<4x34xf32>
    %362 = tpu.concatenate %315, %77 in 1 : vector<4x17xf32>, vector<4x17xf32> -> vector<4x34xf32>
    %363 = vector.shape_cast %358 : vector<4x34xf32> to vector<4x1x34xf32>
    %364 = vector.shape_cast %359 : vector<4x34xf32> to vector<4x1x34xf32>
    %365 = vector.shape_cast %360 : vector<4x34xf32> to vector<4x1x34xf32>
    %366 = vector.shape_cast %361 : vector<4x34xf32> to vector<4x1x34xf32>
    %367 = vector.shape_cast %362 : vector<4x34xf32> to vector<4x1x34xf32>
    %368 = tpu.concatenate %363, %364, %365, %366, %367 in 1 : vector<4x1x34xf32>, vector<4x1x34xf32>, vector<4x1x34xf32>, vector<4x1x34xf32>, vector<4x1x34xf32> -> vector<4x5x34xf32>
    %c160 = arith.constant 160 : index
    %c0_88 = arith.constant 0 : index
    %369 = vector.load %arg2[%c160, %c0_88] : memref<360x128xf32, #tpu.memory_space<vmem>>, vector<19x128xf32>
    %c184 = arith.constant 184 : index
    %c0_89 = arith.constant 0 : index
    %370 = vector.load %arg2[%c184, %c0_89] : memref<360x128xf32, #tpu.memory_space<vmem>>, vector<52x128xf32>
    %c240 = arith.constant 240 : index
    %c0_90 = arith.constant 0 : index
    %371 = vector.load %arg2[%c240, %c0_90] : memref<360x128xf32, #tpu.memory_space<vmem>>, vector<19x128xf32>
    %c264 = arith.constant 264 : index
    %c0_91 = arith.constant 0 : index
    %372 = vector.load %arg2[%c264, %c0_91] : memref<360x128xf32, #tpu.memory_space<vmem>>, vector<1x128xf32>
    %c272 = arith.constant 272 : index
    %c0_92 = arith.constant 0 : index
    %373 = vector.load %arg2[%c272, %c0_92] : memref<360x128xf32, #tpu.memory_space<vmem>>, vector<1x128xf32>
    %c280 = arith.constant 280 : index
    %c0_93 = arith.constant 0 : index
    %374 = vector.load %arg2[%c280, %c0_93] : memref<360x128xf32, #tpu.memory_space<vmem>>, vector<71x128xf32>
    %c352 = arith.constant 352 : index
    %c0_94 = arith.constant 0 : index
    %375 = vector.load %arg2[%c352, %c0_94] : memref<360x128xf32, #tpu.memory_space<vmem>>, vector<1x128xf32>
    %c0_95 = arith.constant 0 : index
    %c0_96 = arith.constant 0 : index
    %c0_97 = arith.constant 0 : index
    %376 = vector.load %arg1[%c0_95, %c0_96, %c0_97] : memref<6x4x18xf32, #tpu.memory_space<vmem>>, vector<1x4x18xf32>
    %377 = vector.shape_cast %376 : vector<1x4x18xf32> to vector<4x18xf32>
    %cst_98 = arith.constant dense<0.000000e+00> : vector<4x128xf32>
    %378 = tpu.matmul %357, %369, %cst_98 {dimension_numbers = #tpu.dot_dimension_numbers<[1], [0], [0], [1], [0, 0, 1, 1], [], []>} : vector<4x19xf32>, vector<19x128xf32>, vector<4x128xf32> -> vector<4x128xf32>
    %379 = vector.extract_strided_slice %378 {offsets = [0, 0], sizes = [4, 34], strides = [1, 1]} : vector<4x128xf32> to vector<4x34xf32>
    %380 = vector.shape_cast %379 : vector<4x34xf32> to vector<4x1x34xf32>
    "tpu.trace_start"() <{level = 10 : i32, message = "bqd,bkd->bqk"}> : () -> ()
    %cst_99 = arith.constant dense<0.000000e+00> : vector<4x1x5xf32>
    %381 = tpu.matmul %380, %368, %cst_99 {dimension_numbers = #tpu.dot_dimension_numbers<[2], [2], [1], [1], [0, 0, 0, 1, 1, 1], [0], [0]>} : vector<4x1x34xf32>, vector<4x5x34xf32>, vector<4x1x5xf32> -> vector<4x1x5xf32>
    "tpu.trace_stop"() : () -> ()
    %cst_100 = arith.constant 0.171498582 : f32
    %382 = vector.broadcast %cst_100 : f32 to vector<4x1x5xf32>
    %383 = arith.mulf %381, %382 : vector<4x1x5xf32>
    %cst_101 = arith.constant dense<0xFF800000> : vector<4x1xf32>
    %384 = vector.multi_reduction <maximumf>, %383, %cst_101 [2] : vector<4x1x5xf32> to vector<4x1xf32>
    %385 = vector.shape_cast %384 : vector<4x1xf32> to vector<4x1x1xf32>
    %386 = vector.broadcast %385 : vector<4x1x1xf32> to vector<4x1x5xf32>
    %387 = arith.subf %383, %386 : vector<4x1x5xf32>
    %388 = math.exp %387 : vector<4x1x5xf32>
    %cst_102 = arith.constant dense<0.000000e+00> : vector<4x1xf32>
    %389 = vector.multi_reduction <add>, %388, %cst_102 [2] : vector<4x1x5xf32> to vector<4x1xf32>
    %390 = vector.shape_cast %389 : vector<4x1xf32> to vector<4x1x1xf32>
    %391 = tpu.reciprocal %390 {approx = true} : vector<4x1x1xf32> -> vector<4x1x1xf32>
    %392 = vector.broadcast %391 : vector<4x1x1xf32> to vector<4x1x5xf32>
    %393 = arith.mulf %388, %392 : vector<4x1x5xf32>
    "tpu.trace_start"() <{level = 10 : i32, message = "bqk,bkd->bqd"}> : () -> ()
    %cst_103 = arith.constant dense<0.000000e+00> : vector<4x1x34xf32>
    %394 = tpu.matmul %393, %368, %cst_103 {dimension_numbers = #tpu.dot_dimension_numbers<[2], [1], [1], [2], [0, 0, 0, 1, 1, 2], [0], [0]>} : vector<4x1x5xf32>, vector<4x5x34xf32>, vector<4x1x34xf32> -> vector<4x1x34xf32>
    "tpu.trace_stop"() : () -> ()
    %395 = vector.shape_cast %394 : vector<4x1x34xf32> to vector<4x34xf32>
    %396 = tpu.concatenate %377, %395 in 1 : vector<4x18xf32>, vector<4x34xf32> -> vector<4x52xf32>
    %cst_104 = arith.constant dense<0.000000e+00> : vector<4x128xf32>
    %397 = tpu.matmul %396, %370, %cst_104 {dimension_numbers = #tpu.dot_dimension_numbers<[1], [0], [0], [1], [0, 0, 1, 1], [], []>} : vector<4x52xf32>, vector<52x128xf32>, vector<4x128xf32> -> vector<4x128xf32>
    %398 = vector.broadcast %372 : vector<1x128xf32> to vector<4x128xf32>
    %399 = arith.addf %397, %398 : vector<4x128xf32>
    %cst_105 = arith.constant dense<0.000000e+00> : vector<4x128xf32>
    %400 = tpu.matmul %357, %371, %cst_105 {dimension_numbers = #tpu.dot_dimension_numbers<[1], [0], [0], [1], [0, 0, 1, 1], [], []>} : vector<4x19xf32>, vector<19x128xf32>, vector<4x128xf32> -> vector<4x128xf32>
    %401 = vector.broadcast %373 : vector<1x128xf32> to vector<4x128xf32>
    %402 = arith.addf %400, %401 : vector<4x128xf32>
    %403 = vector.extract_strided_slice %399 {offsets = [0, 0], sizes = [4, 19], strides = [1, 1]} : vector<4x128xf32> to vector<4x19xf32>
    %404 = vector.extract_strided_slice %402 {offsets = [0, 0], sizes = [4, 19], strides = [1, 1]} : vector<4x128xf32> to vector<4x19xf32>
    %405 = arith.addf %403, %404 : vector<4x19xf32>
    %406 = arith.negf %405 : vector<4x19xf32>
    %407 = math.exp %406 : vector<4x19xf32>
    %cst_106 = arith.constant 1.000000e+00 : f32
    %408 = vector.broadcast %cst_106 : f32 to vector<4x19xf32>
    %409 = arith.addf %408, %407 : vector<4x19xf32>
    %410 = arith.divf %408, %409 : vector<4x19xf32>
    %411 = vector.extract_strided_slice %399 {offsets = [0, 19], sizes = [4, 19], strides = [1, 1]} : vector<4x128xf32> to vector<4x19xf32>
    %412 = vector.extract_strided_slice %402 {offsets = [0, 19], sizes = [4, 19], strides = [1, 1]} : vector<4x128xf32> to vector<4x19xf32>
    %413 = arith.addf %411, %412 : vector<4x19xf32>
    %414 = arith.negf %413 : vector<4x19xf32>
    %415 = math.exp %414 : vector<4x19xf32>
    %cst_107 = arith.constant 1.000000e+00 : f32
    %416 = vector.broadcast %cst_107 : f32 to vector<4x19xf32>
    %417 = arith.addf %416, %415 : vector<4x19xf32>
    %418 = arith.divf %416, %417 : vector<4x19xf32>
    %419 = vector.extract_strided_slice %399 {offsets = [0, 38], sizes = [4, 19], strides = [1, 1]} : vector<4x128xf32> to vector<4x19xf32>
    %420 = vector.extract_strided_slice %402 {offsets = [0, 38], sizes = [4, 19], strides = [1, 1]} : vector<4x128xf32> to vector<4x19xf32>
    %421 = arith.mulf %410, %420 : vector<4x19xf32>
    %422 = arith.addf %419, %421 : vector<4x19xf32>
    %423 = math.tanh %422 : vector<4x19xf32>
    %cst_108 = arith.constant 1.000000e+00 : f32
    %424 = vector.broadcast %cst_108 : f32 to vector<4x19xf32>
    %425 = arith.subf %424, %418 : vector<4x19xf32>
    %426 = arith.mulf %425, %423 : vector<4x19xf32>
    %427 = arith.mulf %418, %357 : vector<4x19xf32>
    %428 = arith.addf %426, %427 : vector<4x19xf32>
    %429 = tpu.concatenate %428, %395, %377 in 1 : vector<4x19xf32>, vector<4x34xf32>, vector<4x18xf32> -> vector<4x71xf32>
    %cst_109 = arith.constant dense<0.000000e+00> : vector<4x128xf32>
    %430 = tpu.matmul %429, %374, %cst_109 {dimension_numbers = #tpu.dot_dimension_numbers<[1], [0], [0], [1], [0, 0, 1, 1], [], []>} : vector<4x71xf32>, vector<71x128xf32>, vector<4x128xf32> -> vector<4x128xf32>
    %431 = vector.broadcast %375 : vector<1x128xf32> to vector<4x128xf32>
    %432 = arith.addf %430, %431 : vector<4x128xf32>
    %c0_110 = arith.constant 0 : index
    %c0_111 = arith.constant 0 : index
    %c0_112 = arith.constant 0 : index
    %433 = vector.load %arg3[%c0_110, %c0_111, %c0_112] : memref<6x4x128xf32, #tpu.memory_space<vmem>>, vector<1x4x128xf32>
    %434 = vector.shape_cast %433 : vector<1x4x128xf32> to vector<4x128xf32>
    %435 = vector.shape_cast %432 : vector<4x128xf32> to vector<1x4x128xf32>
    tpu.vector_store %arg3[%c0_110, %c0_111, %c0_112], %435 {strides = array<i32>} : memref<6x4x128xf32, #tpu.memory_space<vmem>>, vector<1x4x128xf32>,
    %c1_113 = arith.constant 1 : index
    %c0_114 = arith.constant 0 : index
    %c0_115 = arith.constant 0 : index
    %436 = vector.load %arg1[%c1_113, %c0_114, %c0_115] : memref<6x4x18xf32, #tpu.memory_space<vmem>>, vector<1x4x18xf32>
    %437 = vector.shape_cast %436 : vector<1x4x18xf32> to vector<4x18xf32>
    %cst_116 = arith.constant dense<0.000000e+00> : vector<4x128xf32>
    %438 = tpu.matmul %428, %369, %cst_116 {dimension_numbers = #tpu.dot_dimension_numbers<[1], [0], [0], [1], [0, 0, 1, 1], [], []>} : vector<4x19xf32>, vector<19x128xf32>, vector<4x128xf32> -> vector<4x128xf32>
    %439 = vector.extract_strided_slice %438 {offsets = [0, 0], sizes = [4, 34], strides = [1, 1]} : vector<4x128xf32> to vector<4x34xf32>
    %440 = vector.shape_cast %439 : vector<4x34xf32> to vector<4x1x34xf32>
    "tpu.trace_start"() <{level = 10 : i32, message = "bqd,bkd->bqk"}> : () -> ()
    %cst_117 = arith.constant dense<0.000000e+00> : vector<4x1x5xf32>
    %441 = tpu.matmul %440, %368, %cst_117 {dimension_numbers = #tpu.dot_dimension_numbers<[2], [2], [1], [1], [0, 0, 0, 1, 1, 1], [0], [0]>} : vector<4x1x34xf32>, vector<4x5x34xf32>, vector<4x1x5xf32> -> vector<4x1x5xf32>
    "tpu.trace_stop"() : () -> ()
    %cst_118 = arith.constant 0.171498582 : f32
    %442 = vector.broadcast %cst_118 : f32 to vector<4x1x5xf32>
    %443 = arith.mulf %441, %442 : vector<4x1x5xf32>
    %cst_119 = arith.constant dense<0xFF800000> : vector<4x1xf32>
    %444 = vector.multi_reduction <maximumf>, %443, %cst_119 [2] : vector<4x1x5xf32> to vector<4x1xf32>
    %445 = vector.shape_cast %444 : vector<4x1xf32> to vector<4x1x1xf32>
    %446 = vector.broadcast %445 : vector<4x1x1xf32> to vector<4x1x5xf32>
    %447 = arith.subf %443, %446 : vector<4x1x5xf32>
    %448 = math.exp %447 : vector<4x1x5xf32>
    %cst_120 = arith.constant dense<0.000000e+00> : vector<4x1xf32>
    %449 = vector.multi_reduction <add>, %448, %cst_120 [2] : vector<4x1x5xf32> to vector<4x1xf32>
    %450 = vector.shape_cast %449 : vector<4x1xf32> to vector<4x1x1xf32>
    %451 = tpu.reciprocal %450 {approx = true} : vector<4x1x1xf32> -> vector<4x1x1xf32>
    %452 = vector.broadcast %451 : vector<4x1x1xf32> to vector<4x1x5xf32>
    %453 = arith.mulf %448, %452 : vector<4x1x5xf32>
    "tpu.trace_start"() <{level = 10 : i32, message = "bqk,bkd->bqd"}> : () -> ()
    %cst_121 = arith.constant dense<0.000000e+00> : vector<4x1x34xf32>
    %454 = tpu.matmul %453, %368, %cst_121 {dimension_numbers = #tpu.dot_dimension_numbers<[2], [1], [1], [2], [0, 0, 0, 1, 1, 2], [0], [0]>} : vector<4x1x5xf32>, vector<4x5x34xf32>, vector<4x1x34xf32> -> vector<4x1x34xf32>
    "tpu.trace_stop"() : () -> ()
    %455 = vector.shape_cast %454 : vector<4x1x34xf32> to vector<4x34xf32>
    %456 = tpu.concatenate %437, %455 in 1 : vector<4x18xf32>, vector<4x34xf32> -> vector<4x52xf32>
    %cst_122 = arith.constant dense<0.000000e+00> : vector<4x128xf32>
    %457 = tpu.matmul %456, %370, %cst_122 {dimension_numbers = #tpu.dot_dimension_numbers<[1], [0], [0], [1], [0, 0, 1, 1], [], []>} : vector<4x52xf32>, vector<52x128xf32>, vector<4x128xf32> -> vector<4x128xf32>
    %458 = vector.broadcast %372 : vector<1x128xf32> to vector<4x128xf32>
    %459 = arith.addf %457, %458 : vector<4x128xf32>
    %cst_123 = arith.constant dense<0.000000e+00> : vector<4x128xf32>
    %460 = tpu.matmul %428, %371, %cst_123 {dimension_numbers = #tpu.dot_dimension_numbers<[1], [0], [0], [1], [0, 0, 1, 1], [], []>} : vector<4x19xf32>, vector<19x128xf32>, vector<4x128xf32> -> vector<4x128xf32>
    %461 = vector.broadcast %373 : vector<1x128xf32> to vector<4x128xf32>
    %462 = arith.addf %460, %461 : vector<4x128xf32>
    %463 = vector.extract_strided_slice %459 {offsets = [0, 0], sizes = [4, 19], strides = [1, 1]} : vector<4x128xf32> to vector<4x19xf32>
    %464 = vector.extract_strided_slice %462 {offsets = [0, 0], sizes = [4, 19], strides = [1, 1]} : vector<4x128xf32> to vector<4x19xf32>
    %465 = arith.addf %463, %464 : vector<4x19xf32>
    %466 = arith.negf %465 : vector<4x19xf32>
    %467 = math.exp %466 : vector<4x19xf32>
    %cst_124 = arith.constant 1.000000e+00 : f32
    %468 = vector.broadcast %cst_124 : f32 to vector<4x19xf32>
    %469 = arith.addf %468, %467 : vector<4x19xf32>
    %470 = arith.divf %468, %469 : vector<4x19xf32>
    %471 = vector.extract_strided_slice %459 {offsets = [0, 19], sizes = [4, 19], strides = [1, 1]} : vector<4x128xf32> to vector<4x19xf32>
    %472 = vector.extract_strided_slice %462 {offsets = [0, 19], sizes = [4, 19], strides = [1, 1]} : vector<4x128xf32> to vector<4x19xf32>
    %473 = arith.addf %471, %472 : vector<4x19xf32>
    %474 = arith.negf %473 : vector<4x19xf32>
    %475 = math.exp %474 : vector<4x19xf32>
    %cst_125 = arith.constant 1.000000e+00 : f32
    %476 = vector.broadcast %cst_125 : f32 to vector<4x19xf32>
    %477 = arith.addf %476, %475 : vector<4x19xf32>
    %478 = arith.divf %476, %477 : vector<4x19xf32>
    %479 = vector.extract_strided_slice %459 {offsets = [0, 38], sizes = [4, 19], strides = [1, 1]} : vector<4x128xf32> to vector<4x19xf32>
    %480 = vector.extract_strided_slice %462 {offsets = [0, 38], sizes = [4, 19], strides = [1, 1]} : vector<4x128xf32> to vector<4x19xf32>
    %481 = arith.mulf %470, %480 : vector<4x19xf32>
    %482 = arith.addf %479, %481 : vector<4x19xf32>
    %483 = math.tanh %482 : vector<4x19xf32>
    %cst_126 = arith.constant 1.000000e+00 : f32
    %484 = vector.broadcast %cst_126 : f32 to vector<4x19xf32>
    %485 = arith.subf %484, %478 : vector<4x19xf32>
    %486 = arith.mulf %485, %483 : vector<4x19xf32>
    %487 = arith.mulf %478, %428 : vector<4x19xf32>
    %488 = arith.addf %486, %487 : vector<4x19xf32>
    %489 = tpu.concatenate %488, %455, %437 in 1 : vector<4x19xf32>, vector<4x34xf32>, vector<4x18xf32> -> vector<4x71xf32>
    %cst_127 = arith.constant dense<0.000000e+00> : vector<4x128xf32>
    %490 = tpu.matmul %489, %374, %cst_127 {dimension_numbers = #tpu.dot_dimension_numbers<[1], [0], [0], [1], [0, 0, 1, 1], [], []>} : vector<4x71xf32>, vector<71x128xf32>, vector<4x128xf32> -> vector<4x128xf32>
    %491 = vector.broadcast %375 : vector<1x128xf32> to vector<4x128xf32>
    %492 = arith.addf %490, %491 : vector<4x128xf32>
    %c1_128 = arith.constant 1 : index
    %c0_129 = arith.constant 0 : index
    %c0_130 = arith.constant 0 : index
    %493 = vector.load %arg3[%c1_128, %c0_129, %c0_130] : memref<6x4x128xf32, #tpu.memory_space<vmem>>, vector<1x4x128xf32>
    %494 = vector.shape_cast %493 : vector<1x4x128xf32> to vector<4x128xf32>
    %495 = vector.shape_cast %492 : vector<4x128xf32> to vector<1x4x128xf32>
    tpu.vector_store %arg3[%c1_128, %c0_129, %c0_130], %495 {strides = array<i32>} : memref<6x4x128xf32, #tpu.memory_space<vmem>>, vector<1x4x128xf32>,
    %c2_131 = arith.constant 2 : index
    %c0_132 = arith.constant 0 : index
    %c0_133 = arith.constant 0 : index
    %496 = vector.load %arg1[%c2_131, %c0_132, %c0_133] : memref<6x4x18xf32, #tpu.memory_space<vmem>>, vector<1x4x18xf32>
    %497 = vector.shape_cast %496 : vector<1x4x18xf32> to vector<4x18xf32>
    %cst_134 = arith.constant dense<0.000000e+00> : vector<4x128xf32>
    %498 = tpu.matmul %488, %369, %cst_134 {dimension_numbers = #tpu.dot_dimension_numbers<[1], [0], [0], [1], [0, 0, 1, 1], [], []>} : vector<4x19xf32>, vector<19x128xf32>, vector<4x128xf32> -> vector<4x128xf32>
    %499 = vector.extract_strided_slice %498 {offsets = [0, 0], sizes = [4, 34], strides = [1, 1]} : vector<4x128xf32> to vector<4x34xf32>
    %500 = vector.shape_cast %499 : vector<4x34xf32> to vector<4x1x34xf32>
    "tpu.trace_start"() <{level = 10 : i32, message = "bqd,bkd->bqk"}> : () -> ()
    %cst_135 = arith.constant dense<0.000000e+00> : vector<4x1x5xf32>
    %501 = tpu.matmul %500, %368, %cst_135 {dimension_numbers = #tpu.dot_dimension_numbers<[2], [2], [1], [1], [0, 0, 0, 1, 1, 1], [0], [0]>} : vector<4x1x34xf32>, vector<4x5x34xf32>, vector<4x1x5xf32> -> vector<4x1x5xf32>
    "tpu.trace_stop"() : () -> ()
    %cst_136 = arith.constant 0.171498582 : f32
    %502 = vector.broadcast %cst_136 : f32 to vector<4x1x5xf32>
    %503 = arith.mulf %501, %502 : vector<4x1x5xf32>
    %cst_137 = arith.constant dense<0xFF800000> : vector<4x1xf32>
    %504 = vector.multi_reduction <maximumf>, %503, %cst_137 [2] : vector<4x1x5xf32> to vector<4x1xf32>
    %505 = vector.shape_cast %504 : vector<4x1xf32> to vector<4x1x1xf32>
    %506 = vector.broadcast %505 : vector<4x1x1xf32> to vector<4x1x5xf32>
    %507 = arith.subf %503, %506 : vector<4x1x5xf32>
    %508 = math.exp %507 : vector<4x1x5xf32>
    %cst_138 = arith.constant dense<0.000000e+00> : vector<4x1xf32>
    %509 = vector.multi_reduction <add>, %508, %cst_138 [2] : vector<4x1x5xf32> to vector<4x1xf32>
    %510 = vector.shape_cast %509 : vector<4x1xf32> to vector<4x1x1xf32>
    %511 = tpu.reciprocal %510 {approx = true} : vector<4x1x1xf32> -> vector<4x1x1xf32>
    %512 = vector.broadcast %511 : vector<4x1x1xf32> to vector<4x1x5xf32>
    %513 = arith.mulf %508, %512 : vector<4x1x5xf32>
    "tpu.trace_start"() <{level = 10 : i32, message = "bqk,bkd->bqd"}> : () -> ()
    %cst_139 = arith.constant dense<0.000000e+00> : vector<4x1x34xf32>
    %514 = tpu.matmul %513, %368, %cst_139 {dimension_numbers = #tpu.dot_dimension_numbers<[2], [1], [1], [2], [0, 0, 0, 1, 1, 2], [0], [0]>} : vector<4x1x5xf32>, vector<4x5x34xf32>, vector<4x1x34xf32> -> vector<4x1x34xf32>
    "tpu.trace_stop"() : () -> ()
    %515 = vector.shape_cast %514 : vector<4x1x34xf32> to vector<4x34xf32>
    %516 = tpu.concatenate %497, %515 in 1 : vector<4x18xf32>, vector<4x34xf32> -> vector<4x52xf32>
    %cst_140 = arith.constant dense<0.000000e+00> : vector<4x128xf32>
    %517 = tpu.matmul %516, %370, %cst_140 {dimension_numbers = #tpu.dot_dimension_numbers<[1], [0], [0], [1], [0, 0, 1, 1], [], []>} : vector<4x52xf32>, vector<52x128xf32>, vector<4x128xf32> -> vector<4x128xf32>
    %518 = vector.broadcast %372 : vector<1x128xf32> to vector<4x128xf32>
    %519 = arith.addf %517, %518 : vector<4x128xf32>
    %cst_141 = arith.constant dense<0.000000e+00> : vector<4x128xf32>
    %520 = tpu.matmul %488, %371, %cst_141 {dimension_numbers = #tpu.dot_dimension_numbers<[1], [0], [0], [1], [0, 0, 1, 1], [], []>} : vector<4x19xf32>, vector<19x128xf32>, vector<4x128xf32> -> vector<4x128xf32>
    %521 = vector.broadcast %373 : vector<1x128xf32> to vector<4x128xf32>
    %522 = arith.addf %520, %521 : vector<4x128xf32>
    %523 = vector.extract_strided_slice %519 {offsets = [0, 0], sizes = [4, 19], strides = [1, 1]} : vector<4x128xf32> to vector<4x19xf32>
    %524 = vector.extract_strided_slice %522 {offsets = [0, 0], sizes = [4, 19], strides = [1, 1]} : vector<4x128xf32> to vector<4x19xf32>
    %525 = arith.addf %523, %524 : vector<4x19xf32>
    %526 = arith.negf %525 : vector<4x19xf32>
    %527 = math.exp %526 : vector<4x19xf32>
    %cst_142 = arith.constant 1.000000e+00 : f32
    %528 = vector.broadcast %cst_142 : f32 to vector<4x19xf32>
    %529 = arith.addf %528, %527 : vector<4x19xf32>
    %530 = arith.divf %528, %529 : vector<4x19xf32>
    %531 = vector.extract_strided_slice %519 {offsets = [0, 19], sizes = [4, 19], strides = [1, 1]} : vector<4x128xf32> to vector<4x19xf32>
    %532 = vector.extract_strided_slice %522 {offsets = [0, 19], sizes = [4, 19], strides = [1, 1]} : vector<4x128xf32> to vector<4x19xf32>
    %533 = arith.addf %531, %532 : vector<4x19xf32>
    %534 = arith.negf %533 : vector<4x19xf32>
    %535 = math.exp %534 : vector<4x19xf32>
    %cst_143 = arith.constant 1.000000e+00 : f32
    %536 = vector.broadcast %cst_143 : f32 to vector<4x19xf32>
    %537 = arith.addf %536, %535 : vector<4x19xf32>
    %538 = arith.divf %536, %537 : vector<4x19xf32>
    %539 = vector.extract_strided_slice %519 {offsets = [0, 38], sizes = [4, 19], strides = [1, 1]} : vector<4x128xf32> to vector<4x19xf32>
    %540 = vector.extract_strided_slice %522 {offsets = [0, 38], sizes = [4, 19], strides = [1, 1]} : vector<4x128xf32> to vector<4x19xf32>
    %541 = arith.mulf %530, %540 : vector<4x19xf32>
    %542 = arith.addf %539, %541 : vector<4x19xf32>
    %543 = math.tanh %542 : vector<4x19xf32>
    %cst_144 = arith.constant 1.000000e+00 : f32
    %544 = vector.broadcast %cst_144 : f32 to vector<4x19xf32>
    %545 = arith.subf %544, %538 : vector<4x19xf32>
    %546 = arith.mulf %545, %543 : vector<4x19xf32>
    %547 = arith.mulf %538, %488 : vector<4x19xf32>
    %548 = arith.addf %546, %547 : vector<4x19xf32>
    %549 = tpu.concatenate %548, %515, %497 in 1 : vector<4x19xf32>, vector<4x34xf32>, vector<4x18xf32> -> vector<4x71xf32>
    %cst_145 = arith.constant dense<0.000000e+00> : vector<4x128xf32>
    %550 = tpu.matmul %549, %374, %cst_145 {dimension_numbers = #tpu.dot_dimension_numbers<[1], [0], [0], [1], [0, 0, 1, 1], [], []>} : vector<4x71xf32>, vector<71x128xf32>, vector<4x128xf32> -> vector<4x128xf32>
    %551 = vector.broadcast %375 : vector<1x128xf32> to vector<4x128xf32>
    %552 = arith.addf %550, %551 : vector<4x128xf32>
    %c2_146 = arith.constant 2 : index
    %c0_147 = arith.constant 0 : index
    %c0_148 = arith.constant 0 : index
    %553 = vector.load %arg3[%c2_146, %c0_147, %c0_148] : memref<6x4x128xf32, #tpu.memory_space<vmem>>, vector<1x4x128xf32>
    %554 = vector.shape_cast %553 : vector<1x4x128xf32> to vector<4x128xf32>
    %555 = vector.shape_cast %552 : vector<4x128xf32> to vector<1x4x128xf32>
    tpu.vector_store %arg3[%c2_146, %c0_147, %c0_148], %555 {strides = array<i32>} : memref<6x4x128xf32, #tpu.memory_space<vmem>>, vector<1x4x128xf32>,
    %c3_149 = arith.constant 3 : index
    %c0_150 = arith.constant 0 : index
    %c0_151 = arith.constant 0 : index
    %556 = vector.load %arg1[%c3_149, %c0_150, %c0_151] : memref<6x4x18xf32, #tpu.memory_space<vmem>>, vector<1x4x18xf32>
    %557 = vector.shape_cast %556 : vector<1x4x18xf32> to vector<4x18xf32>
    %cst_152 = arith.constant dense<0.000000e+00> : vector<4x128xf32>
    %558 = tpu.matmul %548, %369, %cst_152 {dimension_numbers = #tpu.dot_dimension_numbers<[1], [0], [0], [1], [0, 0, 1, 1], [], []>} : vector<4x19xf32>, vector<19x128xf32>, vector<4x128xf32> -> vector<4x128xf32>
    %559 = vector.extract_strided_slice %558 {offsets = [0, 0], sizes = [4, 34], strides = [1, 1]} : vector<4x128xf32> to vector<4x34xf32>
    %560 = vector.shape_cast %559 : vector<4x34xf32> to vector<4x1x34xf32>
    "tpu.trace_start"() <{level = 10 : i32, message = "bqd,bkd->bqk"}> : () -> ()
    %cst_153 = arith.constant dense<0.000000e+00> : vector<4x1x5xf32>
    %561 = tpu.matmul %560, %368, %cst_153 {dimension_numbers = #tpu.dot_dimension_numbers<[2], [2], [1], [1], [0, 0, 0, 1, 1, 1], [0], [0]>} : vector<4x1x34xf32>, vector<4x5x34xf32>, vector<4x1x5xf32> -> vector<4x1x5xf32>
    "tpu.trace_stop"() : () -> ()
    %cst_154 = arith.constant 0.171498582 : f32
    %562 = vector.broadcast %cst_154 : f32 to vector<4x1x5xf32>
    %563 = arith.mulf %561, %562 : vector<4x1x5xf32>
    %cst_155 = arith.constant dense<0xFF800000> : vector<4x1xf32>
    %564 = vector.multi_reduction <maximumf>, %563, %cst_155 [2] : vector<4x1x5xf32> to vector<4x1xf32>
    %565 = vector.shape_cast %564 : vector<4x1xf32> to vector<4x1x1xf32>
    %566 = vector.broadcast %565 : vector<4x1x1xf32> to vector<4x1x5xf32>
    %567 = arith.subf %563, %566 : vector<4x1x5xf32>
    %568 = math.exp %567 : vector<4x1x5xf32>
    %cst_156 = arith.constant dense<0.000000e+00> : vector<4x1xf32>
    %569 = vector.multi_reduction <add>, %568, %cst_156 [2] : vector<4x1x5xf32> to vector<4x1xf32>
    %570 = vector.shape_cast %569 : vector<4x1xf32> to vector<4x1x1xf32>
    %571 = tpu.reciprocal %570 {approx = true} : vector<4x1x1xf32> -> vector<4x1x1xf32>
    %572 = vector.broadcast %571 : vector<4x1x1xf32> to vector<4x1x5xf32>
    %573 = arith.mulf %568, %572 : vector<4x1x5xf32>
    "tpu.trace_start"() <{level = 10 : i32, message = "bqk,bkd->bqd"}> : () -> ()
    %cst_157 = arith.constant dense<0.000000e+00> : vector<4x1x34xf32>
    %574 = tpu.matmul %573, %368, %cst_157 {dimension_numbers = #tpu.dot_dimension_numbers<[2], [1], [1], [2], [0, 0, 0, 1, 1, 2], [0], [0]>} : vector<4x1x5xf32>, vector<4x5x34xf32>, vector<4x1x34xf32> -> vector<4x1x34xf32>
    "tpu.trace_stop"() : () -> ()
    %575 = vector.shape_cast %574 : vector<4x1x34xf32> to vector<4x34xf32>
    %576 = tpu.concatenate %557, %575 in 1 : vector<4x18xf32>, vector<4x34xf32> -> vector<4x52xf32>
    %cst_158 = arith.constant dense<0.000000e+00> : vector<4x128xf32>
    %577 = tpu.matmul %576, %370, %cst_158 {dimension_numbers = #tpu.dot_dimension_numbers<[1], [0], [0], [1], [0, 0, 1, 1], [], []>} : vector<4x52xf32>, vector<52x128xf32>, vector<4x128xf32> -> vector<4x128xf32>
    %578 = vector.broadcast %372 : vector<1x128xf32> to vector<4x128xf32>
    %579 = arith.addf %577, %578 : vector<4x128xf32>
    %cst_159 = arith.constant dense<0.000000e+00> : vector<4x128xf32>
    %580 = tpu.matmul %548, %371, %cst_159 {dimension_numbers = #tpu.dot_dimension_numbers<[1], [0], [0], [1], [0, 0, 1, 1], [], []>} : vector<4x19xf32>, vector<19x128xf32>, vector<4x128xf32> -> vector<4x128xf32>
    %581 = vector.broadcast %373 : vector<1x128xf32> to vector<4x128xf32>
    %582 = arith.addf %580, %581 : vector<4x128xf32>
    %583 = vector.extract_strided_slice %579 {offsets = [0, 0], sizes = [4, 19], strides = [1, 1]} : vector<4x128xf32> to vector<4x19xf32>
    %584 = vector.extract_strided_slice %582 {offsets = [0, 0], sizes = [4, 19], strides = [1, 1]} : vector<4x128xf32> to vector<4x19xf32>
    %585 = arith.addf %583, %584 : vector<4x19xf32>
    %586 = arith.negf %585 : vector<4x19xf32>
    %587 = math.exp %586 : vector<4x19xf32>
    %cst_160 = arith.constant 1.000000e+00 : f32
    %588 = vector.broadcast %cst_160 : f32 to vector<4x19xf32>
    %589 = arith.addf %588, %587 : vector<4x19xf32>
    %590 = arith.divf %588, %589 : vector<4x19xf32>
    %591 = vector.extract_strided_slice %579 {offsets = [0, 19], sizes = [4, 19], strides = [1, 1]} : vector<4x128xf32> to vector<4x19xf32>
    %592 = vector.extract_strided_slice %582 {offsets = [0, 19], sizes = [4, 19], strides = [1, 1]} : vector<4x128xf32> to vector<4x19xf32>
    %593 = arith.addf %591, %592 : vector<4x19xf32>
    %594 = arith.negf %593 : vector<4x19xf32>
    %595 = math.exp %594 : vector<4x19xf32>
    %cst_161 = arith.constant 1.000000e+00 : f32
    %596 = vector.broadcast %cst_161 : f32 to vector<4x19xf32>
    %597 = arith.addf %596, %595 : vector<4x19xf32>
    %598 = arith.divf %596, %597 : vector<4x19xf32>
    %599 = vector.extract_strided_slice %579 {offsets = [0, 38], sizes = [4, 19], strides = [1, 1]} : vector<4x128xf32> to vector<4x19xf32>
    %600 = vector.extract_strided_slice %582 {offsets = [0, 38], sizes = [4, 19], strides = [1, 1]} : vector<4x128xf32> to vector<4x19xf32>
    %601 = arith.mulf %590, %600 : vector<4x19xf32>
    %602 = arith.addf %599, %601 : vector<4x19xf32>
    %603 = math.tanh %602 : vector<4x19xf32>
    %cst_162 = arith.constant 1.000000e+00 : f32
    %604 = vector.broadcast %cst_162 : f32 to vector<4x19xf32>
    %605 = arith.subf %604, %598 : vector<4x19xf32>
    %606 = arith.mulf %605, %603 : vector<4x19xf32>
    %607 = arith.mulf %598, %548 : vector<4x19xf32>
    %608 = arith.addf %606, %607 : vector<4x19xf32>
    %609 = tpu.concatenate %608, %575, %557 in 1 : vector<4x19xf32>, vector<4x34xf32>, vector<4x18xf32> -> vector<4x71xf32>
    %cst_163 = arith.constant dense<0.000000e+00> : vector<4x128xf32>
    %610 = tpu.matmul %609, %374, %cst_163 {dimension_numbers = #tpu.dot_dimension_numbers<[1], [0], [0], [1], [0, 0, 1, 1], [], []>} : vector<4x71xf32>, vector<71x128xf32>, vector<4x128xf32> -> vector<4x128xf32>
    %611 = vector.broadcast %375 : vector<1x128xf32> to vector<4x128xf32>
    %612 = arith.addf %610, %611 : vector<4x128xf32>
    %c3_164 = arith.constant 3 : index
    %c0_165 = arith.constant 0 : index
    %c0_166 = arith.constant 0 : index
    %613 = vector.load %arg3[%c3_164, %c0_165, %c0_166] : memref<6x4x128xf32, #tpu.memory_space<vmem>>, vector<1x4x128xf32>
    %614 = vector.shape_cast %613 : vector<1x4x128xf32> to vector<4x128xf32>
    %615 = vector.shape_cast %612 : vector<4x128xf32> to vector<1x4x128xf32>
    tpu.vector_store %arg3[%c3_164, %c0_165, %c0_166], %615 {strides = array<i32>} : memref<6x4x128xf32, #tpu.memory_space<vmem>>, vector<1x4x128xf32>,
    %c4_167 = arith.constant 4 : index
    %c0_168 = arith.constant 0 : index
    %c0_169 = arith.constant 0 : index
    %616 = vector.load %arg1[%c4_167, %c0_168, %c0_169] : memref<6x4x18xf32, #tpu.memory_space<vmem>>, vector<1x4x18xf32>
    %617 = vector.shape_cast %616 : vector<1x4x18xf32> to vector<4x18xf32>
    %cst_170 = arith.constant dense<0.000000e+00> : vector<4x128xf32>
    %618 = tpu.matmul %608, %369, %cst_170 {dimension_numbers = #tpu.dot_dimension_numbers<[1], [0], [0], [1], [0, 0, 1, 1], [], []>} : vector<4x19xf32>, vector<19x128xf32>, vector<4x128xf32> -> vector<4x128xf32>
    %619 = vector.extract_strided_slice %618 {offsets = [0, 0], sizes = [4, 34], strides = [1, 1]} : vector<4x128xf32> to vector<4x34xf32>
    %620 = vector.shape_cast %619 : vector<4x34xf32> to vector<4x1x34xf32>
    "tpu.trace_start"() <{level = 10 : i32, message = "bqd,bkd->bqk"}> : () -> ()
    %cst_171 = arith.constant dense<0.000000e+00> : vector<4x1x5xf32>
    %621 = tpu.matmul %620, %368, %cst_171 {dimension_numbers = #tpu.dot_dimension_numbers<[2], [2], [1], [1], [0, 0, 0, 1, 1, 1], [0], [0]>} : vector<4x1x34xf32>, vector<4x5x34xf32>, vector<4x1x5xf32> -> vector<4x1x5xf32>
    "tpu.trace_stop"() : () -> ()
    %cst_172 = arith.constant 0.171498582 : f32
    %622 = vector.broadcast %cst_172 : f32 to vector<4x1x5xf32>
    %623 = arith.mulf %621, %622 : vector<4x1x5xf32>
    %cst_173 = arith.constant dense<0xFF800000> : vector<4x1xf32>
    %624 = vector.multi_reduction <maximumf>, %623, %cst_173 [2] : vector<4x1x5xf32> to vector<4x1xf32>
    %625 = vector.shape_cast %624 : vector<4x1xf32> to vector<4x1x1xf32>
    %626 = vector.broadcast %625 : vector<4x1x1xf32> to vector<4x1x5xf32>
    %627 = arith.subf %623, %626 : vector<4x1x5xf32>
    %628 = math.exp %627 : vector<4x1x5xf32>
    %cst_174 = arith.constant dense<0.000000e+00> : vector<4x1xf32>
    %629 = vector.multi_reduction <add>, %628, %cst_174 [2] : vector<4x1x5xf32> to vector<4x1xf32>
    %630 = vector.shape_cast %629 : vector<4x1xf32> to vector<4x1x1xf32>
    %631 = tpu.reciprocal %630 {approx = true} : vector<4x1x1xf32> -> vector<4x1x1xf32>
    %632 = vector.broadcast %631 : vector<4x1x1xf32> to vector<4x1x5xf32>
    %633 = arith.mulf %628, %632 : vector<4x1x5xf32>
    "tpu.trace_start"() <{level = 10 : i32, message = "bqk,bkd->bqd"}> : () -> ()
    %cst_175 = arith.constant dense<0.000000e+00> : vector<4x1x34xf32>
    %634 = tpu.matmul %633, %368, %cst_175 {dimension_numbers = #tpu.dot_dimension_numbers<[2], [1], [1], [2], [0, 0, 0, 1, 1, 2], [0], [0]>} : vector<4x1x5xf32>, vector<4x5x34xf32>, vector<4x1x34xf32> -> vector<4x1x34xf32>
    "tpu.trace_stop"() : () -> ()
    %635 = vector.shape_cast %634 : vector<4x1x34xf32> to vector<4x34xf32>
    %636 = tpu.concatenate %617, %635 in 1 : vector<4x18xf32>, vector<4x34xf32> -> vector<4x52xf32>
    %cst_176 = arith.constant dense<0.000000e+00> : vector<4x128xf32>
    %637 = tpu.matmul %636, %370, %cst_176 {dimension_numbers = #tpu.dot_dimension_numbers<[1], [0], [0], [1], [0, 0, 1, 1], [], []>} : vector<4x52xf32>, vector<52x128xf32>, vector<4x128xf32> -> vector<4x128xf32>
    %638 = vector.broadcast %372 : vector<1x128xf32> to vector<4x128xf32>
    %639 = arith.addf %637, %638 : vector<4x128xf32>
    %cst_177 = arith.constant dense<0.000000e+00> : vector<4x128xf32>
    %640 = tpu.matmul %608, %371, %cst_177 {dimension_numbers = #tpu.dot_dimension_numbers<[1], [0], [0], [1], [0, 0, 1, 1], [], []>} : vector<4x19xf32>, vector<19x128xf32>, vector<4x128xf32> -> vector<4x128xf32>
    %641 = vector.broadcast %373 : vector<1x128xf32> to vector<4x128xf32>
    %642 = arith.addf %640, %641 : vector<4x128xf32>
    %643 = vector.extract_strided_slice %639 {offsets = [0, 0], sizes = [4, 19], strides = [1, 1]} : vector<4x128xf32> to vector<4x19xf32>
    %644 = vector.extract_strided_slice %642 {offsets = [0, 0], sizes = [4, 19], strides = [1, 1]} : vector<4x128xf32> to vector<4x19xf32>
    %645 = arith.addf %643, %644 : vector<4x19xf32>
    %646 = arith.negf %645 : vector<4x19xf32>
    %647 = math.exp %646 : vector<4x19xf32>
    %cst_178 = arith.constant 1.000000e+00 : f32
    %648 = vector.broadcast %cst_178 : f32 to vector<4x19xf32>
    %649 = arith.addf %648, %647 : vector<4x19xf32>
    %650 = arith.divf %648, %649 : vector<4x19xf32>
    %651 = vector.extract_strided_slice %639 {offsets = [0, 19], sizes = [4, 19], strides = [1, 1]} : vector<4x128xf32> to vector<4x19xf32>
    %652 = vector.extract_strided_slice %642 {offsets = [0, 19], sizes = [4, 19], strides = [1, 1]} : vector<4x128xf32> to vector<4x19xf32>
    %653 = arith.addf %651, %652 : vector<4x19xf32>
    %654 = arith.negf %653 : vector<4x19xf32>
    %655 = math.exp %654 : vector<4x19xf32>
    %cst_179 = arith.constant 1.000000e+00 : f32
    %656 = vector.broadcast %cst_179 : f32 to vector<4x19xf32>
    %657 = arith.addf %656, %655 : vector<4x19xf32>
    %658 = arith.divf %656, %657 : vector<4x19xf32>
    %659 = vector.extract_strided_slice %639 {offsets = [0, 38], sizes = [4, 19], strides = [1, 1]} : vector<4x128xf32> to vector<4x19xf32>
    %660 = vector.extract_strided_slice %642 {offsets = [0, 38], sizes = [4, 19], strides = [1, 1]} : vector<4x128xf32> to vector<4x19xf32>
    %661 = arith.mulf %650, %660 : vector<4x19xf32>
    %662 = arith.addf %659, %661 : vector<4x19xf32>
    %663 = math.tanh %662 : vector<4x19xf32>
    %cst_180 = arith.constant 1.000000e+00 : f32
    %664 = vector.broadcast %cst_180 : f32 to vector<4x19xf32>
    %665 = arith.subf %664, %658 : vector<4x19xf32>
    %666 = arith.mulf %665, %663 : vector<4x19xf32>
    %667 = arith.mulf %658, %608 : vector<4x19xf32>
    %668 = arith.addf %666, %667 : vector<4x19xf32>
    %669 = tpu.concatenate %668, %635, %617 in 1 : vector<4x19xf32>, vector<4x34xf32>, vector<4x18xf32> -> vector<4x71xf32>
    %cst_181 = arith.constant dense<0.000000e+00> : vector<4x128xf32>
    %670 = tpu.matmul %669, %374, %cst_181 {dimension_numbers = #tpu.dot_dimension_numbers<[1], [0], [0], [1], [0, 0, 1, 1], [], []>} : vector<4x71xf32>, vector<71x128xf32>, vector<4x128xf32> -> vector<4x128xf32>
    %671 = vector.broadcast %375 : vector<1x128xf32> to vector<4x128xf32>
    %672 = arith.addf %670, %671 : vector<4x128xf32>
    %c4_182 = arith.constant 4 : index
    %c0_183 = arith.constant 0 : index
    %c0_184 = arith.constant 0 : index
    %673 = vector.load %arg3[%c4_182, %c0_183, %c0_184] : memref<6x4x128xf32, #tpu.memory_space<vmem>>, vector<1x4x128xf32>
    %674 = vector.shape_cast %673 : vector<1x4x128xf32> to vector<4x128xf32>
    %675 = vector.shape_cast %672 : vector<4x128xf32> to vector<1x4x128xf32>
    tpu.vector_store %arg3[%c4_182, %c0_183, %c0_184], %675 {strides = array<i32>} : memref<6x4x128xf32, #tpu.memory_space<vmem>>, vector<1x4x128xf32>,
    %c5 = arith.constant 5 : index
    %c0_185 = arith.constant 0 : index
    %c0_186 = arith.constant 0 : index
    %676 = vector.load %arg1[%c5, %c0_185, %c0_186] : memref<6x4x18xf32, #tpu.memory_space<vmem>>, vector<1x4x18xf32>
    %677 = vector.shape_cast %676 : vector<1x4x18xf32> to vector<4x18xf32>
    %cst_187 = arith.constant dense<0.000000e+00> : vector<4x128xf32>
    %678 = tpu.matmul %668, %369, %cst_187 {dimension_numbers = #tpu.dot_dimension_numbers<[1], [0], [0], [1], [0, 0, 1, 1], [], []>} : vector<4x19xf32>, vector<19x128xf32>, vector<4x128xf32> -> vector<4x128xf32>
    %679 = vector.extract_strided_slice %678 {offsets = [0, 0], sizes = [4, 34], strides = [1, 1]} : vector<4x128xf32> to vector<4x34xf32>
    %680 = vector.shape_cast %679 : vector<4x34xf32> to vector<4x1x34xf32>
    "tpu.trace_start"() <{level = 10 : i32, message = "bqd,bkd->bqk"}> : () -> ()
    %cst_188 = arith.constant dense<0.000000e+00> : vector<4x1x5xf32>
    %681 = tpu.matmul %680, %368, %cst_188 {dimension_numbers = #tpu.dot_dimension_numbers<[2], [2], [1], [1], [0, 0, 0, 1, 1, 1], [0], [0]>} : vector<4x1x34xf32>, vector<4x5x34xf32>, vector<4x1x5xf32> -> vector<4x1x5xf32>
    "tpu.trace_stop"() : () -> ()
    %cst_189 = arith.constant 0.171498582 : f32
    %682 = vector.broadcast %cst_189 : f32 to vector<4x1x5xf32>
    %683 = arith.mulf %681, %682 : vector<4x1x5xf32>
    %cst_190 = arith.constant dense<0xFF800000> : vector<4x1xf32>
    %684 = vector.multi_reduction <maximumf>, %683, %cst_190 [2] : vector<4x1x5xf32> to vector<4x1xf32>
    %685 = vector.shape_cast %684 : vector<4x1xf32> to vector<4x1x1xf32>
    %686 = vector.broadcast %685 : vector<4x1x1xf32> to vector<4x1x5xf32>
    %687 = arith.subf %683, %686 : vector<4x1x5xf32>
    %688 = math.exp %687 : vector<4x1x5xf32>
    %cst_191 = arith.constant dense<0.000000e+00> : vector<4x1xf32>
    %689 = vector.multi_reduction <add>, %688, %cst_191 [2] : vector<4x1x5xf32> to vector<4x1xf32>
    %690 = vector.shape_cast %689 : vector<4x1xf32> to vector<4x1x1xf32>
    %691 = tpu.reciprocal %690 {approx = true} : vector<4x1x1xf32> -> vector<4x1x1xf32>
    %692 = vector.broadcast %691 : vector<4x1x1xf32> to vector<4x1x5xf32>
    %693 = arith.mulf %688, %692 : vector<4x1x5xf32>
    "tpu.trace_start"() <{level = 10 : i32, message = "bqk,bkd->bqd"}> : () -> ()
    %cst_192 = arith.constant dense<0.000000e+00> : vector<4x1x34xf32>
    %694 = tpu.matmul %693, %368, %cst_192 {dimension_numbers = #tpu.dot_dimension_numbers<[2], [1], [1], [2], [0, 0, 0, 1, 1, 2], [0], [0]>} : vector<4x1x5xf32>, vector<4x5x34xf32>, vector<4x1x34xf32> -> vector<4x1x34xf32>
    "tpu.trace_stop"() : () -> ()
    %695 = vector.shape_cast %694 : vector<4x1x34xf32> to vector<4x34xf32>
    %696 = tpu.concatenate %677, %695 in 1 : vector<4x18xf32>, vector<4x34xf32> -> vector<4x52xf32>
    %cst_193 = arith.constant dense<0.000000e+00> : vector<4x128xf32>
    %697 = tpu.matmul %696, %370, %cst_193 {dimension_numbers = #tpu.dot_dimension_numbers<[1], [0], [0], [1], [0, 0, 1, 1], [], []>} : vector<4x52xf32>, vector<52x128xf32>, vector<4x128xf32> -> vector<4x128xf32>
    %698 = vector.broadcast %372 : vector<1x128xf32> to vector<4x128xf32>
    %699 = arith.addf %697, %698 : vector<4x128xf32>
    %cst_194 = arith.constant dense<0.000000e+00> : vector<4x128xf32>
    %700 = tpu.matmul %668, %371, %cst_194 {dimension_numbers = #tpu.dot_dimension_numbers<[1], [0], [0], [1], [0, 0, 1, 1], [], []>} : vector<4x19xf32>, vector<19x128xf32>, vector<4x128xf32> -> vector<4x128xf32>
    %701 = vector.broadcast %373 : vector<1x128xf32> to vector<4x128xf32>
    %702 = arith.addf %700, %701 : vector<4x128xf32>
    %703 = vector.extract_strided_slice %699 {offsets = [0, 0], sizes = [4, 19], strides = [1, 1]} : vector<4x128xf32> to vector<4x19xf32>
    %704 = vector.extract_strided_slice %702 {offsets = [0, 0], sizes = [4, 19], strides = [1, 1]} : vector<4x128xf32> to vector<4x19xf32>
    %705 = arith.addf %703, %704 : vector<4x19xf32>
    %706 = arith.negf %705 : vector<4x19xf32>
    %707 = math.exp %706 : vector<4x19xf32>
    %cst_195 = arith.constant 1.000000e+00 : f32
    %708 = vector.broadcast %cst_195 : f32 to vector<4x19xf32>
    %709 = arith.addf %708, %707 : vector<4x19xf32>
    %710 = arith.divf %708, %709 : vector<4x19xf32>
    %711 = vector.extract_strided_slice %699 {offsets = [0, 19], sizes = [4, 19], strides = [1, 1]} : vector<4x128xf32> to vector<4x19xf32>
    %712 = vector.extract_strided_slice %702 {offsets = [0, 19], sizes = [4, 19], strides = [1, 1]} : vector<4x128xf32> to vector<4x19xf32>
    %713 = arith.addf %711, %712 : vector<4x19xf32>
    %714 = arith.negf %713 : vector<4x19xf32>
    %715 = math.exp %714 : vector<4x19xf32>
    %cst_196 = arith.constant 1.000000e+00 : f32
    %716 = vector.broadcast %cst_196 : f32 to vector<4x19xf32>
    %717 = arith.addf %716, %715 : vector<4x19xf32>
    %718 = arith.divf %716, %717 : vector<4x19xf32>
    %719 = vector.extract_strided_slice %699 {offsets = [0, 38], sizes = [4, 19], strides = [1, 1]} : vector<4x128xf32> to vector<4x19xf32>
    %720 = vector.extract_strided_slice %702 {offsets = [0, 38], sizes = [4, 19], strides = [1, 1]} : vector<4x128xf32> to vector<4x19xf32>
    %721 = arith.mulf %710, %720 : vector<4x19xf32>
    %722 = arith.addf %719, %721 : vector<4x19xf32>
    %723 = math.tanh %722 : vector<4x19xf32>
    %cst_197 = arith.constant 1.000000e+00 : f32
    %724 = vector.broadcast %cst_197 : f32 to vector<4x19xf32>
    %725 = arith.subf %724, %718 : vector<4x19xf32>
    %726 = arith.mulf %725, %723 : vector<4x19xf32>
    %727 = arith.mulf %718, %668 : vector<4x19xf32>
    %728 = arith.addf %726, %727 : vector<4x19xf32>
    %729 = tpu.concatenate %728, %695, %677 in 1 : vector<4x19xf32>, vector<4x34xf32>, vector<4x18xf32> -> vector<4x71xf32>
    %cst_198 = arith.constant dense<0.000000e+00> : vector<4x128xf32>
    %730 = tpu.matmul %729, %374, %cst_198 {dimension_numbers = #tpu.dot_dimension_numbers<[1], [0], [0], [1], [0, 0, 1, 1], [], []>} : vector<4x71xf32>, vector<71x128xf32>, vector<4x128xf32> -> vector<4x128xf32>
    %731 = vector.broadcast %375 : vector<1x128xf32> to vector<4x128xf32>
    %732 = arith.addf %730, %731 : vector<4x128xf32>
    %c5_199 = arith.constant 5 : index
    %c0_200 = arith.constant 0 : index
    %c0_201 = arith.constant 0 : index
    %733 = vector.load %arg3[%c5_199, %c0_200, %c0_201] : memref<6x4x128xf32, #tpu.memory_space<vmem>>, vector<1x4x128xf32>
    %734 = vector.shape_cast %733 : vector<1x4x128xf32> to vector<4x128xf32>
    %735 = vector.shape_cast %732 : vector<4x128xf32> to vector<1x4x128xf32>
    tpu.vector_store %arg3[%c5_199, %c0_200, %c0_201], %735 {strides = array<i32>} : memref<6x4x128xf32, #tpu.memory_space<vmem>>, vector<1x4x128xf32>,
    return
  }
}

</mosaic_0001>

<bundles_post_ra>
// kernel: seq2seq_forward.1
= control target key start
LH: loop header
LB: loop body
LE: loop exit
PB: predicated region body
PF: predicated region fallthrough
CT: control target
= control target key end

     0   :  { %vm115_vm0 = vcmask 1040384   ;;  %v9705_v0 = vmov 0.0   ;;  %vm33_vm1 = vcmask 130048   ;;  %vm9706_vm2 = vmmov 0   ;;  %s9707_s11 = smov 94   ;;  %s9708_s18 = smov 34   ;;  %s11344_s2 = inlined_call_operand.vmem [shape: f32[360,128], index: 2, kind: input, shape index: {}]   ;;  %s11345_s0 = inlined_call_operand.vmem [shape: f32[5,4,16], index: 0, kind: input, shape index: {}]   ;;  %s11346_s1 = inlined_call_operand.vmem [shape: f32[6,4,18], index: 1, kind: input, shape index: {}]   ;;  %s11347_s3 = inlined_call_operand.vmem [shape: f32[6,4,128], index: 3, kind: output, shape index: {}]  }
   0x1   :  { %8732 = vmatprep.subr.mxu1 %v9705_v0  ;;  %v9741_v1 = vld [vmem:[%s11344_s2 + $0x20] sm:$0x1]  ;;  %8725 = vmatprep.subr.mxu0 %v9705_v0  ;;  %v9747_v2 = vld [vmem:[%s11344_s2 + $0x8] sm:$0xff]  ;;  %v9752_v3 = vld [vmem:[%s11344_s2 + $0x18] sm:$0xff]  ;;  %s9709_s19 = smov 111   ;;  %vm111_vm3 = vcmask 138240  }
   0x2   :  { %8733 = vmatpush3.msk.msra.mxu1 %vm115_vm0, %v9741_v1  ;;  %8726 = vmatpush3.msra.mxu0 %v9747_v2  ;;  %v9760_v4 = vld [vmem:[%s11344_s2] sm:$0xff]  ;;  %v9767_v5 = vld [vmem:[%s11344_s2 + $0x10] sm:$0xff]  ;;  %v9785_v7 = vld [vmem:[%s11344_s2 + $0x58] sm:$0x1]  ;;  %vm1799_vm4 = vcmask 1041408   ;;  %vm2100_vm5 = vcmask 1042432  }
   0x3   :  { %8734 = vmatprep.subr.mxu1 %v9705_v0  ;;  %8727 = vmatprep.subr.mxu0 %v9705_v0  ;;  %v9774_v6 = vld [vmem:[%s11345_s0] sm:$0xf]  ;;  %v9799_v9 = vld [vmem:[%s11344_s2 + $0x50] sm:$0xff]  ;;  %v9809_v10 = vld [vmem:[%s11344_s2 + $0x38] sm:$0xff]  ;;  %vm1795_vm6 = vcmask 277504   ;;  %vm2105_vm7 = vcmask 1043456  }
   0x4   :  { %8735 = vmatpush3.msra.mxu1 %v9752_v3  ;;  %8728 = vmatpush3.msra.mxu0 %v9760_v4  ;;  %v9793_v8 = vld [vmem:[%s11344_s2 + $0x40] sm:$0xff]  ;;  %v9815_v11 = vld [vmem:[%s11344_s2 + $0x48] sm:$0xff]  ;;  %v9823_v12 = vld [vmem:[%s11345_s0 + $0x10] sm:$0xf]  ;;  %vm2136_vm8 = vcmask 154624   ;;  %vm2591_vm9 = vcmask 1044480  }
   0x5   :  { %8736 = vmatprep.subr.mxu1 %v9705_v0  ;;  %8729 = vmatprep.mubr.msk.f32.mxu0 %vm9706_vm2, %v9705_v0  ;;  %v9853_v13 = vld [vmem:[%s11344_s2 + $0x30] ss:$0 sm:$0xff]  ;;  %v9860_v19 = vld [vmem:[%s11344_s2 + $0x68] ss:$0 sm:$0xff]  ;;  %v9873_v27 = vld [vmem:[%s11344_s2 + $0x60] ss:$0 sm:$0xff] }
   0x6   :  { %8737 = vmatpush3.msra.mxu1 %v9767_v5  ;;  %8738 = vmatprep.mubr.msk.f32.mxu1 %vm9706_vm2, %v9705_v0  ;;  %v9867_v25 = vld [vmem:[%s11344_s2 + $0x28] ss:$0 sm:$0xff]  ;;  %v9883_v49 = vld [vmem:[%s11345_s0 + $0x4] sm:$0xf]  ;;  %v9911_v61 = vld [vmem:[%s11345_s0 + $0xc] sm:$0xf] }
   0x7   :  { %8730 = vmatmul.mubr.msk.f32.vlgmr.msra.gmra.mxu0 %vm33_vm1, %v9774_v6  ;;  %8739 = vmatmul.mubr.f32.vlgmr.msra.gmra.mxu1 %v9705_v0  ;;  %vm2542_vm10 = vcmask 32768   ;;  %vm2587_vm11 = vcmask 39936   ;;  %vm2894_vm12 = vcmask 1041409   ;;  %vm2897_vm13 = vcmask 1042434   ;;  %s9711_s10 = smov 18   ;;  %s9713_s16 = smov 38  }
   0x8   :  { %8748 = vmatprep.subr.mxu1 %v9705_v0  ;;  %8754 = vmatprep.mubr.msk.f32.mxu1 %vm9706_vm2, %v9705_v0  ;;  %vm2900_vm14 = vcmask 1043459   ;;  %vm2905_vm15 = vcmask 146432   ;;  %s9714_s17 = smov 19   ;;  %s9716_s9 = smov 53  }
   0x9   :  { %8749 = vmatpush3.msk.msra.mxu1 %vm115_vm0, %v9785_v7  ;;  %8741 = vmatprep.subr.mxu0 %v9705_v0 }
   0xa   :  { %8750 = vmatprep.subr.mxu1 %v9705_v0  ;;  %8742 = vmatpush3.msra.mxu0 %v9793_v8 }
   0xb   :  { %8751 = vmatpush3.msra.mxu1 %v9799_v9  ;;  %8743 = vmatprep.subr.mxu0 %v9705_v0 }
   0xc   :  { %8752 = vmatprep.subr.mxu1 %v9705_v0  ;;  %8744 = vmatpush3.msra.mxu0 %v9809_v10 }
   0xd   :  { %8753 = vmatpush3.msra.mxu1 %v9815_v11  ;;  %8745 = vmatprep.mubr.msk.f32.mxu0 %vm9706_vm2, %v9705_v0 }
   0xe   :  { %8755 = vmatmul.mubr.f32.vlgmr.msra.gmra.mxu1 %v9705_v0  ;;  %8746 = vmatmul.mubr.msk.f32.vlgmr.msra.gmra.mxu0 %vm33_vm1, %v9823_v12 }
   0xf   :  { %8764 = vmatprep.subr.mxu1 %v9705_v0  ;;  %8757 = vmatprep.subr.mxu0 %v9705_v0 }
  0x10   :  { %8765 = vmatpush3.msk.msra.mxu1 %vm115_vm0, %v9741_v1  ;;  %8758 = vmatpush3.msra.mxu0 %v9747_v2 }
  0x11   :  { %8766 = vmatprep.subr.mxu1 %v9705_v0  ;;  %8759 = vmatprep.subr.mxu0 %v9705_v0 }
  0x12   :  { %8767 = vmatpush3.msra.mxu1 %v9752_v3  ;;  %8760 = vmatpush3.msra.mxu0 %v9760_v4 }
  0x13   :  { %8768 = vmatprep.subr.mxu1 %v9705_v0  ;;  %8761 = vmatprep.mubr.msk.f32.mxu0 %vm9706_vm2, %v9705_v0 }
  0x14   :  { %8769 = vmatpush3.msra.mxu1 %v9767_v5  ;;  %8770 = vmatprep.mubr.msk.f32.mxu1 %vm9706_vm2, %v9705_v0 }
  0x15   :  { %8773 = vmatprep.subr.mxu1 %v9705_v0  ;;  %8789 = vmatprep.subr.mxu0 %v9705_v0 }
  0x16   :  { %8762 = vmatmul.mubr.msk.f32.vlgmr.msra.gmra.mxu0 %vm33_vm1, %v9883_v49 }
  0x17   :  { %8790 = vmatpush3.msra.mxu0 %v9747_v2  ;;  %8793 = vmatprep.mubr.msk.f32.mxu0 %vm9706_vm2, %v9705_v0 }
  0x18   :  { %8791 = vmatprep.subr.mxu0 %v9705_v0 }
  0x19   :  { %8792 = vmatpush3.msra.mxu0 %v9760_v4 }
  0x1a   :  { %8796 = vmatprep.subr.mxu0 %v9705_v0 }
  0xc7   :  { %v103_v14 = vpop.f32.mrf.mxu0  ;;  %v185_v15 = vpop.f32.mrf.mxu1 }
  0xc8   :  { %v186_v16 = vadd.f32 %v9853_v13, %v185_v15  ;;  %v104_v26 = vadd.f32 %v9867_v25, %v103_v14 }
  0xc9   :  { %v8740_v17 = vpop.f32.mrf.mxu1  ;;  %v8731_v18 = vpop.f32.mrf.mxu0 }
  0xca   :  { %197 = vrot.lane.b32.xlu0 %v186_v16, %s9707_s11  ;;  %v189_v28 = vadd.f32 %v186_v16, %v104_v26 }
  0xcc   :  { %v8189_v30 = vmul.f32 -1.442695, %v189_v28 }
  0xce   :  { %v367_v20 = vpop.f32.mrf.mxu1  ;;  %v290_v21 = vpop.f32.mrf.mxu0  ;;  %9486 = vpow2.f32 %v8189_v30 }
  0xcf   :  { %v368_v22 = vadd.f32 %v9860_v19, %v367_v20  ;;  %v291_v29 = vadd.f32 %v9873_v27, %v290_v21 }
  0xd0   :  { %v8756_v23 = vpop.f32.mrf.mxu1  ;;  %v8747_v24 = vpop.f32.mrf.mxu0 }
  0xd1   :  { %379 = vrot.lane.b32.xlu0 %v368_v22, %s9707_s11  ;;  %v371_v31 = vadd.f32 %v368_v22, %v291_v29 }
  0xd3   :  { %v8195_v32 = vmul.f32 -1.442695, %v371_v31 }
  0xd5   :  { %9488 = vpow2.f32 %v8195_v32 }
  0xd6   :  { %v468_v63 = vpop.f32.mrf.mxu0 }
  0xd7   :  { %v469_v24 = vadd.f32 %v9867_v25, %v468_v63 }
  0xd8   :  { %v8763_v14 = vpop.f32.mrf.mxu0 }
  0xdb   :  { %v9487_v33 = vpop.eup %9486 }
  0xdc   :  { %v193_v34 = vadd.f32 1.0, %v9487_v33 }
  0xde   :  { %9490 = vrcp.f32 %v193_v34 }
  0xe2   :  { %v9489_v35 = vpop.eup %9488 }
  0xe3   :  { %v375_v36 = vadd.f32 1.0, %v9489_v35 }
  0xe5   :  { %9492 = vrcp.f32 %v375_v36 }
  0xeb   :  { %v9491_v37 = vpop.eup %9490 }
  0xec   :  { %v207_v50 = vsub.f32 1.0, %v9491_v37  ;;  %v213_v52 = vmul.f32 0.0, %v9491_v37 }
  0xf2   :  { %v9493_v40 = vpop.eup %9492 }
  0xf3   :  { %v389_v55 = vsub.f32 1.0, %v9493_v40  ;;  %v395_v57 = vmul.f32 0.0, %v9493_v40 }
 0x13c   :  { %v198_v38 = vpop.permute.xlu0 %197 }
 0x13d   :  { %v200_v39 = vmul.f32 %v9491_v37, %v198_v38 }
 0x13f   :  { %202 = vrot.lane.b32.xlu1 %v200_v39, %s9708_s18 }
 0x143   :  { %v380_v41 = vpop.permute.xlu0 %379 }
 0x144   :  { %v382_v42 = vmul.f32 %v9493_v40, %v380_v41 }
 0x146   :  { %384 = vrot.lane.b32.xlu1 %v382_v42, %s9708_s18 }
 0x1b1   :  { %v203_v43 = vpop.permute.xlu1 %202 }
 0x1b2   :  { %v205_v44 = vadd.f32 %v203_v43, %v104_v26 }
 0x1b4   :  { %9494 = vtanh.f32 %v205_v44 }
 0x1b8   :  { %v385_v45 = vpop.permute.xlu1 %384 }
 0x1b9   :  { %v387_v46 = vadd.f32 %v385_v45, %v291_v29 }
 0x1bb   :  { %9496 = vtanh.f32 %v387_v46 }
 0x1c1   :  { %v9495_v47 = vpop.eup %9494 }
 0x1c2   :  { %209 = vrot.lane.b32.xlu0 %v9495_v47, %s9709_s19  ;;  %v8206_v47 = vld [vmem:[%s11345_s0 + $0x8] sm:$0xf]  ;;  %s9715_s0 = smov 109  }
 0x1c3   :  { %8794 = vmatmul.mubr.msk.f32.vlgmr.msra.gmra.mxu0 %vm33_vm1, %v8206_v47 }
 0x1c4   :  { %8797 = vmatpush3.msk.msra.mxu0 %vm115_vm0, %v9741_v1  ;;  %8802 = vmatprep.mubr.msk.f32.mxu0 %vm9706_vm2, %v9705_v0 }
 0x1c5   :  { %8798 = vmatprep.subr.mxu0 %v9705_v0 }
 0x1c6   :  { %8799 = vmatpush3.msra.mxu0 %v9752_v3 }
 0x1c7   :  { %8800 = vmatprep.subr.mxu0 %v9705_v0 }
 0x1c8   :  { %v9497_v48 = vpop.eup %9496  ;;  %8801 = vmatpush3.msra.mxu0 %v9767_v5 }
 0x1c9   :  { %391 = vrot.lane.b32.xlu1 %v9497_v48, %s9709_s19  ;;  %8821 = vmatprep.subr.mxu0 %v9705_v0 }
 0x234   :  { %v210_v51 = vpop.permute.xlu0 %209 }
 0x235   :  { %v212_v53 = vmul.f32 %v210_v51, %v207_v50 }
 0x237   :  { %v9893_v54 = vadd.f32 %v213_v52, %v212_v53 }
 0x239   :  { %473 = vrot.lane.b32.xlu0 %v9893_v54, %s9709_s19 }
 0x23b   :  { %v392_v56 = vpop.permute.xlu1 %391 }
 0x23c   :  { %v394_v58 = vmul.f32 %v392_v56, %v389_v55 }
 0x23e   :  { %v9897_v59 = vadd.f32 %v395_v57, %v394_v58 }
 0x240   :  { %649 = vrot.lane.b32.xlu1 %v9897_v59, %s9709_s19 }
 0x283   :  { %v820_v14 = vpop.f32.mrf.mxu0 }
 0x2ab   :  { %v9901_v60 = vpop.permute.xlu0 %473 }
 0x2ac   :  { %8771 = vmatmul.mubr.msk.f32.vlgmr.msra.gmra.mxu1 %vm111_vm3, %v9901_v60 }
 0x2ad   :  { %8774 = vmatpush3.msra.mxu1 %v9793_v8  ;;  %8777 = vmatprep.mubr.msk.f32.mxu1 %vm9706_vm2, %v9705_v0 }
 0x2ae   :  { %8775 = vmatprep.subr.mxu1 %v9705_v0 }
 0x2af   :  { %8776 = vmatpush3.msra.mxu1 %v9809_v10 }
 0x2b0   :  { %8780 = vmatprep.subr.mxu1 %v9705_v0  ;;  %8778 = vmatmul.mubr.msk.f32.vlgmr.msra.gmra.mxu1 %vm33_vm1, %v9911_v61 }
 0x2b1   :  { %8781 = vmatpush3.msk.msra.mxu1 %vm115_vm0, %v9785_v7  ;;  %8786 = vmatprep.mubr.msk.f32.mxu1 %vm9706_vm2, %v9705_v0 }
 0x2b2   :  { %8782 = vmatprep.subr.mxu1 %v9705_v0  ;;  %v650_v62 = vpop.permute.xlu1 %649 }
 0x2b3   :  { %8783 = vmatpush3.msra.mxu1 %v9799_v9 }
 0x2b4   :  { %8784 = vmatprep.subr.mxu1 %v9705_v0 }
 0x2b5   :  { %8785 = vmatpush3.msra.mxu1 %v9815_v11 }
 0x2b6   :  { %8787 = vmatmul.mubr.msk.f32.vlgmr.msra.gmra.mxu1 %vm111_vm3, %v650_v62  ;;  %8805 = vmatprep.subr.mxu1 %v9705_v0 }
 0x2b7   :  { %8806 = vmatpush3.msra.mxu1 %v9793_v8  ;;  %8809 = vmatprep.mubr.msk.f32.mxu1 %vm9706_vm2, %v9705_v0 }
 0x2b8   :  { %8807 = vmatprep.subr.mxu1 %v9705_v0 }
 0x2b9   :  { %8808 = vmatpush3.msra.mxu1 %v9809_v10 }
 0x2ba   :  { %8812 = vmatprep.subr.mxu1 %v9705_v0  ;;  %8810 = vmatmul.mubr.msk.f32.vlgmr.msra.gmra.mxu1 %vm33_vm1, %v8206_v47 }
 0x2bb   :  { %8813 = vmatpush3.msk.msra.mxu1 %vm115_vm0, %v9785_v7  ;;  %8818 = vmatprep.mubr.msk.f32.mxu1 %vm9706_vm2, %v9705_v0 }
 0x2bc   :  { %8814 = vmatprep.subr.mxu1 %v9705_v0 }
 0x2bd   :  { %8815 = vmatpush3.msra.mxu1 %v9799_v9 }
 0x2be   :  { %8816 = vmatprep.subr.mxu1 %v9705_v0 }
 0x2bf   :  { %8817 = vmatpush3.msra.mxu1 %v9815_v11 }
 0x2c0   :  { %8837 = vmatprep.subr.mxu1 %v9705_v0 }
 0x36c   :  { %v543_v15 = vpop.f32.mrf.mxu1 }
 0x36d   :  { %v544_v16 = vadd.f32 %v9853_v13, %v543_v15  ;;  %v8795_v15 = vpop.f32.mrf.mxu0 }
 0x36e   :  { %v8772_v17 = vpop.f32.mrf.mxu1 }
 0x36f   :  { %555 = vrot.lane.b32.xlu0 %v544_v16, %s9707_s11  ;;  %v547_v26 = vadd.f32 %v544_v16, %v469_v24 }
 0x370   :  { %v644_v18 = vpop.f32.mrf.mxu1 }
 0x371   :  { %v8200_v28 = vmul.f32 -1.442695, %v547_v26  ;;  %v645_v29 = vadd.f32 %v9873_v27, %v644_v18 }
 0x372   :  { %v8779_v20 = vpop.f32.mrf.mxu1 }
 0x373   :  { %9498 = vpow2.f32 %v8200_v28 }
 0x376   :  { %v719_v21 = vpop.f32.mrf.mxu1 }
 0x377   :  { %v720_v22 = vadd.f32 %v9860_v19, %v719_v21 }
 0x378   :  { %v8788_v23 = vpop.f32.mrf.mxu1 }
 0x379   :  { %731 = vrot.lane.b32.xlu1 %v720_v22, %s9707_s11  ;;  %v723_v30 = vadd.f32 %v720_v22, %v645_v29 }
 0x37b   :  { %v8205_v31 = vmul.f32 -1.442695, %v723_v30 }
 0x37d   :  { %9500 = vpow2.f32 %v8205_v31 }
 0x380   :  { %v9499_v32 = vpop.eup %9498 }
 0x381   :  { %v551_v33 = vadd.f32 1.0, %v9499_v32 }
 0x383   :  { %9502 = vrcp.f32 %v551_v33 }
 0x38a   :  { %v9501_v34 = vpop.eup %9500 }
 0x38b   :  { %v727_v35 = vadd.f32 1.0, %v9501_v34 }
 0x38d   :  { %9504 = vrcp.f32 %v727_v35 }
 0x390   :  { %v9503_v36 = vpop.eup %9502 }
 0x391   :  { %v565_v50 = vsub.f32 1.0, %v9503_v36  ;;  %v571_v52 = vmul.f32 %v9503_v36, %v9893_v54 }
 0x39a   :  { %v9505_v39 = vpop.eup %9504 }
 0x39b   :  { %v741_v56 = vsub.f32 1.0, %v9505_v39  ;;  %v747_v58 = vmul.f32 %v9505_v39, %v9897_v59 }
 0x3e1   :  { %v556_v37 = vpop.permute.xlu0 %555 }
 0x3e2   :  { %v558_v38 = vmul.f32 %v9503_v36, %v556_v37 }
 0x3e4   :  { %560 = vrot.lane.b32.xlu0 %v558_v38, %s9708_s18 }
 0x3eb   :  { %v732_v40 = vpop.permute.xlu1 %731 }
 0x3ec   :  { %v734_v41 = vmul.f32 %v9505_v39, %v732_v40 }
 0x3ee   :  { %736 = vrot.lane.b32.xlu1 %v734_v41, %s9708_s18 }
 0x456   :  { %v561_v42 = vpop.permute.xlu0 %560 }
 0x457   :  { %v563_v43 = vadd.f32 %v561_v42, %v469_v24  ;;  %v821_v24 = vadd.f32 %v9867_v25, %v820_v14 }
 0x459   :  { %9506 = vtanh.f32 %v563_v43 }
 0x460   :  { %v737_v44 = vpop.permute.xlu1 %736 }
 0x461   :  { %v739_v45 = vadd.f32 %v737_v44, %v645_v29 }
 0x463   :  { %9508 = vtanh.f32 %v739_v45 }
 0x466   :  { %v9507_v46 = vpop.eup %9506 }
 0x467   :  { %567 = vrot.lane.b32.xlu0 %v9507_v46, %s9709_s19 }
 0x470   :  { %v9509_v48 = vpop.eup %9508 }
 0x471   :  { %743 = vrot.lane.b32.xlu1 %v9509_v48, %s9709_s19 }
 0x4d9   :  { %v568_v51 = vpop.permute.xlu0 %567 }
 0x4da   :  { %v570_v53 = vmul.f32 %v568_v51, %v565_v50 }
 0x4dc   :  { %v9968_v55 = vadd.f32 %v571_v52, %v570_v53 }
 0x4de   :  { %825 = vrot.lane.b32.xlu0 %v9968_v55, %s9709_s19 }
 0x4e3   :  { %v744_v57 = vpop.permute.xlu1 %743 }
 0x4e4   :  { %v746_v62 = vmul.f32 %v744_v57, %v741_v56 }
 0x4e6   :  { %v9973_v63 = vadd.f32 %v747_v58, %v746_v62 }
 0x4e8   :  { %996 = vrot.lane.b32.xlu1 %v9973_v63, %s9709_s19 }
 0x550   :  { %v9977_v16 = vpop.permute.xlu0 %825 }
 0x551   :  { %8803 = vmatmul.mubr.msk.f32.vlgmr.msra.gmra.mxu0 %vm111_vm3, %v9977_v16 }
 0x552   :  { %8822 = vmatpush3.msra.mxu0 %v9747_v2  ;;  %8825 = vmatprep.mubr.msk.f32.mxu0 %vm9706_vm2, %v9705_v0 }
 0x553   :  { %8823 = vmatprep.subr.mxu0 %v9705_v0 }
 0x554   :  { %8824 = vmatpush3.msra.mxu0 %v9760_v4 }
 0x555   :  { %8826 = vmatmul.mubr.msk.f32.vlgmr.msra.gmra.mxu0 %vm33_vm1, %v9911_v61  ;;  %8828 = vmatprep.subr.mxu0 %v9705_v0  ;;  %v991_v61 = vpop.f32.mrf.mxu1 }
 0x556   :  { %8829 = vmatpush3.msk.msra.mxu0 %vm115_vm0, %v9741_v1  ;;  %8834 = vmatprep.mubr.msk.f32.mxu0 %vm9706_vm2, %v9705_v0  ;;  %v992_v29 = vadd.f32 %v9873_v27, %v991_v61 }
 0x557   :  { %8830 = vmatprep.subr.mxu0 %v9705_v0  ;;  %v8811_v17 = vpop.f32.mrf.mxu1 }
 0x558   :  { %8831 = vmatpush3.msra.mxu0 %v9752_v3 }
 0x559   :  { %8832 = vmatprep.subr.mxu0 %v9705_v0 }
 0x55a   :  { %v997_v54 = vpop.permute.xlu1 %996  ;;  %8833 = vmatpush3.msra.mxu0 %v9767_v5 }
 0x55b   :  { %8819 = vmatmul.mubr.msk.f32.vlgmr.msra.gmra.mxu1 %vm111_vm3, %v997_v54  ;;  %8853 = vmatprep.subr.mxu0 %v9705_v0 }
 0x55c   :  { %8838 = vmatpush3.msra.mxu1 %v9793_v8  ;;  %8841 = vmatprep.mubr.msk.f32.mxu1 %vm9706_vm2, %v9705_v0 }
 0x55d   :  { %8839 = vmatprep.subr.mxu1 %v9705_v0 }
 0x55e   :  { %8840 = vmatpush3.msra.mxu1 %v9809_v10 }
 0x55f   :  { %8844 = vmatprep.subr.mxu1 %v9705_v0  ;;  %8842 = vmatmul.mubr.msk.f32.vlgmr.msra.gmra.mxu1 %vm33_vm1, %v9883_v49 }
 0x560   :  { %8845 = vmatpush3.msk.msra.mxu1 %vm115_vm0, %v9785_v7  ;;  %8850 = vmatprep.mubr.msk.f32.mxu1 %vm9706_vm2, %v9705_v0 }
 0x561   :  { %8846 = vmatprep.subr.mxu1 %v9705_v0 }
 0x562   :  { %8847 = vmatpush3.msra.mxu1 %v9799_v9 }
 0x563   :  { %8848 = vmatprep.subr.mxu1 %v9705_v0 }
 0x564   :  { %8849 = vmatpush3.msra.mxu1 %v9815_v11 }
 0x565   :  { %8869 = vmatprep.subr.mxu1 %v9705_v0 }
 0x611   :  { %v895_v18 = vpop.f32.mrf.mxu0 }
 0x612   :  { %v896_v49 = vadd.f32 %v9853_v13, %v895_v18 }
 0x613   :  { %v8804_v20 = vpop.f32.mrf.mxu0 }
 0x614   :  { %907 = vrot.lane.b32.xlu0 %v896_v49, %s9707_s11  ;;  %v899_v26 = vadd.f32 %v896_v49, %v821_v24 }
 0x615   :  { %v1162_v53 = vpop.f32.mrf.mxu0 }
 0x616   :  { %v8210_v28 = vmul.f32 -1.442695, %v899_v26 }
 0x617   :  { %v8827_v57 = vpop.f32.mrf.mxu0 }
 0x618   :  { %9510 = vpow2.f32 %v8210_v28 }
 0x61b   :  { %v1066_v21 = vpop.f32.mrf.mxu1 }
 0x61c   :  { %v1067_v22 = vadd.f32 %v9860_v19, %v1066_v21 }
 0x61d   :  { %v8820_v23 = vpop.f32.mrf.mxu1 }
 0x61e   :  { %1078 = vrot.lane.b32.xlu1 %v1067_v22, %s9707_s11  ;;  %v1070_v30 = vadd.f32 %v1067_v22, %v992_v29 }
 0x620   :  { %v8214_v31 = vmul.f32 -1.442695, %v1070_v30 }
 0x622   :  { %9512 = vpow2.f32 %v8214_v31 }
 0x625   :  { %v9511_v32 = vpop.eup %9510 }
 0x626   :  { %v903_v33 = vadd.f32 1.0, %v9511_v32 }
 0x628   :  { %9514 = vrcp.f32 %v903_v33 }
 0x62f   :  { %v9513_v34 = vpop.eup %9512 }
 0x630   :  { %v1074_v35 = vadd.f32 1.0, %v9513_v34 }
 0x632   :  { %9516 = vrcp.f32 %v1074_v35 }
 0x635   :  { %v9515_v36 = vpop.eup %9514 }
 0x636   :  { %v917_v48 = vsub.f32 1.0, %v9515_v36  ;;  %v923_v51 = vmul.f32 %v9515_v36, %v9968_v55 }
 0x63f   :  { %v9517_v39 = vpop.eup %9516 }
 0x640   :  { %v1088_v58 = vsub.f32 1.0, %v9517_v39  ;;  %v1094_v14 = vmul.f32 %v9517_v39, %v9973_v63 }
 0x686   :  { %v908_v37 = vpop.permute.xlu0 %907 }
 0x687   :  { %v910_v38 = vmul.f32 %v9515_v36, %v908_v37 }
 0x689   :  { %912 = vrot.lane.b32.xlu0 %v910_v38, %s9708_s18 }
 0x690   :  { %v1079_v40 = vpop.permute.xlu1 %1078 }
 0x691   :  { %v1081_v41 = vmul.f32 %v9517_v39, %v1079_v40 }
 0x693   :  { %1083 = vrot.lane.b32.xlu1 %v1081_v41, %s9708_s18 }
 0x6fb   :  { %v913_v42 = vpop.permute.xlu0 %912 }
 0x6fc   :  { %v915_v43 = vadd.f32 %v913_v42, %v821_v24 }
 0x6fe   :  { %9518 = vtanh.f32 %v915_v43 }
 0x705   :  { %v1084_v44 = vpop.permute.xlu1 %1083 }
 0x706   :  { %v1086_v45 = vadd.f32 %v1084_v44, %v992_v29 }
 0x708   :  { %9520 = vtanh.f32 %v1086_v45 }
 0x70b   :  { %v9519_v46 = vpop.eup %9518 }
 0x70c   :  { %919 = vrot.lane.b32.xlu0 %v9519_v46, %s9709_s19 }
 0x715   :  { %v9521_v47 = vpop.eup %9520 }
 0x716   :  { %1090 = vrot.lane.b32.xlu1 %v9521_v47, %s9709_s19 }
 0x77e   :  { %v920_v50 = vpop.permute.xlu0 %919 }
 0x77f   :  { %v922_v52 = vmul.f32 %v920_v50, %v917_v48 }
 0x781   :  { %v10027_v56 = vadd.f32 %v923_v51, %v922_v52 }
 0x783   :  { %1167 = vrot.lane.b32.xlu0 %v10027_v56, %s9709_s19 }
 0x788   :  { %v1091_v62 = vpop.permute.xlu1 %1090 }
 0x789   :  { %v1093_v15 = vmul.f32 %v1091_v62, %v1088_v58 }
 0x78b   :  { %v10032_v54 = vadd.f32 %v1094_v14, %v1093_v15 }
 0x78d   :  { %1338 = vrot.lane.b32.xlu1 %v10032_v54, %s9709_s19 }
 0x7f5   :  { %v10036_v61 = vpop.permute.xlu0 %1167 }
 0x7f6   :  { %8835 = vmatmul.mubr.msk.f32.vlgmr.msra.gmra.mxu0 %vm111_vm3, %v10036_v61 }
 0x7f7   :  { %8854 = vmatpush3.msra.mxu0 %v9747_v2  ;;  %8857 = vmatprep.mubr.msk.f32.mxu0 %vm9706_vm2, %v9705_v0 }
 0x7f8   :  { %8855 = vmatprep.subr.mxu0 %v9705_v0 }
 0x7f9   :  { %8856 = vmatpush3.msra.mxu0 %v9760_v4 }
 0x7fa   :  { %8858 = vmatmul.mubr.msk.f32.vlgmr.msra.gmra.mxu0 %vm33_vm1, %v9823_v12  ;;  %8860 = vmatprep.subr.mxu0 %v9705_v0 }
 0x7fb   :  { %8861 = vmatpush3.msk.msra.mxu0 %vm115_vm0, %v9741_v1  ;;  %8866 = vmatprep.mubr.msk.f32.mxu0 %vm9706_vm2, %v9705_v0  ;;  %v1333_v1 = vpop.f32.mrf.mxu1 }
 0x7fc   :  { %8862 = vmatprep.subr.mxu0 %v9705_v0  ;;  %v1334_v55 = vadd.f32 %v9873_v27, %v1333_v1 }
 0x7fd   :  { %8863 = vmatpush3.msra.mxu0 %v9752_v3  ;;  %v8843_v3 = vpop.f32.mrf.mxu1 }
 0x7fe   :  { %8864 = vmatprep.subr.mxu0 %v9705_v0 }
 0x7ff   :  { %v1339_v2 = vpop.permute.xlu1 %1338  ;;  %8865 = vmatpush3.msra.mxu0 %v9767_v5 }
 0x800   :  { %8851 = vmatmul.mubr.msk.f32.vlgmr.msra.gmra.mxu1 %vm111_vm3, %v1339_v2  ;;  %8885 = vmatprep.subr.mxu0 %v9705_v0 }
 0x801   :  { %8870 = vmatpush3.msra.mxu1 %v9793_v8  ;;  %8873 = vmatprep.mubr.msk.f32.mxu1 %vm9706_vm2, %v9705_v0 }
 0x802   :  { %8871 = vmatprep.subr.mxu1 %v9705_v0 }
 0x803   :  { %8872 = vmatpush3.msra.mxu1 %v9809_v10 }
 0x804   :  { %8876 = vmatprep.subr.mxu1 %v9705_v0  ;;  %8874 = vmatmul.mubr.msk.f32.vlgmr.msra.gmra.mxu1 %vm33_vm1, %v9774_v6  ;;  %vm3116_vm1 = vcmask 1046528  }
 0x805   :  { %8877 = vmatpush3.msk.msra.mxu1 %vm115_vm0, %v9785_v7  ;;  %8882 = vmatprep.mubr.msk.f32.mxu1 %vm9706_vm2, %v9705_v0 }
 0x806   :  { %8878 = vmatprep.subr.mxu1 %v9705_v0 }
 0x807   :  { %8879 = vmatpush3.msra.mxu1 %v9799_v9  ;;  %v1163_v9 = vadd.f32 %v9867_v25, %v1162_v53 }
 0x808   :  { %8880 = vmatprep.subr.mxu1 %v9705_v0 }
 0x809   :  { %8881 = vmatpush3.msra.mxu1 %v9815_v11 }
 0x80a   :  { %8898 = vmatprep.subr.mxu1 %v9705_v0 }
 0x8b6   :  { %v1237_v4 = vpop.f32.mrf.mxu0 }
 0x8b7   :  { %v1238_v5 = vadd.f32 %v9853_v13, %v1237_v4 }
 0x8b8   :  { %v8836_v6 = vpop.f32.mrf.mxu0 }
 0x8b9   :  { %1249 = vrot.lane.b32.xlu0 %v1238_v5, %s9707_s11  ;;  %v1241_v12 = vadd.f32 %v1238_v5, %v1163_v9 }
 0x8ba   :  { %v1504_v41 = vpop.f32.mrf.mxu0 }
 0x8bb   :  { %v8218_v11 = vmul.f32 -1.442695, %v1241_v12  ;;  %v1505_v2 = vadd.f32 %v9867_v25, %v1504_v41  ;;  %v1879_v41 = vsel %vm111_vm3, %v10036_v61, %v10032_v54 }
 0x8bc   :  { %v8859_v43 = vpop.f32.mrf.mxu0 }
 0x8bd   :  { %9522 = vpow2.f32 %v8218_v11 }
 0x8c0   :  { %v1408_v7 = vpop.f32.mrf.mxu1 }
 0x8c1   :  { %v1409_v8 = vadd.f32 %v9860_v19, %v1408_v7 }
 0x8c2   :  { %v8852_v10 = vpop.f32.mrf.mxu1 }
 0x8c3   :  { %1420 = vrot.lane.b32.xlu1 %v1409_v8, %s9707_s11  ;;  %v1412_v17 = vadd.f32 %v1409_v8, %v1334_v55 }
 0x8c4   :  { %v1675_v52 = vpop.f32.mrf.mxu1 }
 0x8c5   :  { %v8222_v18 = vmul.f32 -1.442695, %v1412_v17  ;;  %v1676_v4 = vadd.f32 %v9873_v27, %v1675_v52 }
 0x8c6   :  { %v8875_v53 = vpop.f32.mrf.mxu1 }
 0x8c7   :  { %9524 = vpow2.f32 %v8222_v18 }
 0x8ca   :  { %v9523_v49 = vpop.eup %9522 }
 0x8cb   :  { %v1245_v20 = vadd.f32 1.0, %v9523_v49 }
 0x8cd   :  { %9526 = vrcp.f32 %v1245_v20 }
 0x8d4   :  { %v9525_v21 = vpop.eup %9524 }
 0x8d5   :  { %v1416_v22 = vadd.f32 1.0, %v9525_v21  ;;  %v1789_v21 = vld [vmem:[%s11344_s2 + $0x90] sm:$0x3] }
 0x8d7   :  { %9528 = vrcp.f32 %v1416_v22 }
 0x8da   :  { %v9527_v23 = vpop.eup %9526 }
 0x8db   :  { %v1259_v37 = vsub.f32 1.0, %v9527_v23  ;;  %v1265_v39 = vmul.f32 %v9527_v23, %v10027_v56 }
 0x8e4   :  { %v9529_v28 = vpop.eup %9528 }
 0x8e5   :  { %v1430_v44 = vsub.f32 1.0, %v9529_v28  ;;  %v1436_v46 = vmul.f32 %v9529_v28, %v10032_v54 }
 0x92b   :  { %v1250_v24 = vpop.permute.xlu0 %1249 }
 0x92c   :  { %v1252_v26 = vmul.f32 %v9527_v23, %v1250_v24  ;;  %v1788_v23 = vld [vmem:[%s11344_s2 + $0x88] sm:$0xff]  ;;  %v1787_v24 = vld [vmem:[%s11344_s2 + $0x80] sm:$0xff] }
 0x92e   :  { %1254 = vrot.lane.b32.xlu0 %v1252_v26, %s9708_s18  ;;  %v1786_v26 = vld [vmem:[%s11344_s2 + $0x78] sm:$0xff] }
 0x935   :  { %v1421_v29 = vpop.permute.xlu1 %1420 }
 0x936   :  { %v1423_v30 = vmul.f32 %v9529_v28, %v1421_v29  ;;  %v1785_v28 = vld [vmem:[%s11344_s2 + $0x70] sm:$0xff]  ;;  %v9710_v29 = vmov 1966171168  }
 0x938   :  { %1425 = vrot.lane.b32.xlu1 %v1423_v30, %s9708_s18  ;;  %v1885_v30 = vunpack.c.l.s4 %v9710_v29 }
 0x9a0   :  { %v1255_v31 = vpop.permute.xlu0 %1254 }
 0x9a1   :  { %v1257_v32 = vadd.f32 %v1255_v31, %v1163_v9  ;;  %v1887_v31 = vlaneseq }
 0x9a3   :  { %9530 = vtanh.f32 %v1257_v32  ;;  %v1886_v32 = vunpack.c.0.s8 %v1885_v30 }
 0x9aa   :  { %v1426_v33 = vpop.permute.xlu1 %1425 }
 0x9ab   :  { %v1428_v34 = vadd.f32 %v1426_v33, %v1334_v55  ;;  %v1888_v33 = vshrl.u32 %v1887_v31, 7 }
 0x9ad   :  { %9532 = vtanh.f32 %v1428_v34 }
 0x9b0   :  { %v9531_v35 = vpop.eup %9530 }
 0x9b1   :  { %1261 = vrot.lane.b32.xlu0 %v9531_v35, %s9709_s19 }
 0x9ba   :  { %v9533_v36 = vpop.eup %9532 }
 0x9bb   :  { %1432 = vrot.lane.b32.xlu1 %v9533_v36, %s9709_s19 }
 0xa23   :  { %v1262_v38 = vpop.permute.xlu0 %1261 }
 0xa24   :  { %v1264_v40 = vmul.f32 %v1262_v38, %v1259_v37 }
 0xa26   :  { %v10086_v42 = vadd.f32 %v1265_v39, %v1264_v40  ;;  %v10139_v39 = vsub.s32 %v1886_v32, %v1888_v33 }
 0xa28   :  { %1509 = vrot.lane.b32.xlu0 %v10086_v42, %s9709_s19 }
 0xa2d   :  { %v1433_v45 = vpop.permute.xlu1 %1432 }
 0xa2e   :  { %v1435_v47 = vmul.f32 %v1433_v45, %v1430_v44 }
 0xa30   :  { %v10091_v48 = vadd.f32 %v1436_v46, %v1435_v47 }
 0xa32   :  { %1680 = vrot.lane.b32.xlu1 %v10091_v48, %s9709_s19  ;;  %v1877_v38 = vsel %vm111_vm3, %v9977_v16, %v10091_v48 }
 0xa33   :  { %v1919_v43 = vrot.slane %v1877_v38, %v10139_v39 }
 0xa35   :  { %v1920_v16 = vcombine.high %v1919_v43, %v1919_v43  ;;  %v1927_v54 = vrot.slane %v1919_v43, %v10139_v39 }
 0xa9a   :  { %v10095_v50 = vpop.permute.xlu0 %1509 }
 0xa9b   :  { %8867 = vmatmul.mubr.msk.f32.vlgmr.msra.gmra.mxu0 %vm111_vm3, %v10095_v50  ;;  %v1881_v44 = vsel %vm111_vm3, %v10095_v50, %v9973_v63  ;;  %v1934_v63 = vrot.slane %v1920_v16, %v10139_v39 }
 0xa9c   :  { %8895 = vmatprep.mubr.msk.f32.mxu0 %vm9706_vm2, %v9705_v0  ;;  %8886 = vmatpush3.msk.msra.mxu0 %vm1799_vm4, %v1789_v21  ;;  %v1969_v45 = vrot.slane %v1881_v44, %v10139_v39 }
 0xa9d   :  { %8887 = vmatprep.subr.mxu0 %v9705_v0 }
 0xa9e   :  { %8888 = vmatpush3.msra.mxu0 %v1788_v23  ;;  %v1970_v61 = vcombine.high %v1969_v45, %v1969_v45 }
 0xa9f   :  { %8889 = vmatprep.subr.mxu0 %v9705_v0 }
 0xaa0   :  { %8890 = vmatpush3.msra.mxu0 %v1787_v24 }
 0xaa1   :  { %8891 = vmatprep.subr.mxu0 %v9705_v0 }
 0xaa2   :  { %8892 = vmatpush3.msra.mxu0 %v1786_v26 }
 0xaa3   :  { %8893 = vmatprep.subr.mxu0 %v9705_v0 }
 0xaa4   :  { %v1681_v51 = vpop.permute.xlu1 %1680  ;;  %8894 = vmatpush3.msra.mxu0 %v1785_v28 }
 0xaa5   :  { %8883 = vmatmul.mubr.msk.f32.vlgmr.msra.gmra.mxu1 %vm111_vm3, %v1681_v51  ;;  %8907 = vmatprep.subr.mxu0 %v9705_v0 }
 0xaa6   :  { %8904 = vmatprep.mubr.msk.f32.mxu1 %vm9706_vm2, %v9705_v0 }
 0xb5b   :  { %v1579_v56 = vpop.f32.mrf.mxu0 }
 0xb5c   :  { %v1580_v57 = vadd.f32 %v9853_v13, %v1579_v56 }
 0xb5d   :  { %v8868_v58 = vpop.f32.mrf.mxu0 }
 0xb5e   :  { %1591 = vrot.lane.b32.xlu0 %v1580_v57, %s9707_s11  ;;  %v1583_v1 = vadd.f32 %v1580_v57, %v1505_v2  ;;  %v1977_v57 = vrot.slane %v1969_v45, %v10139_v39 }
 0xb60   :  { %v8226_v3 = vmul.f32 -1.442695, %v1583_v1 }
 0xb62   :  { %9534 = vpow2.f32 %v8226_v3  ;;  %v1936_v3 = vcombine.high %v1934_v63, %v1934_v63 }
 0xb65   :  { %v1750_v62 = vpop.f32.mrf.mxu1 }
 0xb66   :  { %v1751_v14 = vadd.f32 %v9860_v19, %v1750_v62 }
 0xb67   :  { %v8884_v15 = vpop.f32.mrf.mxu1 }
 0xb68   :  { %1762 = vrot.lane.b32.xlu1 %v1751_v14, %s9707_s11  ;;  %v1754_v5 = vadd.f32 %v1751_v14, %v1676_v4  ;;  %v1935_v14 = vcombine.high %v1927_v54, %v1927_v54  ;;  %v1984_v15 = vrot.slane %v1970_v61, %v10139_v39  ;;  %v10202_v61 = vld [vmem:[%s11344_s2 + $0xb0] sm:$0x7]  ;;  %s9712_s11 = smov 90  }
 0xb69   :  { %8899 = vmatpush3.msk.msra.mxu1 %vm2100_vm5, %v10202_v61 }
 0xb6a   :  { %v8230_v6 = vmul.f32 -1.442695, %v1754_v5  ;;  %8900 = vmatprep.subr.mxu1 %v9705_v0 }
 0xb6c   :  { %9536 = vpow2.f32 %v8230_v6 }
 0xb6f   :  { %v9535_v13 = vpop.eup %9534 }
 0xb70   :  { %v1587_v7 = vadd.f32 1.0, %v9535_v13 }
 0xb72   :  { %9538 = vrcp.f32 %v1587_v7 }
 0xb79   :  { %v9537_v8 = vpop.eup %9536 }
 0xb7a   :  { %v1758_v10 = vadd.f32 1.0, %v9537_v8 }
 0xb7c   :  { %9540 = vrcp.f32 %v1758_v10  ;;  %v1986_v10 = vcombine.high %v1984_v15, %v1984_v15 }
 0xb7f   :  { %v9539_v19 = vpop.eup %9538 }
 0xb80   :  { %v1601_v34 = vsub.f32 1.0, %v9539_v19  ;;  %v1607_v36 = vmul.f32 %v9539_v19, %v10086_v42  ;;  %v1944_v42 = vrot.slane %v1879_v41, %v10139_v39 }
 0xb82   :  { %v1945_v51 = vcombine.high %v1944_v42, %v1944_v42  ;;  %v1952_v56 = vrot.slane %v1944_v42, %v10139_v39 }
 0xb84   :  { %v1959_v58 = vrot.slane %v1945_v51, %v10139_v39  ;;  %v1960_v1 = vcombine.high %v1952_v56, %v1952_v56 }
 0xb86   :  { %v1961_v13 = vcombine.high %v1959_v58, %v1959_v58 }
 0xb89   :  { %v9541_v25 = vpop.eup %9540 }
 0xb8a   :  { %v1772_v46 = vsub.f32 1.0, %v9541_v25  ;;  %v1778_v52 = vmul.f32 %v9541_v25, %v10091_v48 }
 0xbd0   :  { %v1592_v9 = vpop.permute.xlu0 %1591 }
 0xbd1   :  { %v1594_v12 = vmul.f32 %v9539_v19, %v1592_v9 }
 0xbd3   :  { %1596 = vrot.lane.b32.xlu0 %v1594_v12, %s9708_s18 }
 0xbda   :  { %v1763_v11 = vpop.permute.xlu1 %1762 }
 0xbdb   :  { %v1765_v55 = vmul.f32 %v9541_v25, %v1763_v11 }
 0xbdd   :  { %1767 = vrot.lane.b32.xlu1 %v1765_v55, %s9708_s18 }
 0xc45   :  { %v1597_v27 = vpop.permute.xlu0 %1596 }
 0xc46   :  { %v1599_v17 = vadd.f32 %v1597_v27, %v1505_v2  ;;  %v2014_v2 = vsub.s32 0, %v1888_v33 }
 0xc48   :  { %9542 = vtanh.f32 %v1599_v17  ;;  %v2019_v7 = vrot.slane %v1934_v63, %v2014_v2  ;;  %v2023_v8 = vrot.slane %v1935_v14, %v2014_v2  ;;  %v2043_v12 = vrot.slane %v1960_v1, %v2014_v2  ;;  %v10215_v63 = vld [vmem:[%s11344_s2 + $0xa0] sm:$0xff] }
 0xc49   :  { %v2027_v25 = vrot.slane %v1936_v3, %v2014_v2  ;;  %v2059_v11 = vrot.slane %v1984_v15, %v2014_v2  ;;  %v2015_v30 = vrot.slane %v1927_v54, %v2014_v2  ;;  %v2055_v41 = vrot.slane %v1977_v57, %v2014_v2 }
 0xc4f   :  { %v1768_v18 = vpop.permute.xlu1 %1767 }
 0xc50   :  { %v1770_v49 = vadd.f32 %v1768_v18, %v1676_v4  ;;  %v1985_v4 = vcombine.high %v1977_v57, %v1977_v57 }
 0xc52   :  { %9544 = vtanh.f32 %v1770_v49  ;;  %v2063_v55 = vrot.slane %v1985_v4, %v2014_v2  ;;  %v2047_v49 = vrot.slane %v1961_v13, %v2014_v2 }
 0xc55   :  { %v9543_v20 = vpop.eup %9542 }
 0xc56   :  { %1603 = vrot.lane.b32.xlu0 %v9543_v20, %s9709_s19 }
 0xc5f   :  { %v9545_v22 = vpop.eup %9544 }
 0xc60   :  { %1774 = vrot.lane.b32.xlu1 %v9545_v22, %s9709_s19  ;;  %v2067_v22 = vrot.slane %v1986_v10, %v2014_v2 }
 0xcc8   :  { %v1604_v35 = vpop.permute.xlu0 %1603 }
 0xcc9   :  { %v1606_v37 = vmul.f32 %v1604_v35, %v1601_v34  ;;  %v2035_v35 = vrot.slane %v1952_v56, %v2014_v2  ;;  %v10207_v56 = vld [vmem:[%s11344_s2 + $0xa8] sm:$0xff] }
 0xcca   :  { %8901 = vmatpush3.msra.mxu1 %v10207_v56 }
 0xccb   :  { %v1608_v40 = vadd.f32 %v1607_v36, %v1606_v37  ;;  %8902 = vmatprep.subr.mxu1 %v9705_v0 }
 0xccc   :  { %8903 = vmatpush3.msra.mxu1 %v10215_v63 }
 0xccd   :  { %1781 = vrot.lane.b32.xlu0 %v1608_v40, %s9709_s19  ;;  %8912 = vmatprep.subr.mxu1 %v9705_v0 }
 0xcd2   :  { %v1775_v47 = vpop.permute.xlu1 %1774 }
 0xcd3   :  { %v1777_v53 = vmul.f32 %v1775_v47, %v1772_v46 }
 0xcd5   :  { %v1779_v50 = vadd.f32 %v1778_v52, %v1777_v53 }
 0xcd7   :  { %v1875_v62 = vsel %vm111_vm3, %v9901_v60, %v1779_v50  ;;  %v2039_v60 = vrot.slane %v1959_v58, %v2014_v2 }
 0xcd8   :  { %v1890_v48 = vrot.slane %v1875_v62, %v10139_v39 }
 0xcda   :  { %v1891_v5 = vcombine.high %v1890_v48, %v1890_v48  ;;  %v1898_v6 = vrot.slane %v1890_v48, %v10139_v39 }
 0xcdc   :  { %v1905_v19 = vrot.slane %v1891_v5, %v10139_v39  ;;  %v1906_v9 = vcombine.high %v1898_v6, %v1898_v6  ;;  %v2092_v32 = vsel %vm115_vm0, %v1898_v6, %v2015_v30 }
 0xcdd   :  { %v2096_v37 = vsel %vm1799_vm4, %v2092_v32, %v2035_v35 }
 0xcde   :  { %v1907_v27 = vcombine.high %v1905_v19, %v1905_v19  ;;  %v2093_v17 = vsel %vm115_vm0, %v1905_v19, %v2019_v7  ;;  %v2094_v18 = vsel %vm115_vm0, %v1906_v9, %v2023_v8 }
 0xcdf   :  { %v2097_v20 = vsel %vm1799_vm4, %v2093_v17, %v2039_v60  ;;  %v2098_v21 = vsel %vm1799_vm4, %v2094_v18, %v2043_v12 }
 0xce0   :  { %v2095_v23 = vsel %vm115_vm0, %v1907_v27, %v2027_v25  ;;  %v2102_v24 = vsel %vm2100_vm5, %v2097_v20, %v2059_v11  ;;  %v2103_v26 = vsel %vm2100_vm5, %v2098_v21, %v2063_v55  ;;  %vm2911_vm0 = vcmask 424960  }
 0xce1   :  { %v2099_v28 = vsel %vm1799_vm4, %v2095_v23, %v2047_v49  ;;  %vm3112_vm4 = vcmask 580608  }
 0xce2   :  { %v2104_v29 = vsel %vm2100_vm5, %v2099_v28, %v2067_v22 }
 0xd3f   :  { %v1782_v31 = vpop.permute.xlu0 %1781 }
 0xd40   :  { %v1784_v33 = vsel %vm111_vm3, %v1782_v31, %v1779_v50  ;;  %v1882_v34 = vsel %vm111_vm3, %v1782_v31, %v9897_v59  ;;  %v2101_v59 = vsel %vm2100_vm5, %v2096_v37, %v2055_v41  ;;  %v8231_v50 = vld [vmem:[%s11344_s2 + $0x98] ss:$0 sm:$0xff]  ;;  %vm3106_vm3 = vcmask 433152  }
 0xd41   :  { %v1994_v36 = vrot.slane %v1882_v34, %v10139_v39  ;;  %8896 = vmatmul.mubr.msk.f32.vlgmr.msra.gmra.mxu0 %vm1795_vm6, %v1784_v33 }
 0xd42   :  { %8909 = vmatprep.mubr.msk.f32.mxu0 %vm9706_vm2, %v9705_v0 }
 0xd43   :  { %v1995_v38 = vcombine.high %v1994_v36, %v1994_v36  ;;  %v2002_v40 = vrot.slane %v1994_v36, %v10139_v39 }
 0xd45   :  { %v2009_v43 = vrot.slane %v1995_v38, %v10139_v39  ;;  %v2010_v44 = vcombine.high %v2002_v40, %v2002_v40  ;;  %v2075_v42 = vrot.slane %v2002_v40, %v2014_v2 }
 0xd47   :  { %v2011_v45 = vcombine.high %v2009_v43, %v2009_v43  ;;  %v2079_v16 = vrot.slane %v2009_v43, %v2014_v2  ;;  %v2083_v46 = vrot.slane %v2010_v44, %v2014_v2  ;;  %v10185_v47 = vsel %vm2105_vm7, %v2101_v59, %v2075_v42 }
 0xd48   :  { %8908 = vmatpush3.xpose.msk.msra.mxu0 %vm1795_vm6, %v10185_v47 }
 0xd49   :  { %v2087_v51 = vrot.slane %v2011_v45, %v2014_v2  ;;  %v10190_v52 = vsel %vm2105_vm7, %v2102_v24, %v2079_v16  ;;  %v10193_v53 = vsel %vm2105_vm7, %v2103_v26, %v2083_v46  ;;  %8917 = vmatprep.subr.mxu0 %v9705_v0 }
 0xd4b   :  { %v10197_v54 = vsel %vm2105_vm7, %v2104_v29, %v2087_v51 }
 0xe01   :  { %v1869_v57 = vpop.f32.mrf.mxu0 }
 0xe02   :  { %v1870_v58 = vadd.f32 %v8231_v50, %v1869_v57 }
 0xe03   :  { %v8897_v62 = vpop.f32.mrf.mxu0 }
 0xe04   :  { %9546 = vtanh.f32 %v1870_v58 }
 0xe11   :  { %v10224_v14 = vpop.eup %9546 }
 0xe12   :  { %8905 = vmatmul.mubr.msk.f32.vlgmr.msra.gmra.mxu1 %vm2136_vm8, %v10224_v14 }
 0xe13   :  { %8913 = vmatpush3.xpose.msk.msra.mxu1 %vm1795_vm6, %v10190_v52  ;;  %8914 = vmatprep.mubr.msk.f32.mxu1 %vm9706_vm2, %v9705_v0 }
 0xe14   :  { %8922 = vmatprep.subr.mxu1 %v9705_v0 }
 0xed2   :  { %v2209_v15 = vpop.f32.mrf.mxu1 }
 0xed3   :  { %v2220_v48 = vrot.slane %v2209_v15, %v10139_v39 }
 0xed4   :  { %v8906_v2 = vpop.f32.mrf.mxu1 }
 0xed5   :  { %v2221_v1 = vcombine.high %v2220_v48, %v2220_v48  ;;  %v2228_v3 = vrot.slane %v2220_v48, %v10139_v39  ;;  %v10283_v48 = vld [vmem:[%s11344_s2 + $0x100] sm:$0x7] }
 0xed7   :  { %v2235_v4 = vrot.slane %v2221_v1, %v10139_v39  ;;  %8910 = vmatmul.mubr.msk.f32.vlgmr.msra.gmra.mxu0 %vm1795_vm6, %v2228_v3  ;;  %v2236_v5 = vcombine.high %v2228_v3, %v2228_v3  ;;  %v10289_v1 = vld [vmem:[%s11344_s2 + $0xf8] sm:$0xff]  ;;  %v10298_v3 = vld [vmem:[%s11344_s2 + $0xf0] sm:$0xff] }
 0xed8   :  { %8918 = vmatpush3.xpose.msk.msra.mxu0 %vm1795_vm6, %v10193_v53  ;;  %8919 = vmatprep.mubr.msk.f32.mxu0 %vm9706_vm2, %v9705_v0 }
 0xed9   :  { %8915 = vmatmul.mubr.msk.f32.vlgmr.msra.gmra.mxu1 %vm1795_vm6, %v2235_v4  ;;  %8927 = vmatprep.subr.mxu0 %v9705_v0  ;;  %v2237_v6 = vcombine.high %v2235_v4, %v2235_v4  ;;  %v10315_v4 = vld [vmem:[%s11344_s2 + $0xe8] sm:$0xf] }
 0xeda   :  { %8923 = vmatpush3.xpose.msk.msra.mxu1 %vm1795_vm6, %v10197_v54  ;;  %8924 = vmatprep.mubr.msk.f32.mxu1 %vm9706_vm2, %v9705_v0 }
 0xedb   :  { %8920 = vmatmul.mubr.msk.f32.vlgmr.msra.gmra.mxu0 %vm1795_vm6, %v2236_v5  ;;  %8932 = vmatprep.subr.mxu1 %v9705_v0  ;;  %v10320_v5 = vld [vmem:[%s11344_s2 + $0xe0] sm:$0xff] }
 0xedc   :  { %8928 = vmatpush3.msk.msra.mxu0 %vm2591_vm9, %v10185_v47  ;;  %8929 = vmatprep.mubr.msk.f32.mxu0 %vm9706_vm2, %v9705_v0 }
 0xedd   :  { %8925 = vmatmul.mubr.msk.f32.vlgmr.msra.gmra.mxu1 %vm1795_vm6, %v2237_v6  ;;  %8937 = vmatprep.subr.mxu0 %v9705_v0  ;;  %v10328_v6 = vld [vmem:[%s11344_s2 + $0xd8] sm:$0xff] }
 0xede   :  { %8933 = vmatpush3.msk.msra.mxu1 %vm2591_vm9, %v10190_v52  ;;  %8934 = vmatprep.mubr.msk.f32.mxu1 %vm9706_vm2, %v9705_v0 }
 0xedf   :  { %8942 = vmatprep.subr.mxu1 %v9705_v0 }
 0xf97   :  { %v2309_v13 = vpop.f32.mrf.mxu0 }
 0xf98   :  { %v2538_v7 = vmul.f32 0.17149858, %v2309_v13  ;;  %v10335_v13 = vld [vmem:[%s11344_s2 + $0xd0] sm:$0xff] }
 0xf99   :  { %v8911_v8 = vpop.f32.mrf.mxu0  ;;  %v2384_v10 = vpop.f32.mrf.mxu1 }
 0xf9a   :  { %v2539_v19 = vmul.f32 0.17149858, %v2384_v10  ;;  %v2543_v9 = vsel %vm2542_vm10, %v2538_v7, -inf  ;;  %v10349_v8 = vld [vmem:[%s11344_s2 + $0xc0] sm:$0xff]  ;;  %v10358_v10 = vld [vmem:[%s11344_s2 + $0xb8] sm:$0xff] }
 0xf9b   :  { %v8916_v60 = vpop.f32.mrf.mxu1  ;;  %2544 = vmax.xlane.f32.xlu1 %v2543_v9  ;;  %v2459_v12 = vpop.f32.mrf.mxu0 }
 0xf9c   :  { %v2540_v25 = vmul.f32 0.17149858, %v2459_v12  ;;  %v2546_v11 = vsel %vm2542_vm10, %v2539_v19, -inf }
 0xf9d   :  { %2547 = vmax.xlane.f32.xlu0 %v2546_v11  ;;  %v8921_v55 = vpop.f32.mrf.mxu0  ;;  %v2534_v27 = vpop.f32.mrf.mxu1 }
 0xf9e   :  { %v2541_v17 = vmul.f32 0.17149858, %v2534_v27  ;;  %v2549_v20 = vsel %vm2542_vm10, %v2540_v25, -inf }
 0xf9f   :  { %v8926_v18 = vpop.f32.mrf.mxu1 }
 0xfa0   :  { %v2552_v49 = vsel %vm2542_vm10, %v2541_v17, -inf }
 0xfa1   :  { %2553 = vmax.xlane.f32.xlu1 %v2552_v49  ;;  %2550 = vmax.xlane.f32.xlu0 %v2549_v20 }
0x1024   :  { %v2545_v21 = vpop.xlane.xlu1 %2544 }
0x1025   :  { %v2555_v22 = vsub.f32 %v2538_v7, %v2545_v21  ;;  %v10342_v7 = vld [vmem:[%s11344_s2 + $0xc8] sm:$0xff]  ;;  %v10366_v21 = vld [vmem:[%s11344_s2 + $0x110] ss:$0 sm:$0xff] }
0x1026   :  { %v2548_v23 = vpop.xlane.xlu0 %2547 }
0x1027   :  { %v2559_v24 = vmul.f32 1.442695, %v2555_v22  ;;  %v2556_v26 = vsub.f32 %v2539_v19, %v2548_v23 }
0x1029   :  { %9548 = vpow2.f32 %v2559_v24  ;;  %v2561_v28 = vmul.f32 1.442695, %v2556_v26 }
0x102a   :  { %v2554_v29 = vpop.xlane.xlu1 %2553  ;;  %v2551_v30 = vpop.xlane.xlu0 %2550 }
0x102b   :  { %9550 = vpow2.f32 %v2561_v28  ;;  %v2558_v31 = vsub.f32 %v2541_v17, %v2554_v29  ;;  %v2557_v32 = vsub.f32 %v2540_v25, %v2551_v30  ;;  %v10376_v29 = vld [vmem:[%s11346_s1] sm:$0xf] }
0x102d   :  { %v2565_v33 = vmul.f32 1.442695, %v2558_v31  ;;  %v2563_v34 = vmul.f32 1.442695, %v2557_v32  ;;  %v10393_v32 = vld [vmem:[%s11344_s2 + $0x108] ss:$0 sm:$0xff] }
0x102f   :  { %9552 = vpow2.f32 %v2565_v33 }
0x1030   :  { %9554 = vpow2.f32 %v2563_v34 }
0x1036   :  { %v9549_v35 = vpop.eup %9548 }
0x1037   :  { %v2567_v36 = vsel %vm2542_vm10, %v9549_v35, 0.0 }
0x1038   :  { %v9551_v37 = vpop.eup %9550  ;;  %2568 = vadd.xlane.f32.xlu0 %v2567_v36 }
0x1039   :  { %v2570_v38 = vsel %vm2542_vm10, %v9551_v37, 0.0 }
0x103a   :  { %2571 = vadd.xlane.f32.xlu1 %v2570_v38 }
0x103c   :  { %v9553_v40 = vpop.eup %9552 }
0x103d   :  { %v9555_v41 = vpop.eup %9554  ;;  %v2576_v43 = vsel %vm2542_vm10, %v9553_v40, 0.0 }
0x103e   :  { %2577 = vadd.xlane.f32.xlu1 %v2576_v43  ;;  %v2573_v44 = vsel %vm2542_vm10, %v9555_v41, 0.0 }
0x103f   :  { %2574 = vadd.xlane.f32.xlu0 %v2573_v44 }
0x10c1   :  { %v2569_v42 = vpop.xlane.xlu0 %2568 }
0x10c2   :  { %9556 = vrcp.f32 %v2569_v42 }
0x10c3   :  { %v2572_v59 = vpop.xlane.xlu1 %2571 }
0x10c4   :  { %9558 = vrcp.f32 %v2572_v59 }
0x10c7   :  { %v2578_v45 = vpop.xlane.xlu1 %2577 }
0x10c8   :  { %9560 = vrcp.f32 %v2578_v45  ;;  %v2575_v16 = vpop.xlane.xlu0 %2574  ;;  %v10403_v45 = vld [vmem:[%s11344_s2 + $0x158] sm:$0x7f] }
0x10c9   :  { %9562 = vrcp.f32 %v2575_v16  ;;  %v10408_v16 = vld [vmem:[%s11344_s2 + $0x150] sm:$0xff] }
0x10cf   :  { %v9557_v46 = vpop.eup %9556 }
0x10d0   :  { %v2583_v51 = vmul.f32 %v9557_v46, %v9549_v35 }
0x10d1   :  { %v9559_v50 = vpop.eup %9558 }
0x10d2   :  { %8930 = vmatmul.mubr.msk.f32.vlgmr.msra.gmra.mxu0 %vm2587_vm11, %v2583_v51  ;;  %v2584_v57 = vmul.f32 %v9559_v50, %v9551_v37  ;;  %v10423_v51 = vld [vmem:[%s11344_s2 + $0x140] sm:$0xff]  ;;  %v10431_v50 = vld [vmem:[%s11344_s2 + $0x138] sm:$0xff] }
0x10d3   :  { %8938 = vmatpush3.msk.msra.mxu0 %vm2591_vm9, %v10193_v53  ;;  %8939 = vmatprep.mubr.msk.f32.mxu0 %vm9706_vm2, %v9705_v0 }
0x10d4   :  { %8935 = vmatmul.mubr.msk.f32.vlgmr.msra.gmra.mxu1 %vm2587_vm11, %v2584_v57  ;;  %8947 = vmatprep.subr.mxu0 %v9705_v0  ;;  %v10438_v57 = vld [vmem:[%s11344_s2 + $0x130] sm:$0xff] }
0x10d5   :  { %v9561_v58 = vpop.eup %9560  ;;  %8943 = vmatpush3.msk.msra.mxu1 %vm2591_vm9, %v10197_v54  ;;  %8944 = vmatprep.mubr.msk.f32.mxu1 %vm9706_vm2, %v9705_v0 }
0x10d6   :  { %v9563_v62 = vpop.eup %9562  ;;  %8964 = vmatprep.subr.mxu1 %v9705_v0  ;;  %v2586_v15 = vmul.f32 %v9561_v58, %v9553_v40  ;;  %v10445_v58 = vld [vmem:[%s11344_s2 + $0x128] sm:$0xff] }
0x10d7   :  { %v2585_v2 = vmul.f32 %v9563_v62, %v9555_v41  ;;  %v10454_v62 = vld [vmem:[%s11344_s2 + $0x120] sm:$0xff] }
0x10d8   :  { %8945 = vmatmul.mubr.msk.f32.vlgmr.msra.gmra.mxu1 %vm2587_vm11, %v2586_v15  ;;  %v10459_v15 = vld [vmem:[%s11344_s2 + $0x118] sm:$0xff] }
0x10d9   :  { %8940 = vmatmul.mubr.msk.f32.vlgmr.msra.gmra.mxu0 %vm2587_vm11, %v2585_v2  ;;  %8965 = vmatpush3.msk.msra.mxu1 %vm2100_vm5, %v10283_v48 }
0x10da   :  { %8966 = vmatprep.subr.mxu1 %v9705_v0  ;;  %8970 = vmatprep.mubr.msk.f32.mxu1 %vm9706_vm2, %v9705_v0 }
0x10db   :  { %8967 = vmatpush3.msra.mxu1 %v10289_v1  ;;  %8961 = vmatprep.mubr.msk.f32.mxu0 %vm9706_vm2, %v9705_v0 }
0x10dc   :  { %8968 = vmatprep.subr.mxu1 %v9705_v0  ;;  %8948 = vmatpush3.msk.msra.mxu0 %vm2105_vm7, %v10315_v4 }
0x10dd   :  { %8969 = vmatpush3.msra.mxu1 %v10298_v3  ;;  %8949 = vmatprep.subr.mxu0 %v9705_v0 }
0x10de   :  { %8971 = vmatmul.mubr.msk.f32.vlgmr.msra.gmra.mxu1 %vm2136_vm8, %v10224_v14  ;;  %8973 = vmatprep.subr.mxu1 %v9705_v0 }
0x10df   :  { %8991 = vmatprep.mubr.msk.f32.mxu1 %vm9706_vm2, %v9705_v0  ;;  %8950 = vmatpush3.msra.mxu0 %v10320_v5 }
0x10e0   :  { %8951 = vmatprep.subr.mxu0 %v9705_v0  ;;  %8974 = vmatpush3.msk.msra.mxu1 %vm3116_vm1, %v10403_v45 }
0x10e1   :  { %8952 = vmatpush3.msra.mxu0 %v10328_v6  ;;  %8975 = vmatprep.subr.mxu1 %v9705_v0 }
0x10e2   :  { %8953 = vmatprep.subr.mxu0 %v9705_v0  ;;  %8976 = vmatpush3.msra.mxu1 %v10408_v16 }
0x10e3   :  { %8954 = vmatpush3.msra.mxu0 %v10335_v13  ;;  %8977 = vmatprep.subr.mxu1 %v9705_v0 }
0x10e4   :  { %8955 = vmatprep.subr.mxu0 %v9705_v0 }
0x10e5   :  { %8956 = vmatpush3.msra.mxu0 %v10342_v7 }
0x10e6   :  { %8957 = vmatprep.subr.mxu0 %v9705_v0 }
0x10e7   :  { %8958 = vmatpush3.msra.mxu0 %v10349_v8 }
0x10e8   :  { %8959 = vmatprep.subr.mxu0 %v9705_v0 }
0x10e9   :  { %8960 = vmatpush3.msra.mxu0 %v10358_v10 }
0x10ea   :  { %8994 = vmatprep.subr.mxu0 %v9705_v0 }
0x1192   :  { %v2660_v19 = vpop.f32.mrf.mxu0 }
0x1194   :  { %v8931_v9 = vpop.f32.mrf.mxu0  ;;  %v2735_v60 = vpop.f32.mrf.mxu1 }
0x1195   :  { %v2893_v25 = vrot.slane %v2735_v60, 7 }
0x1196   :  { %v8936_v12 = vpop.f32.mrf.mxu1 }
0x1197   :  { %v2895_v49 = vsel %vm2894_vm12, %v2893_v25, %v2660_v19 }
0x1198   :  { %v2885_v11 = vpop.f32.mrf.mxu1 }
0x1199   :  { %v2810_v55 = vpop.f32.mrf.mxu0  ;;  %v2899_v27 = vrot.slane %v2885_v11, 5 }
0x119a   :  { %v2896_v17 = vrot.slane %v2810_v55, 6  ;;  %v8946_v18 = vpop.f32.mrf.mxu1 }
0x119b   :  { %v8941_v20 = vpop.f32.mrf.mxu0 }
0x119c   :  { %v2898_v22 = vsel %vm2897_vm13, %v2896_v17, %v2895_v49 }
0x119d   :  { %v2901_v23 = vsel %vm2900_vm14, %v2899_v27, %v2898_v22 }
0x119e   :  { %v3061_v24 = vpop.f32.mrf.mxu1  ;;  %2902 = vrot.lane.b32.xlu0 %v2901_v23, %s9711_s10 }
0x119f   :  { %v3062_v26 = vadd.f32 %v10366_v21, %v3061_v24 }
0x11a0   :  { %v8972_v28 = vpop.f32.mrf.mxu1 }
0x11a1   :  { %3073 = vrot.lane.b32.xlu1 %v3062_v26, %s9712_s11 }
0x1210   :  { %v2903_v30 = vpop.permute.xlu0 %2902 }
0x1211   :  { %v2906_v31 = vsel %vm2905_vm15, %v10376_v29, %v2903_v30 }
0x1212   :  { %8962 = vmatmul.mubr.msk.f32.vlgmr.msra.gmra.mxu0 %vm2911_vm0, %v2906_v31 }
0x1213   :  { %8995 = vmatpush3.msk.msra.mxu0 %vm2100_vm5, %v10202_v61  ;;  %9000 = vmatprep.mubr.msk.f32.mxu0 %vm9706_vm2, %v9705_v0  ;;  %v3074_v43 = vpop.permute.xlu1 %3073 }
0x1214   :  { %8996 = vmatprep.subr.mxu0 %v9705_v0 }
0x1215   :  { %8997 = vmatpush3.msra.mxu0 %v10207_v56 }
0x1216   :  { %8998 = vmatprep.subr.mxu0 %v9705_v0 }
0x1217   :  { %8999 = vmatpush3.msra.mxu0 %v10215_v63 }
0x1218   :  { %9003 = vmatprep.subr.mxu0 %v9705_v0 }
0x12d2   :  { %v2984_v33 = vpop.f32.mrf.mxu0 }
0x12d3   :  { %v2985_v34 = vadd.f32 %v10393_v32, %v2984_v33 }
0x12d4   :  { %v8963_v35 = vpop.f32.mrf.mxu0 }
0x12d5   :  { %v3065_v36 = vadd.f32 %v3062_v26, %v2985_v34  ;;  %v10494_v26 = vld [vmem:[%s11344_s2 + $0x160] ss:$0 sm:$0xff] }
0x12d7   :  { %v8258_v37 = vmul.f32 -1.442695, %v3065_v36 }
0x12d9   :  { %9564 = vpow2.f32 %v8258_v37 }
0x12e6   :  { %v9565_v38 = vpop.eup %9564 }
0x12e7   :  { %v3069_v40 = vadd.f32 1.0, %v9565_v38 }
0x12e9   :  { %9566 = vrcp.f32 %v3069_v40 }
0x12f6   :  { %v9567_v41 = vpop.eup %9566 }
0x12f7   :  { %v3076_v44 = vmul.f32 %v9567_v41, %v3074_v43  ;;  %v3083_v19 = vsub.f32 1.0, %v9567_v41 }
0x12f9   :  { %3078 = vrot.lane.b32.xlu1 %v3076_v44, %s9713_s16 }
0x12fd   :  { %3089 = vrot.lane.b32.xlu1 %v10224_v14, %s9714_s17  ;;  %v10416_v14 = vld [vmem:[%s11344_s2 + $0x148] sm:$0xff] }
0x12fe   :  { %8978 = vmatpush3.msra.mxu1 %v10416_v14 }
0x12ff   :  { %8979 = vmatprep.subr.mxu1 %v9705_v0 }
0x1300   :  { %8980 = vmatpush3.msra.mxu1 %v10423_v51 }
0x1301   :  { %3098 = vrot.lane.b32.xlu1 %v2901_v23, %s9714_s17  ;;  %8981 = vmatprep.subr.mxu1 %v9705_v0 }
0x1302   :  { %8982 = vmatpush3.msra.mxu1 %v10431_v50 }
0x1303   :  { %8983 = vmatprep.subr.mxu1 %v9705_v0 }
0x1304   :  { %8984 = vmatpush3.msra.mxu1 %v10438_v57 }
0x1305   :  { %8985 = vmatprep.subr.mxu1 %v9705_v0 }
0x1306   :  { %8986 = vmatpush3.msra.mxu1 %v10445_v58 }
0x1307   :  { %8987 = vmatprep.subr.mxu1 %v9705_v0 }
0x1308   :  { %8988 = vmatpush3.msra.mxu1 %v10454_v62 }
0x1309   :  { %8989 = vmatprep.subr.mxu1 %v9705_v0 }
0x130a   :  { %8990 = vmatpush3.msra.mxu1 %v10459_v15 }
0x130b   :  { %9013 = vmatprep.subr.mxu1 %v9705_v0 }
0x136b   :  { %v3079_v42 = vpop.permute.xlu1 %3078 }
0x136c   :  { %v3081_v59 = vadd.f32 %v3079_v42, %v2985_v34 }
0x136e   :  { %9568 = vtanh.f32 %v3081_v59 }
0x136f   :  { %v3090_v2 = vpop.permute.xlu1 %3089 }
0x1370   :  { %v3092_v60 = vmul.f32 %v9567_v41, %v3090_v2 }
0x1373   :  { %v3099_v55 = vpop.permute.xlu1 %3098 }
0x137b   :  { %v9569_v46 = vpop.eup %9568 }
0x137c   :  { %3085 = vrot.lane.b32.xlu0 %v9569_v46, %s9715_s0 }
0x13ee   :  { %v3086_v9 = vpop.permute.xlu0 %3085 }
0x13ef   :  { %v3088_v12 = vmul.f32 %v3086_v9, %v3083_v19 }
0x13f1   :  { %v10465_v25 = vadd.f32 %v3092_v60, %v3088_v12 }
0x13f3   :  { %3095 = vrot.lane.b32.xlu0 %v10465_v25, %s9715_s0 }
0x13f7   :  { %3102 = vrot.lane.b32.xlu0 %v10376_v29, %s9716_s9 }
0x1465   :  { %v10471_v11 = vpop.permute.xlu0 %3095 }
0x1466   :  { %9001 = vmatmul.mubr.msk.f32.vlgmr.msra.gmra.mxu0 %vm2136_vm8, %v10471_v11  ;;  %v3105_v27 = vsel %vm2136_vm8, %v10471_v11, %v3099_v55 }
0x1467   :  { %9004 = vmatpush3.xpose.msk.msra.mxu0 %vm1795_vm6, %v10185_v47  ;;  %9005 = vmatprep.mubr.msk.f32.mxu0 %vm9706_vm2, %v9705_v0 }
0x1468   :  { %9008 = vmatprep.subr.mxu0 %v9705_v0 }
0x1469   :  { %v3103_v17 = vpop.permute.xlu0 %3102 }
0x146a   :  { %v3107_v18 = vsel %vm3106_vm3, %v3105_v27, %v3103_v17 }
0x146b   :  { %8992 = vmatmul.mubr.msk.f32.vlgmr.msra.gmra.mxu1 %vm3112_vm4, %v3107_v18 }
0x146c   :  { %9014 = vmatpush3.xpose.msk.msra.mxu1 %vm1795_vm6, %v10193_v53  ;;  %9015 = vmatprep.mubr.msk.f32.mxu1 %vm9706_vm2, %v9705_v0 }
0x146d   :  { %9023 = vmatprep.subr.mxu1 %v9705_v0 }
0x1526   :  { %v3261_v49 = vpop.f32.mrf.mxu0 }
0x1527   :  { %v3272_v20 = vrot.slane %v3261_v49, %v10139_v39 }
0x1528   :  { %v9002_v22 = vpop.f32.mrf.mxu0 }
0x1529   :  { %v3273_v23 = vcombine.high %v3272_v20, %v3272_v20  ;;  %v3280_v24 = vrot.slane %v3272_v20, %v10139_v39 }
0x152b   :  { %v3288_v28 = vcombine.high %v3280_v24, %v3280_v24  ;;  %v3186_v29 = vpop.f32.mrf.mxu1  ;;  %9006 = vmatmul.mubr.msk.f32.vlgmr.msra.gmra.mxu0 %vm1795_vm6, %v3280_v24  ;;  %v3287_v31 = vrot.slane %v3273_v23, %v10139_v39 }
0x152c   :  { %v3187_v30 = vadd.f32 %v10494_v26, %v3186_v29  ;;  %9009 = vmatpush3.xpose.msk.msra.mxu0 %vm1795_vm6, %v10190_v52  ;;  %9010 = vmatprep.mubr.msk.f32.mxu0 %vm9706_vm2, %v9705_v0 }
0x152d   :  { %v8993_v33 = vpop.f32.mrf.mxu1  ;;  %9016 = vmatmul.mubr.msk.f32.vlgmr.msra.gmra.mxu1 %vm1795_vm6, %v3288_v28  ;;  %9018 = vmatprep.subr.mxu0 %v9705_v0  ;;  %v3289_v34 = vcombine.high %v3287_v31, %v3287_v31 }
0x152e   :  { %3190 = vst [vmem:[%s11347_s3] sm:$0xf] %v3187_v30  ;;  %9024 = vmatpush3.msk.msra.mxu1 %vm2591_vm9, %v10185_v47  ;;  %9025 = vmatprep.mubr.msk.f32.mxu1 %vm9706_vm2, %v9705_v0 }
0x152f   :  { %9011 = vmatmul.mubr.msk.f32.vlgmr.msra.gmra.mxu0 %vm1795_vm6, %v3287_v31  ;;  %9033 = vmatprep.subr.mxu1 %v9705_v0 }
0x1530   :  { %9019 = vmatpush3.xpose.msk.msra.mxu0 %vm1795_vm6, %v10197_v54  ;;  %9020 = vmatprep.mubr.msk.f32.mxu0 %vm9706_vm2, %v9705_v0 }
0x1531   :  { %9028 = vmatprep.subr.mxu0 %v9705_v0 }
0x1533   :  { %9021 = vmatmul.mubr.msk.f32.vlgmr.msra.gmra.mxu0 %vm1795_vm6, %v3289_v34 }
0x1534   :  { %9029 = vmatpush3.msk.msra.mxu0 %vm2591_vm9, %v10190_v52  ;;  %9030 = vmatprep.mubr.msk.f32.mxu0 %vm9706_vm2, %v9705_v0 }
0x1535   :  { %9038 = vmatprep.subr.mxu0 %v9705_v0 }
0x15eb   :  { %v3358_v35 = vpop.f32.mrf.mxu0 }
0x15ec   :  { %v3578_v36 = vmul.f32 0.17149858, %v3358_v35 }
0x15ed   :  { %v9007_v37 = vpop.f32.mrf.mxu0  ;;  %v3502_v38 = vpop.f32.mrf.mxu1 }
0x15ee   :  { %v3582_v40 = vsel %vm2542_vm10, %v3578_v36, -inf  ;;  %v3580_v59 = vmul.f32 0.17149858, %v3502_v38 }
0x15ef   :  { %v9017_v41 = vpop.f32.mrf.mxu1  ;;  %3583 = vmax.xlane.f32.xlu1 %v3582_v40  ;;  %v3430_v43 = vpop.f32.mrf.mxu0 }
0x15f0   :  { %v3579_v44 = vmul.f32 0.17149858, %v3430_v43  ;;  %v3588_v60 = vsel %vm2542_vm10, %v3580_v59, -inf }
0x15f1   :  { %v9012_v42 = vpop.f32.mrf.mxu0 }
0x15f2   :  { %v3585_v46 = vsel %vm2542_vm10, %v3579_v44, -inf }
0x15f3   :  { %3586 = vmax.xlane.f32.xlu0 %v3585_v46  ;;  %v3574_v2 = vpop.f32.mrf.mxu0 }
0x15f4   :  { %v3581_v19 = vmul.f32 0.17149858, %v3574_v2 }
0x15f5   :  { %v9022_v9 = vpop.f32.mrf.mxu0 }
0x15f6   :  { %v3591_v12 = vsel %vm2542_vm10, %v3581_v19, -inf }
0x15f7   :  { %3589 = vmax.xlane.f32.xlu0 %v3588_v60  ;;  %3592 = vmax.xlane.f32.xlu1 %v3591_v12 }
0x1678   :  { %v3584_v55 = vpop.xlane.xlu1 %3583 }
0x1679   :  { %v3594_v27 = vsub.f32 %v3578_v36, %v3584_v55 }
0x167b   :  { %v3598_v17 = vmul.f32 1.442695, %v3594_v27 }
0x167c   :  { %v3587_v18 = vpop.xlane.xlu0 %3586 }
0x167d   :  { %9570 = vpow2.f32 %v3598_v17  ;;  %v3595_v49 = vsub.f32 %v3579_v44, %v3587_v18 }
0x167f   :  { %v3600_v20 = vmul.f32 1.442695, %v3595_v49 }
0x1680   :  { %v3590_v22 = vpop.xlane.xlu0 %3589  ;;  %v3593_v23 = vpop.xlane.xlu1 %3592 }
0x1681   :  { %9572 = vpow2.f32 %v3600_v20  ;;  %v3596_v24 = vsub.f32 %v3580_v59, %v3590_v22  ;;  %v3597_v28 = vsub.f32 %v3581_v19, %v3593_v23 }
0x1683   :  { %v3602_v29 = vmul.f32 1.442695, %v3596_v24  ;;  %v3604_v30 = vmul.f32 1.442695, %v3597_v28 }
0x1685   :  { %9574 = vpow2.f32 %v3602_v29 }
0x1686   :  { %9576 = vpow2.f32 %v3604_v30 }
0x168a   :  { %v9571_v31 = vpop.eup %9570 }
0x168b   :  { %v3606_v33 = vsel %vm2542_vm10, %v9571_v31, 0.0 }
0x168c   :  { %3607 = vadd.xlane.f32.xlu0 %v3606_v33 }
0x168e   :  { %v9573_v34 = vpop.eup %9572 }
0x168f   :  { %v3609_v35 = vsel %vm2542_vm10, %v9573_v34, 0.0 }
0x1690   :  { %3610 = vadd.xlane.f32.xlu1 %v3609_v35 }
0x1692   :  { %v9575_v36 = vpop.eup %9574 }
0x1693   :  { %v9577_v37 = vpop.eup %9576  ;;  %v3612_v38 = vsel %vm2542_vm10, %v9575_v36, 0.0 }
0x1694   :  { %3613 = vadd.xlane.f32.xlu0 %v3612_v38  ;;  %v3615_v40 = vsel %vm2542_vm10, %v9577_v37, 0.0 }
0x1695   :  { %3616 = vadd.xlane.f32.xlu1 %v3615_v40 }
0x1715   :  { %v3608_v41 = vpop.xlane.xlu0 %3607 }
0x1716   :  { %9578 = vrcp.f32 %v3608_v41 }
0x1719   :  { %v3611_v43 = vpop.xlane.xlu1 %3610 }
0x171a   :  { %9580 = vrcp.f32 %v3611_v43 }
0x171d   :  { %v3614_v44 = vpop.xlane.xlu0 %3613 }
0x171e   :  { %9582 = vrcp.f32 %v3614_v44  ;;  %v3617_v42 = vpop.xlane.xlu1 %3616 }
0x171f   :  { %9584 = vrcp.f32 %v3617_v42 }
0x1723   :  { %v9579_v59 = vpop.eup %9578 }
0x1724   :  { %v3622_v46 = vmul.f32 %v9579_v59, %v9571_v31 }
0x1726   :  { %9026 = vmatmul.mubr.msk.f32.vlgmr.msra.gmra.mxu1 %vm2587_vm11, %v3622_v46 }
0x1727   :  { %v9581_v2 = vpop.eup %9580  ;;  %9034 = vmatpush3.msk.msra.mxu1 %vm2591_vm9, %v10193_v53  ;;  %9035 = vmatprep.mubr.msk.f32.mxu1 %vm9706_vm2, %v9705_v0 }
0x1728   :  { %v3623_v19 = vmul.f32 %v9581_v2, %v9573_v34  ;;  %9043 = vmatprep.subr.mxu1 %v9705_v0 }
0x172a   :  { %9031 = vmatmul.mubr.msk.f32.vlgmr.msra.gmra.mxu0 %vm2587_vm11, %v3623_v19 }
0x172b   :  { %v9583_v9 = vpop.eup %9582  ;;  %9039 = vmatpush3.msk.msra.mxu0 %vm2591_vm9, %v10197_v54  ;;  %9040 = vmatprep.mubr.msk.f32.mxu0 %vm9706_vm2, %v9705_v0 }
0x172c   :  { %v9585_v60 = vpop.eup %9584  ;;  %9060 = vmatprep.subr.mxu0 %v9705_v0  ;;  %v3624_v12 = vmul.f32 %v9583_v9, %v9575_v36 }
0x172d   :  { %v3625_v55 = vmul.f32 %v9585_v60, %v9577_v37  ;;  %v8262_v37 = vld [vmem:[%s11346_s1 + $0x4] sm:$0xf] }
0x172e   :  { %9036 = vmatmul.mubr.msk.f32.vlgmr.msra.gmra.mxu1 %vm2587_vm11, %v3624_v12 }
0x172f   :  { %9041 = vmatmul.mubr.msk.f32.vlgmr.msra.gmra.mxu0 %vm2587_vm11, %v3625_v55  ;;  %9044 = vmatpush3.msk.msra.mxu1 %vm2105_vm7, %v10315_v4 }
0x1730   :  { %9061 = vmatpush3.msk.msra.mxu0 %vm2100_vm5, %v10283_v48  ;;  %9066 = vmatprep.mubr.msk.f32.mxu0 %vm9706_vm2, %v9705_v0 }
0x1731   :  { %9062 = vmatprep.subr.mxu0 %v9705_v0  ;;  %9045 = vmatprep.subr.mxu1 %v9705_v0 }
0x1732   :  { %9063 = vmatpush3.msra.mxu0 %v10289_v1  ;;  %9046 = vmatpush3.msra.mxu1 %v10320_v5 }
0x1733   :  { %9064 = vmatprep.subr.mxu0 %v9705_v0  ;;  %9047 = vmatprep.subr.mxu1 %v9705_v0 }
0x1734   :  { %9065 = vmatpush3.msra.mxu0 %v10298_v3  ;;  %9048 = vmatpush3.msra.mxu1 %v10328_v6 }
0x1735   :  { %9067 = vmatmul.mubr.msk.f32.vlgmr.msra.gmra.mxu0 %vm2136_vm8, %v10471_v11  ;;  %9049 = vmatprep.subr.mxu1 %v9705_v0 }
0x1736   :  { %9050 = vmatpush3.msra.mxu1 %v10335_v13  ;;  %9057 = vmatprep.mubr.msk.f32.mxu1 %vm9706_vm2, %v9705_v0 }
0x1737   :  { %9051 = vmatprep.subr.mxu1 %v9705_v0  ;;  %9069 = vmatprep.subr.mxu0 %v9705_v0 }
0x1738   :  { %9052 = vmatpush3.msra.mxu1 %v10342_v7  ;;  %9070 = vmatpush3.msk.msra.mxu0 %vm3116_vm1, %v10403_v45 }
0x1739   :  { %9053 = vmatprep.subr.mxu1 %v9705_v0  ;;  %9071 = vmatprep.subr.mxu0 %v9705_v0 }
0x173a   :  { %9054 = vmatpush3.msra.mxu1 %v10349_v8  ;;  %9072 = vmatpush3.msra.mxu0 %v10408_v16 }
0x173b   :  { %9055 = vmatprep.subr.mxu1 %v9705_v0  ;;  %9073 = vmatprep.subr.mxu0 %v9705_v0 }
0x173c   :  { %9056 = vmatpush3.msra.mxu1 %v10358_v10  ;;  %9074 = vmatpush3.msra.mxu0 %v10416_v14 }
0x173d   :  { %9075 = vmatprep.subr.mxu0 %v9705_v0  ;;  %9090 = vmatprep.subr.mxu1 %v9705_v0 }
0x173e   :  { %9076 = vmatpush3.msra.mxu0 %v10423_v51  ;;  %9087 = vmatprep.mubr.msk.f32.mxu0 %vm9706_vm2, %v9705_v0 }
0x173f   :  { %9077 = vmatprep.subr.mxu0 %v9705_v0 }
0x1740   :  { %9078 = vmatpush3.msra.mxu0 %v10431_v50 }
0x1741   :  { %9079 = vmatprep.subr.mxu0 %v9705_v0 }
0x1742   :  { %9080 = vmatpush3.msra.mxu0 %v10438_v57 }
0x1743   :  { %9081 = vmatprep.subr.mxu0 %v9705_v0 }
0x1744   :  { %9082 = vmatpush3.msra.mxu0 %v10445_v58 }
0x1745   :  { %9083 = vmatprep.subr.mxu0 %v9705_v0 }
0x1746   :  { %9084 = vmatpush3.msra.mxu0 %v10454_v62 }
0x1747   :  { %9085 = vmatprep.subr.mxu0 %v9705_v0 }
0x1748   :  { %9086 = vmatpush3.msra.mxu0 %v10459_v15 }
0x1749   :  { %9109 = vmatprep.subr.mxu0 %v9705_v0 }
0x17e6   :  { %v3695_v11 = vpop.f32.mrf.mxu1 }
0x17e8   :  { %v9027_v27 = vpop.f32.mrf.mxu1 }
0x17ea   :  { %v3768_v17 = vpop.f32.mrf.mxu0 }
0x17eb   :  { %v3922_v18 = vrot.slane %v3768_v17, 7 }
0x17ec   :  { %v9032_v49 = vpop.f32.mrf.mxu0 }
0x17ed   :  { %v3923_v24 = vsel %vm2894_vm12, %v3922_v18, %v3695_v11 }
0x17ee   :  { %v3841_v20 = vpop.f32.mrf.mxu1 }
0x17ef   :  { %v3924_v22 = vrot.slane %v3841_v20, 6  ;;  %v3914_v23 = vpop.f32.mrf.mxu0 }
0x17f0   :  { %v3926_v28 = vrot.slane %v3914_v23, 5  ;;  %v9037_v29 = vpop.f32.mrf.mxu1 }
0x17f1   :  { %v9042_v30 = vpop.f32.mrf.mxu0  ;;  %v3925_v31 = vsel %vm2897_vm13, %v3924_v22, %v3923_v24 }
0x17f2   :  { %v3927_v33 = vsel %vm2900_vm14, %v3926_v28, %v3925_v31 }
0x17f3   :  { %3928 = vrot.lane.b32.xlu0 %v3927_v33, %s9711_s10 }
0x17f5   :  { %v4071_v34 = vpop.f32.mrf.mxu0 }
0x17f6   :  { %v4072_v35 = vadd.f32 %v10366_v21, %v4071_v34 }
0x17f7   :  { %v9068_v36 = vpop.f32.mrf.mxu0 }
0x17f8   :  { %4083 = vrot.lane.b32.xlu1 %v4072_v35, %s9712_s11 }
0x1865   :  { %v3929_v38 = vpop.permute.xlu0 %3928 }
0x1866   :  { %v3931_v40 = vsel %vm2905_vm15, %v8262_v37, %v3929_v38 }
0x1867   :  { %9058 = vmatmul.mubr.msk.f32.vlgmr.msra.gmra.mxu1 %vm2911_vm0, %v3931_v40 }
0x1868   :  { %9091 = vmatpush3.msk.msra.mxu1 %vm2100_vm5, %v10202_v61  ;;  %9096 = vmatprep.mubr.msk.f32.mxu1 %vm9706_vm2, %v9705_v0 }
0x1869   :  { %9092 = vmatprep.subr.mxu1 %v9705_v0 }
0x186a   :  { %9093 = vmatpush3.msra.mxu1 %v10207_v56  ;;  %v4084_v19 = vpop.permute.xlu1 %4083 }
0x186b   :  { %9094 = vmatprep.subr.mxu1 %v9705_v0 }
0x186c   :  { %9095 = vmatpush3.msra.mxu1 %v10215_v63 }
0x186d   :  { %9099 = vmatprep.subr.mxu1 %v9705_v0 }
0x1927   :  { %v4001_v41 = vpop.f32.mrf.mxu1 }
0x1928   :  { %v4002_v43 = vadd.f32 %v10393_v32, %v4001_v41 }
0x1929   :  { %v9059_v44 = vpop.f32.mrf.mxu1 }
0x192a   :  { %v4075_v42 = vadd.f32 %v4072_v35, %v4002_v43 }
0x192c   :  { %v8285_v59 = vmul.f32 -1.442695, %v4075_v42 }
0x192e   :  { %9586 = vpow2.f32 %v8285_v59 }
0x193b   :  { %v9587_v61 = vpop.eup %9586 }
0x193c   :  { %v4079_v46 = vadd.f32 1.0, %v9587_v61 }
0x193e   :  { %9588 = vrcp.f32 %v4079_v46 }
0x194b   :  { %v9589_v2 = vpop.eup %9588 }
0x194c   :  { %v4086_v9 = vmul.f32 %v9589_v2, %v4084_v19  ;;  %v4093_v12 = vsub.f32 1.0, %v9589_v2  ;;  %v4099_v11 = vmul.f32 %v9589_v2, %v10465_v25 }
0x194e   :  { %4088 = vrot.lane.b32.xlu1 %v4086_v9, %s9713_s16 }
0x19c0   :  { %v4089_v56 = vpop.permute.xlu1 %4088 }
0x19c1   :  { %v4091_v60 = vadd.f32 %v4089_v56, %v4002_v43 }
0x19c3   :  { %9590 = vtanh.f32 %v4091_v60 }
0x19d0   :  { %v9591_v63 = vpop.eup %9590 }
0x19d1   :  { %4095 = vrot.lane.b32.xlu0 %v9591_v63, %s9715_s0 }
0x19d5   :  { %4105 = vrot.lane.b32.xlu0 %v3927_v33, %s9714_s17 }
0x1a43   :  { %v4096_v55 = vpop.permute.xlu0 %4095 }
0x1a44   :  { %v4098_v27 = vmul.f32 %v4096_v55, %v4093_v12 }
0x1a46   :  { %v10621_v17 = vadd.f32 %v4099_v11, %v4098_v27 }
0x1a47   :  { %v4106_v25 = vpop.permute.xlu0 %4105 }
0x1a48   :  { %4102 = vrot.lane.b32.xlu1 %v10621_v17, %s9715_s0 }
0x1a4c   :  { %4109 = vrot.lane.b32.xlu1 %v8262_v37, %s9716_s9 }
0x1aba   :  { %v10626_v18 = vpop.permute.xlu1 %4102 }
0x1abb   :  { %9097 = vmatmul.mubr.msk.f32.vlgmr.msra.gmra.mxu1 %vm2136_vm8, %v10626_v18  ;;  %v4112_v49 = vsel %vm2136_vm8, %v10626_v18, %v4106_v25 }
0x1abc   :  { %9100 = vmatpush3.xpose.msk.msra.mxu1 %vm1795_vm6, %v10185_v47  ;;  %9101 = vmatprep.mubr.msk.f32.mxu1 %vm9706_vm2, %v9705_v0 }
0x1abd   :  { %9104 = vmatprep.subr.mxu1 %v9705_v0 }
0x1abe   :  { %v4110_v20 = vpop.permute.xlu1 %4109 }
0x1abf   :  { %v4113_v22 = vsel %vm3106_vm3, %v4112_v49, %v4110_v20 }
0x1ac0   :  { %9088 = vmatmul.mubr.msk.f32.vlgmr.msra.gmra.mxu0 %vm3112_vm4, %v4113_v22 }
0x1ac1   :  { %9110 = vmatpush3.xpose.msk.msra.mxu0 %vm1795_vm6, %v10193_v53  ;;  %9111 = vmatprep.mubr.msk.f32.mxu0 %vm9706_vm2, %v9705_v0 }
0x1ac2   :  { %9119 = vmatprep.subr.mxu0 %v9705_v0 }
0x1b7b   :  { %v4259_v23 = vpop.f32.mrf.mxu1 }
0x1b7c   :  { %v4270_v24 = vrot.slane %v4259_v23, %v10139_v39 }
0x1b7d   :  { %v9098_v28 = vpop.f32.mrf.mxu1 }
0x1b7e   :  { %v4271_v29 = vcombine.high %v4270_v24, %v4270_v24  ;;  %v4278_v30 = vrot.slane %v4270_v24, %v10139_v39 }
0x1b80   :  { %v4286_v31 = vcombine.high %v4278_v30, %v4278_v30  ;;  %v4183_v33 = vpop.f32.mrf.mxu0  ;;  %9102 = vmatmul.mubr.msk.f32.vlgmr.msra.gmra.mxu1 %vm1795_vm6, %v4278_v30  ;;  %v4285_v35 = vrot.slane %v4271_v29, %v10139_v39 }
0x1b81   :  { %v4184_v34 = vadd.f32 %v10494_v26, %v4183_v33  ;;  %9105 = vmatpush3.xpose.msk.msra.mxu1 %vm1795_vm6, %v10190_v52  ;;  %9106 = vmatprep.mubr.msk.f32.mxu1 %vm9706_vm2, %v9705_v0 }
0x1b82   :  { %v9089_v36 = vpop.f32.mrf.mxu0  ;;  %9112 = vmatmul.mubr.msk.f32.vlgmr.msra.gmra.mxu0 %vm1795_vm6, %v4286_v31  ;;  %9114 = vmatprep.subr.mxu1 %v9705_v0  ;;  %v4287_v37 = vcombine.high %v4285_v35, %v4285_v35 }
0x1b83   :  { %8288 = vst [vmem:[%s11347_s3 + $0x4] sm:$0xf] %v4184_v34  ;;  %9120 = vmatpush3.msk.msra.mxu0 %vm2591_vm9, %v10185_v47  ;;  %9121 = vmatprep.mubr.msk.f32.mxu0 %vm9706_vm2, %v9705_v0 }
0x1b84   :  { %9107 = vmatmul.mubr.msk.f32.vlgmr.msra.gmra.mxu1 %vm1795_vm6, %v4285_v35  ;;  %9129 = vmatprep.subr.mxu0 %v9705_v0 }
0x1b85   :  { %9115 = vmatpush3.xpose.msk.msra.mxu1 %vm1795_vm6, %v10197_v54  ;;  %9116 = vmatprep.mubr.msk.f32.mxu1 %vm9706_vm2, %v9705_v0 }
0x1b86   :  { %9124 = vmatprep.subr.mxu1 %v9705_v0 }
0x1b88   :  { %9117 = vmatmul.mubr.msk.f32.vlgmr.msra.gmra.mxu1 %vm1795_vm6, %v4287_v37 }
0x1b89   :  { %9125 = vmatpush3.msk.msra.mxu1 %vm2591_vm9, %v10190_v52  ;;  %9126 = vmatprep.mubr.msk.f32.mxu1 %vm9706_vm2, %v9705_v0 }
0x1b8a   :  { %9134 = vmatprep.subr.mxu1 %v9705_v0 }
0x1c40   :  { %v4356_v38 = vpop.f32.mrf.mxu1 }
0x1c41   :  { %v4576_v40 = vmul.f32 0.17149858, %v4356_v38 }
0x1c42   :  { %v9103_v41 = vpop.f32.mrf.mxu1  ;;  %v4500_v43 = vpop.f32.mrf.mxu0 }
0x1c43   :  { %v4578_v44 = vmul.f32 0.17149858, %v4500_v43  ;;  %v4580_v42 = vsel %vm2542_vm10, %v4576_v40, -inf }
0x1c44   :  { %4581 = vmax.xlane.f32.xlu0 %v4580_v42  ;;  %v4428_v59 = vpop.f32.mrf.mxu1  ;;  %v9113_v61 = vpop.f32.mrf.mxu0 }
0x1c45   :  { %v4577_v46 = vmul.f32 0.17149858, %v4428_v59  ;;  %v4586_v9 = vsel %vm2542_vm10, %v4578_v44, -inf }
0x1c46   :  { %v9108_v2 = vpop.f32.mrf.mxu1 }
0x1c47   :  { %v4583_v19 = vsel %vm2542_vm10, %v4577_v46, -inf }
0x1c48   :  { %4584 = vmax.xlane.f32.xlu1 %v4583_v19  ;;  %v4572_v56 = vpop.f32.mrf.mxu1  ;;  %4587 = vmax.xlane.f32.xlu0 %v4586_v9 }
0x1c49   :  { %v4579_v60 = vmul.f32 0.17149858, %v4572_v56 }
0x1c4a   :  { %v9118_v63 = vpop.f32.mrf.mxu1 }
0x1c4b   :  { %v4589_v12 = vsel %vm2542_vm10, %v4579_v60, -inf  ;;  %v10760_v63 = vld [vmem:[%s11344_s2 + $0xb0] sm:$0x7] }
0x1c4c   :  { %4590 = vmax.xlane.f32.xlu0 %v4589_v12  ;;  %v10777_v12 = vld [vmem:[%s11344_s2 + $0xa0] sm:$0xff] }
0x1ccd   :  { %v4582_v55 = vpop.xlane.xlu0 %4581 }
0x1cce   :  { %v4592_v11 = vsub.f32 %v4576_v40, %v4582_v55 }
0x1cd0   :  { %v4596_v27 = vmul.f32 1.442695, %v4592_v11 }
0x1cd1   :  { %v4585_v25 = vpop.xlane.xlu1 %4584  ;;  %v4588_v49 = vpop.xlane.xlu0 %4587 }
0x1cd2   :  { %9592 = vpow2.f32 %v4596_v27  ;;  %v4593_v20 = vsub.f32 %v4577_v46, %v4585_v25  ;;  %v4594_v22 = vsub.f32 %v4578_v44, %v4588_v49 }
0x1cd4   :  { %v4598_v23 = vmul.f32 1.442695, %v4593_v20  ;;  %v4600_v24 = vmul.f32 1.442695, %v4594_v22 }
0x1cd5   :  { %v4591_v28 = vpop.xlane.xlu0 %4590 }
0x1cd6   :  { %9594 = vpow2.f32 %v4598_v23  ;;  %v4595_v29 = vsub.f32 %v4579_v60, %v4591_v28 }
0x1cd7   :  { %9596 = vpow2.f32 %v4600_v24 }
0x1cd8   :  { %v4602_v30 = vmul.f32 1.442695, %v4595_v29 }
0x1cda   :  { %9598 = vpow2.f32 %v4602_v30 }
0x1cdf   :  { %v9593_v31 = vpop.eup %9592 }
0x1ce0   :  { %v4604_v33 = vsel %vm2542_vm10, %v9593_v31, 0.0 }
0x1ce1   :  { %4605 = vadd.xlane.f32.xlu1 %v4604_v33 }
0x1ce3   :  { %v9595_v34 = vpop.eup %9594 }
0x1ce4   :  { %v9597_v35 = vpop.eup %9596  ;;  %v4607_v36 = vsel %vm2542_vm10, %v9595_v34, 0.0 }
0x1ce5   :  { %4608 = vadd.xlane.f32.xlu0 %v4607_v36  ;;  %v4610_v37 = vsel %vm2542_vm10, %v9597_v35, 0.0 }
0x1ce6   :  { %4611 = vadd.xlane.f32.xlu1 %v4610_v37 }
0x1ce7   :  { %v9599_v38 = vpop.eup %9598 }
0x1ce8   :  { %v4613_v40 = vsel %vm2542_vm10, %v9599_v38, 0.0 }
0x1ce9   :  { %4614 = vadd.xlane.f32.xlu0 %v4613_v40 }
0x1d6a   :  { %v4606_v41 = vpop.xlane.xlu1 %4605 }
0x1d6b   :  { %9600 = vrcp.f32 %v4606_v41 }
0x1d6e   :  { %v4609_v43 = vpop.xlane.xlu0 %4608 }
0x1d6f   :  { %v4612_v44 = vpop.xlane.xlu1 %4611  ;;  %9602 = vrcp.f32 %v4609_v43 }
0x1d70   :  { %9604 = vrcp.f32 %v4612_v44 }
0x1d72   :  { %v4615_v42 = vpop.xlane.xlu0 %4614 }
0x1d73   :  { %9606 = vrcp.f32 %v4615_v42 }
0x1d78   :  { %v9601_v59 = vpop.eup %9600 }
0x1d79   :  { %v4620_v61 = vmul.f32 %v9601_v59, %v9593_v31 }
0x1d7b   :  { %9122 = vmatmul.mubr.msk.f32.vlgmr.msra.gmra.mxu0 %vm2587_vm11, %v4620_v61 }
0x1d7c   :  { %v9603_v46 = vpop.eup %9602  ;;  %9130 = vmatpush3.msk.msra.mxu0 %vm2591_vm9, %v10193_v53  ;;  %9131 = vmatprep.mubr.msk.f32.mxu0 %vm9706_vm2, %v9705_v0 }
0x1d7d   :  { %v9605_v2 = vpop.eup %9604  ;;  %v4621_v19 = vmul.f32 %v9603_v46, %v9595_v34  ;;  %9139 = vmatprep.subr.mxu0 %v9705_v0 }
0x1d7e   :  { %v4622_v9 = vmul.f32 %v9605_v2, %v9597_v35 }
0x1d7f   :  { %9127 = vmatmul.mubr.msk.f32.vlgmr.msra.gmra.mxu1 %vm2587_vm11, %v4621_v19 }
0x1d80   :  { %v9607_v56 = vpop.eup %9606  ;;  %9132 = vmatmul.mubr.msk.f32.vlgmr.msra.gmra.mxu0 %vm2587_vm11, %v4622_v9  ;;  %9135 = vmatpush3.msk.msra.mxu1 %vm2591_vm9, %v10197_v54 }
0x1d81   :  { %9136 = vmatprep.mubr.msk.f32.mxu1 %vm9706_vm2, %v9705_v0  ;;  %9156 = vmatprep.subr.mxu1 %v9705_v0  ;;  %v4623_v60 = vmul.f32 %v9607_v56, %v9599_v38 }
0x1d82   :  { %9140 = vmatpush3.msk.msra.mxu0 %vm2105_vm7, %v10315_v4  ;;  %9153 = vmatprep.mubr.msk.f32.mxu0 %vm9706_vm2, %v9705_v0 }
0x1d83   :  { %9137 = vmatmul.mubr.msk.f32.vlgmr.msra.gmra.mxu1 %vm2587_vm11, %v4623_v60  ;;  %9141 = vmatprep.subr.mxu0 %v9705_v0 }
0x1d84   :  { %9157 = vmatpush3.msk.msra.mxu1 %vm2100_vm5, %v10283_v48  ;;  %9162 = vmatprep.mubr.msk.f32.mxu1 %vm9706_vm2, %v9705_v0 }
0x1d85   :  { %9158 = vmatprep.subr.mxu1 %v9705_v0  ;;  %9142 = vmatpush3.msra.mxu0 %v10320_v5 }
0x1d86   :  { %9159 = vmatpush3.msra.mxu1 %v10289_v1  ;;  %9143 = vmatprep.subr.mxu0 %v9705_v0 }
0x1d87   :  { %9160 = vmatprep.subr.mxu1 %v9705_v0  ;;  %9144 = vmatpush3.msra.mxu0 %v10328_v6 }
0x1d88   :  { %9161 = vmatpush3.msra.mxu1 %v10298_v3  ;;  %9145 = vmatprep.subr.mxu0 %v9705_v0 }
0x1d89   :  { %9163 = vmatmul.mubr.msk.f32.vlgmr.msra.gmra.mxu1 %vm2136_vm8, %v10626_v18  ;;  %9146 = vmatpush3.msra.mxu0 %v10335_v13 }
0x1d8a   :  { %9147 = vmatprep.subr.mxu0 %v9705_v0  ;;  %9165 = vmatprep.subr.mxu1 %v9705_v0 }
0x1d8b   :  { %9148 = vmatpush3.msra.mxu0 %v10342_v7  ;;  %9166 = vmatpush3.msk.msra.mxu1 %vm3116_vm1, %v10403_v45 }
0x1d8c   :  { %9149 = vmatprep.subr.mxu0 %v9705_v0  ;;  %9167 = vmatprep.subr.mxu1 %v9705_v0 }
0x1d8d   :  { %9150 = vmatpush3.msra.mxu0 %v10349_v8  ;;  %9168 = vmatpush3.msra.mxu1 %v10408_v16 }
0x1d8e   :  { %9151 = vmatprep.subr.mxu0 %v9705_v0  ;;  %9169 = vmatprep.subr.mxu1 %v9705_v0 }
0x1d8f   :  { %9152 = vmatpush3.msra.mxu0 %v10358_v10  ;;  %9170 = vmatpush3.msra.mxu1 %v10416_v14 }
0x1d90   :  { %9171 = vmatprep.subr.mxu1 %v9705_v0  ;;  %9186 = vmatprep.subr.mxu0 %v9705_v0 }
0x1d91   :  { %9172 = vmatpush3.msra.mxu1 %v10423_v51  ;;  %9183 = vmatprep.mubr.msk.f32.mxu1 %vm9706_vm2, %v9705_v0 }
0x1d92   :  { %9173 = vmatprep.subr.mxu1 %v9705_v0 }
0x1d93   :  { %9174 = vmatpush3.msra.mxu1 %v10431_v50 }
0x1d94   :  { %9175 = vmatprep.subr.mxu1 %v9705_v0 }
0x1d95   :  { %9176 = vmatpush3.msra.mxu1 %v10438_v57 }
0x1d96   :  { %9177 = vmatprep.subr.mxu1 %v9705_v0 }
0x1d97   :  { %9178 = vmatpush3.msra.mxu1 %v10445_v58 }
0x1d98   :  { %9179 = vmatprep.subr.mxu1 %v9705_v0 }
0x1d99   :  { %9180 = vmatpush3.msra.mxu1 %v10454_v62  ;;  %v8289_v62 = vld [vmem:[%s11346_s1 + $0x8] sm:$0xf] }
0x1d9a   :  { %9181 = vmatprep.subr.mxu1 %v9705_v0 }
0x1d9b   :  { %9182 = vmatpush3.msra.mxu1 %v10459_v15 }
0x1d9c   :  { %9205 = vmatprep.subr.mxu1 %v9705_v0 }
0x1e3b   :  { %v4693_v48 = vpop.f32.mrf.mxu0 }
0x1e3d   :  { %v9123_v1 = vpop.f32.mrf.mxu0 }
0x1e3f   :  { %v4766_v3 = vpop.f32.mrf.mxu1 }
0x1e40   :  { %v4920_v4 = vrot.slane %v4766_v3, 7  ;;  %v4839_v5 = vpop.f32.mrf.mxu0 }
0x1e41   :  { %v4922_v6 = vrot.slane %v4839_v5, 6  ;;  %v9128_v13 = vpop.f32.mrf.mxu1 }
0x1e42   :  { %v4921_v7 = vsel %vm2894_vm12, %v4920_v4, %v4693_v48  ;;  %v9133_v8 = vpop.f32.mrf.mxu0 }
0x1e43   :  { %v4912_v10 = vpop.f32.mrf.mxu1  ;;  %v4923_v14 = vsel %vm2897_vm13, %v4922_v6, %v4921_v7 }
0x1e44   :  { %v4924_v45 = vrot.slane %v4912_v10, 5 }
0x1e45   :  { %v9138_v16 = vpop.f32.mrf.mxu1 }
0x1e46   :  { %v4925_v51 = vsel %vm2900_vm14, %v4924_v45, %v4923_v14 }
0x1e47   :  { %4926 = vrot.lane.b32.xlu1 %v4925_v51, %s9711_s10 }
0x1e49   :  { %v5069_v50 = vpop.f32.mrf.mxu1 }
0x1e4a   :  { %v5070_v57 = vadd.f32 %v10366_v21, %v5069_v50  ;;  %v10770_v21 = vld [vmem:[%s11344_s2 + $0xa8] sm:$0xff] }
0x1e4b   :  { %v9164_v58 = vpop.f32.mrf.mxu1 }
0x1e4c   :  { %5081 = vrot.lane.b32.xlu0 %v5070_v57, %s9712_s11 }
0x1eb9   :  { %v4927_v15 = vpop.permute.xlu1 %4926 }
0x1eba   :  { %v4929_v18 = vsel %vm2905_vm15, %v8289_v62, %v4927_v15 }
0x1ebb   :  { %9154 = vmatmul.mubr.msk.f32.vlgmr.msra.gmra.mxu0 %vm2911_vm0, %v4929_v18 }
0x1ebc   :  { %9187 = vmatpush3.msk.msra.mxu0 %vm2100_vm5, %v10760_v63  ;;  %9192 = vmatprep.mubr.msk.f32.mxu0 %vm9706_vm2, %v9705_v0 }
0x1ebd   :  { %9188 = vmatprep.subr.mxu0 %v9705_v0 }
0x1ebe   :  { %9189 = vmatpush3.msra.mxu0 %v10770_v21  ;;  %v5082_v24 = vpop.permute.xlu0 %5081 }
0x1ebf   :  { %9190 = vmatprep.subr.mxu0 %v9705_v0 }
0x1ec0   :  { %9191 = vmatpush3.msra.mxu0 %v10777_v12 }
0x1ec1   :  { %9195 = vmatprep.subr.mxu0 %v9705_v0 }
0x1f7b   :  { %v4999_v55 = vpop.f32.mrf.mxu0 }
0x1f7c   :  { %v5000_v11 = vadd.f32 %v10393_v32, %v4999_v55 }
0x1f7d   :  { %v9155_v27 = vpop.f32.mrf.mxu0 }
0x1f7e   :  { %v5073_v25 = vadd.f32 %v5070_v57, %v5000_v11 }
0x1f80   :  { %v8312_v49 = vmul.f32 -1.442695, %v5073_v25 }
0x1f82   :  { %9608 = vpow2.f32 %v8312_v49 }
0x1f8f   :  { %v9609_v20 = vpop.eup %9608 }
0x1f90   :  { %v5077_v22 = vadd.f32 1.0, %v9609_v20 }
0x1f92   :  { %9610 = vrcp.f32 %v5077_v22 }
0x1f9f   :  { %v9611_v23 = vpop.eup %9610 }
0x1fa0   :  { %v5084_v28 = vmul.f32 %v9611_v23, %v5082_v24  ;;  %v5091_v32 = vsub.f32 1.0, %v9611_v23  ;;  %v5097_v34 = vmul.f32 %v9611_v23, %v10621_v17 }
0x1fa2   :  { %5086 = vrot.lane.b32.xlu1 %v5084_v28, %s9713_s16 }
0x2014   :  { %v5087_v29 = vpop.permute.xlu1 %5086 }
0x2015   :  { %v5089_v30 = vadd.f32 %v5087_v29, %v5000_v11 }
0x2017   :  { %9612 = vtanh.f32 %v5089_v30 }
0x2024   :  { %v9613_v31 = vpop.eup %9612 }
0x2025   :  { %5093 = vrot.lane.b32.xlu1 %v9613_v31, %s9715_s0 }
0x2029   :  { %5103 = vrot.lane.b32.xlu1 %v4925_v51, %s9714_s17 }
0x2097   :  { %v5094_v33 = vpop.permute.xlu1 %5093 }
0x2098   :  { %v5096_v35 = vmul.f32 %v5094_v33, %v5091_v32 }
0x209a   :  { %v10786_v36 = vadd.f32 %v5097_v34, %v5096_v35 }
0x209b   :  { %v5104_v17 = vpop.permute.xlu1 %5103 }
0x209c   :  { %5100 = vrot.lane.b32.xlu0 %v10786_v36, %s9715_s0 }
0x20a0   :  { %5107 = vrot.lane.b32.xlu0 %v8289_v62, %s9716_s9 }
0x210e   :  { %v10791_v37 = vpop.permute.xlu0 %5100 }
0x210f   :  { %9193 = vmatmul.mubr.msk.f32.vlgmr.msra.gmra.mxu0 %vm2136_vm8, %v10791_v37  ;;  %v5110_v38 = vsel %vm2136_vm8, %v10791_v37, %v5104_v17 }
0x2110   :  { %9196 = vmatpush3.xpose.msk.msra.mxu0 %vm1795_vm6, %v10185_v47  ;;  %9197 = vmatprep.mubr.msk.f32.mxu0 %vm9706_vm2, %v9705_v0 }
0x2111   :  { %9200 = vmatprep.subr.mxu0 %v9705_v0 }
0x2112   :  { %v5108_v40 = vpop.permute.xlu0 %5107 }
0x2113   :  { %v5111_v41 = vsel %vm3106_vm3, %v5110_v38, %v5108_v40 }
0x2114   :  { %9184 = vmatmul.mubr.msk.f32.vlgmr.msra.gmra.mxu1 %vm3112_vm4, %v5111_v41 }
0x2115   :  { %9206 = vmatpush3.xpose.msk.msra.mxu1 %vm1795_vm6, %v10193_v53  ;;  %9207 = vmatprep.mubr.msk.f32.mxu1 %vm9706_vm2, %v9705_v0 }
0x2116   :  { %9215 = vmatprep.subr.mxu1 %v9705_v0 }
0x21cf   :  { %v5257_v43 = vpop.f32.mrf.mxu0 }
0x21d0   :  { %v5268_v44 = vrot.slane %v5257_v43, %v10139_v39 }
0x21d1   :  { %v9194_v42 = vpop.f32.mrf.mxu0 }
0x21d2   :  { %v5269_v59 = vcombine.high %v5268_v44, %v5268_v44  ;;  %v5276_v61 = vrot.slane %v5268_v44, %v10139_v39 }
0x21d4   :  { %v5284_v46 = vcombine.high %v5276_v61, %v5276_v61  ;;  %v5181_v2 = vpop.f32.mrf.mxu1  ;;  %9198 = vmatmul.mubr.msk.f32.vlgmr.msra.gmra.mxu0 %vm1795_vm6, %v5276_v61  ;;  %v5283_v9 = vrot.slane %v5269_v59, %v10139_v39 }
0x21d5   :  { %v5182_v19 = vadd.f32 %v10494_v26, %v5181_v2  ;;  %9201 = vmatpush3.xpose.msk.msra.mxu0 %vm1795_vm6, %v10190_v52  ;;  %9202 = vmatprep.mubr.msk.f32.mxu0 %vm9706_vm2, %v9705_v0  ;;  %v10865_v2 = vld [vmem:[%s11344_s2 + $0xe8] sm:$0xf] }
0x21d6   :  { %v9185_v56 = vpop.f32.mrf.mxu1  ;;  %9208 = vmatmul.mubr.msk.f32.vlgmr.msra.gmra.mxu1 %vm1795_vm6, %v5284_v46  ;;  %9210 = vmatprep.subr.mxu0 %v9705_v0  ;;  %v5285_v26 = vcombine.high %v5283_v9, %v5283_v9 }
0x21d7   :  { %8315 = vst [vmem:[%s11347_s3 + $0x8] sm:$0xf] %v5182_v19  ;;  %9216 = vmatpush3.msk.msra.mxu1 %vm2591_vm9, %v10185_v47  ;;  %9217 = vmatprep.mubr.msk.f32.mxu1 %vm9706_vm2, %v9705_v0  ;;  %v10872_v19 = vld [vmem:[%s11344_s2 + $0x100] sm:$0x7] }
0x21d8   :  { %9203 = vmatmul.mubr.msk.f32.vlgmr.msra.gmra.mxu0 %vm1795_vm6, %v5283_v9  ;;  %9225 = vmatprep.subr.mxu1 %v9705_v0  ;;  %v10883_v9 = vld [vmem:[%s11344_s2 + $0xf8] sm:$0xff]  ;;  %v10889_v56 = vld [vmem:[%s11344_s2 + $0xe0] sm:$0xff] }
0x21d9   :  { %9211 = vmatpush3.xpose.msk.msra.mxu0 %vm1795_vm6, %v10197_v54  ;;  %9212 = vmatprep.mubr.msk.f32.mxu0 %vm9706_vm2, %v9705_v0 }
0x21da   :  { %9220 = vmatprep.subr.mxu0 %v9705_v0 }
0x21dc   :  { %9213 = vmatmul.mubr.msk.f32.vlgmr.msra.gmra.mxu0 %vm1795_vm6, %v5285_v26  ;;  %v10897_v26 = vld [vmem:[%s11344_s2 + $0xf0] sm:$0xff] }
0x21dd   :  { %9221 = vmatpush3.msk.msra.mxu0 %vm2591_vm9, %v10190_v52  ;;  %9222 = vmatprep.mubr.msk.f32.mxu0 %vm9706_vm2, %v9705_v0 }
0x21de   :  { %9230 = vmatprep.subr.mxu0 %v9705_v0 }
0x2294   :  { %v5354_v60 = vpop.f32.mrf.mxu0 }
0x2295   :  { %v5574_v48 = vmul.f32 0.17149858, %v5354_v60  ;;  %v10903_v60 = vld [vmem:[%s11344_s2 + $0xd8] sm:$0xff] }
0x2296   :  { %v9199_v1 = vpop.f32.mrf.mxu0  ;;  %v5498_v3 = vpop.f32.mrf.mxu1 }
0x2297   :  { %v5578_v4 = vsel %vm2542_vm10, %v5574_v48, -inf  ;;  %v5576_v8 = vmul.f32 0.17149858, %v5498_v3  ;;  %v10928_v1 = vld [vmem:[%s11344_s2 + $0x158] sm:$0x7f]  ;;  %v10937_v3 = vld [vmem:[%s11344_s2 + $0xc0] sm:$0xff] }
0x2298   :  { %v9209_v5 = vpop.f32.mrf.mxu1  ;;  %5579 = vmax.xlane.f32.xlu1 %v5578_v4  ;;  %v5426_v6 = vpop.f32.mrf.mxu0  ;;  %v10943_v4 = vld [vmem:[%s11344_s2 + $0x150] sm:$0xff] }
0x2299   :  { %v5575_v13 = vmul.f32 0.17149858, %v5426_v6  ;;  %v5584_v51 = vsel %vm2542_vm10, %v5576_v8, -inf  ;;  %v10951_v5 = vld [vmem:[%s11344_s2 + $0xb8] sm:$0xff]  ;;  %v10957_v6 = vld [vmem:[%s11344_s2 + $0x148] sm:$0xff] }
0x229a   :  { %v9204_v7 = vpop.f32.mrf.mxu0 }
0x229b   :  { %v5581_v10 = vsel %vm2542_vm10, %v5575_v13, -inf  ;;  %v10974_v7 = vld [vmem:[%s11344_s2 + $0x138] sm:$0xff] }
0x229c   :  { %5582 = vmax.xlane.f32.xlu0 %v5581_v10  ;;  %v5570_v45 = vpop.f32.mrf.mxu0  ;;  %v10988_v10 = vld [vmem:[%s11344_s2 + $0x128] sm:$0xff] }
0x229d   :  { %v5577_v16 = vmul.f32 0.17149858, %v5570_v45  ;;  %v10995_v45 = vld [vmem:[%s11344_s2 + $0x120] sm:$0xff] }
0x229e   :  { %v9214_v14 = vpop.f32.mrf.mxu0 }
0x229f   :  { %v5587_v50 = vsel %vm2542_vm10, %v5577_v16, -inf }
0x22a0   :  { %5585 = vmax.xlane.f32.xlu0 %v5584_v51  ;;  %5588 = vmax.xlane.f32.xlu1 %v5587_v50 }
0x2321   :  { %v5580_v57 = vpop.xlane.xlu1 %5579 }
0x2322   :  { %v5590_v58 = vsub.f32 %v5574_v48, %v5580_v57  ;;  %v10912_v48 = vld [vmem:[%s11344_s2 + $0xd0] sm:$0xff] }
0x2324   :  { %v5594_v62 = vmul.f32 1.442695, %v5590_v58 }
0x2325   :  { %v5583_v15 = vpop.xlane.xlu0 %5582 }
0x2326   :  { %9614 = vpow2.f32 %v5594_v62  ;;  %v5591_v18 = vsub.f32 %v5575_v13, %v5583_v15  ;;  %v10965_v13 = vld [vmem:[%s11344_s2 + $0x140] sm:$0xff] }
0x2328   :  { %v5596_v55 = vmul.f32 1.442695, %v5591_v18 }
0x2329   :  { %v5586_v11 = vpop.xlane.xlu0 %5585  ;;  %v5589_v27 = vpop.xlane.xlu1 %5588 }
0x232a   :  { %9616 = vpow2.f32 %v5596_v55  ;;  %v5592_v25 = vsub.f32 %v5576_v8, %v5586_v11  ;;  %v5593_v49 = vsub.f32 %v5577_v16, %v5589_v27  ;;  %v10981_v8 = vld [vmem:[%s11344_s2 + $0x130] sm:$0xff]  ;;  %v11002_v16 = vld [vmem:[%s11344_s2 + $0x118] sm:$0xff] }
0x232c   :  { %v5598_v20 = vmul.f32 1.442695, %v5592_v25  ;;  %v5600_v22 = vmul.f32 1.442695, %v5593_v49 }
0x232e   :  { %9618 = vpow2.f32 %v5598_v20 }
0x232f   :  { %9620 = vpow2.f32 %v5600_v22 }
0x2333   :  { %v9615_v23 = vpop.eup %9614 }
0x2334   :  { %v5602_v24 = vsel %vm2542_vm10, %v9615_v23, 0.0 }
0x2335   :  { %5603 = vadd.xlane.f32.xlu0 %v5602_v24 }
0x2337   :  { %v9617_v28 = vpop.eup %9616 }
0x2338   :  { %v5605_v29 = vsel %vm2542_vm10, %v9617_v28, 0.0 }
0x2339   :  { %5606 = vadd.xlane.f32.xlu1 %v5605_v29  ;;  %v8316_v29 = vld [vmem:[%s11346_s1 + $0xc] sm:$0xf] }
0x233b   :  { %v9619_v30 = vpop.eup %9618 }
0x233c   :  { %v9621_v31 = vpop.eup %9620  ;;  %v5608_v32 = vsel %vm2542_vm10, %v9619_v30, 0.0 }
0x233d   :  { %5609 = vadd.xlane.f32.xlu0 %v5608_v32  ;;  %v5611_v33 = vsel %vm2542_vm10, %v9621_v31, 0.0 }
0x233e   :  { %5612 = vadd.xlane.f32.xlu1 %v5611_v33  ;;  %v11034_v33 = vld [vmem:[%s11344_s2 + $0x108] ss:$0 sm:$0xff] }
0x23be   :  { %v5604_v34 = vpop.xlane.xlu0 %5603 }
0x23bf   :  { %9622 = vrcp.f32 %v5604_v34 }
0x23c2   :  { %v5607_v35 = vpop.xlane.xlu1 %5606 }
0x23c3   :  { %9624 = vrcp.f32 %v5607_v35 }
0x23c6   :  { %v5610_v17 = vpop.xlane.xlu0 %5609 }
0x23c7   :  { %9626 = vrcp.f32 %v5610_v17  ;;  %v5613_v38 = vpop.xlane.xlu1 %5612 }
0x23c8   :  { %9628 = vrcp.f32 %v5613_v38 }
0x23cc   :  { %v9623_v40 = vpop.eup %9622 }
0x23cd   :  { %v5618_v41 = vmul.f32 %v9623_v40, %v9615_v23  ;;  %v11013_v23 = vld [vmem:[%s11344_s2 + $0x110] ss:$0 sm:$0xff] }
0x23cf   :  { %9218 = vmatmul.mubr.msk.f32.vlgmr.msra.gmra.mxu1 %vm2587_vm11, %v5618_v41 }
0x23d0   :  { %v9625_v43 = vpop.eup %9624  ;;  %9226 = vmatpush3.msk.msra.mxu1 %vm2591_vm9, %v10193_v53  ;;  %9227 = vmatprep.mubr.msk.f32.mxu1 %vm9706_vm2, %v9705_v0 }
0x23d1   :  { %v5619_v44 = vmul.f32 %v9625_v43, %v9617_v28  ;;  %9235 = vmatprep.subr.mxu1 %v9705_v0 }
0x23d3   :  { %9223 = vmatmul.mubr.msk.f32.vlgmr.msra.gmra.mxu0 %vm2587_vm11, %v5619_v44 }
0x23d4   :  { %v9627_v42 = vpop.eup %9626  ;;  %9231 = vmatpush3.msk.msra.mxu0 %vm2591_vm9, %v10197_v54  ;;  %9232 = vmatprep.mubr.msk.f32.mxu0 %vm9706_vm2, %v9705_v0 }
0x23d5   :  { %v9629_v59 = vpop.eup %9628  ;;  %9252 = vmatprep.subr.mxu0 %v9705_v0  ;;  %v5620_v61 = vmul.f32 %v9627_v42, %v9619_v30 }
0x23d6   :  { %v5621_v46 = vmul.f32 %v9629_v59, %v9621_v31 }
0x23d7   :  { %9228 = vmatmul.mubr.msk.f32.vlgmr.msra.gmra.mxu1 %vm2587_vm11, %v5620_v61 }
0x23d8   :  { %9233 = vmatmul.mubr.msk.f32.vlgmr.msra.gmra.mxu0 %vm2587_vm11, %v5621_v46  ;;  %9236 = vmatpush3.msk.msra.mxu1 %vm2105_vm7, %v10865_v2 }
0x23d9   :  { %9253 = vmatpush3.msk.msra.mxu0 %vm2100_vm5, %v10872_v19  ;;  %9258 = vmatprep.mubr.msk.f32.mxu0 %vm9706_vm2, %v9705_v0 }
0x23da   :  { %9254 = vmatprep.subr.mxu0 %v9705_v0  ;;  %9237 = vmatprep.subr.mxu1 %v9705_v0 }
0x23db   :  { %9255 = vmatpush3.msra.mxu0 %v10883_v9  ;;  %9238 = vmatpush3.msra.mxu1 %v10889_v56 }
0x23dc   :  { %9256 = vmatprep.subr.mxu0 %v9705_v0  ;;  %9239 = vmatprep.subr.mxu1 %v9705_v0 }
0x23dd   :  { %9257 = vmatpush3.msra.mxu0 %v10897_v26  ;;  %9240 = vmatpush3.msra.mxu1 %v10903_v60 }
0x23de   :  { %9259 = vmatmul.mubr.msk.f32.vlgmr.msra.gmra.mxu0 %vm2136_vm8, %v10791_v37  ;;  %9241 = vmatprep.subr.mxu1 %v9705_v0  ;;  %v10922_v37 = vld [vmem:[%s11344_s2 + $0xc8] sm:$0xff] }
0x23df   :  { %9242 = vmatpush3.msra.mxu1 %v10912_v48  ;;  %9249 = vmatprep.mubr.msk.f32.mxu1 %vm9706_vm2, %v9705_v0 }
0x23e0   :  { %9243 = vmatprep.subr.mxu1 %v9705_v0  ;;  %9261 = vmatprep.subr.mxu0 %v9705_v0 }
0x23e1   :  { %9244 = vmatpush3.msra.mxu1 %v10922_v37  ;;  %9262 = vmatpush3.msk.msra.mxu0 %vm3116_vm1, %v10928_v1 }
0x23e2   :  { %9245 = vmatprep.subr.mxu1 %v9705_v0  ;;  %9263 = vmatprep.subr.mxu0 %v9705_v0 }
0x23e3   :  { %9246 = vmatpush3.msra.mxu1 %v10937_v3  ;;  %9264 = vmatpush3.msra.mxu0 %v10943_v4 }
0x23e4   :  { %9247 = vmatprep.subr.mxu1 %v9705_v0  ;;  %9265 = vmatprep.subr.mxu0 %v9705_v0 }
0x23e5   :  { %9248 = vmatpush3.msra.mxu1 %v10951_v5  ;;  %9266 = vmatpush3.msra.mxu0 %v10957_v6 }
0x23e6   :  { %9267 = vmatprep.subr.mxu0 %v9705_v0  ;;  %9282 = vmatprep.subr.mxu1 %v9705_v0 }
0x23e7   :  { %9268 = vmatpush3.msra.mxu0 %v10965_v13  ;;  %9279 = vmatprep.mubr.msk.f32.mxu0 %vm9706_vm2, %v9705_v0 }
0x23e8   :  { %9269 = vmatprep.subr.mxu0 %v9705_v0 }
0x23e9   :  { %9270 = vmatpush3.msra.mxu0 %v10974_v7 }
0x23ea   :  { %9271 = vmatprep.subr.mxu0 %v9705_v0 }
0x23eb   :  { %9272 = vmatpush3.msra.mxu0 %v10981_v8 }
0x23ec   :  { %9273 = vmatprep.subr.mxu0 %v9705_v0 }
0x23ed   :  { %9274 = vmatpush3.msra.mxu0 %v10988_v10 }
0x23ee   :  { %9275 = vmatprep.subr.mxu0 %v9705_v0 }
0x23ef   :  { %9276 = vmatpush3.msra.mxu0 %v10995_v45 }
0x23f0   :  { %9277 = vmatprep.subr.mxu0 %v9705_v0 }
0x23f1   :  { %9278 = vmatpush3.msra.mxu0 %v11002_v16 }
0x23f2   :  { %9301 = vmatprep.subr.mxu0 %v9705_v0 }
0x248f   :  { %v5691_v14 = vpop.f32.mrf.mxu1 }
0x2491   :  { %v9219_v51 = vpop.f32.mrf.mxu1 }
0x2493   :  { %v5764_v50 = vpop.f32.mrf.mxu0 }
0x2494   :  { %v5918_v57 = vrot.slane %v5764_v50, 7 }
0x2495   :  { %v9224_v58 = vpop.f32.mrf.mxu0 }
0x2496   :  { %v5919_v55 = vsel %vm2894_vm12, %v5918_v57, %v5691_v14 }
0x2497   :  { %v5837_v62 = vpop.f32.mrf.mxu1 }
0x2498   :  { %v5920_v15 = vrot.slane %v5837_v62, 6  ;;  %v5910_v18 = vpop.f32.mrf.mxu0 }
0x2499   :  { %v5922_v11 = vrot.slane %v5910_v18, 5  ;;  %v9229_v27 = vpop.f32.mrf.mxu1 }
0x249a   :  { %v9234_v25 = vpop.f32.mrf.mxu0  ;;  %v5921_v49 = vsel %vm2897_vm13, %v5920_v15, %v5919_v55 }
0x249b   :  { %v5923_v20 = vsel %vm2900_vm14, %v5922_v11, %v5921_v49 }
0x249c   :  { %5924 = vrot.lane.b32.xlu0 %v5923_v20, %s9711_s10 }
0x249e   :  { %v6067_v22 = vpop.f32.mrf.mxu0 }
0x249f   :  { %v6068_v24 = vadd.f32 %v11013_v23, %v6067_v22 }
0x24a0   :  { %v9260_v28 = vpop.f32.mrf.mxu0 }
0x24a1   :  { %6079 = vrot.lane.b32.xlu1 %v6068_v24, %s9712_s11  ;;  %v11070_v28 = vld [vmem:[%s11344_s2 + $0x160] ss:$0 sm:$0xff] }
0x250e   :  { %v5925_v30 = vpop.permute.xlu0 %5924 }
0x250f   :  { %v5927_v31 = vsel %vm2905_vm15, %v8316_v29, %v5925_v30 }
0x2510   :  { %9250 = vmatmul.mubr.msk.f32.vlgmr.msra.gmra.mxu1 %vm2911_vm0, %v5927_v31 }
0x2511   :  { %9283 = vmatpush3.msk.msra.mxu1 %vm2100_vm5, %v10760_v63  ;;  %9288 = vmatprep.mubr.msk.f32.mxu1 %vm9706_vm2, %v9705_v0 }
0x2512   :  { %9284 = vmatprep.subr.mxu1 %v9705_v0 }
0x2513   :  { %9285 = vmatpush3.msra.mxu1 %v10770_v21  ;;  %v6080_v44 = vpop.permute.xlu1 %6079 }
0x2514   :  { %9286 = vmatprep.subr.mxu1 %v9705_v0 }
0x2515   :  { %9287 = vmatpush3.msra.mxu1 %v10777_v12 }
0x2516   :  { %9291 = vmatprep.subr.mxu1 %v9705_v0 }
0x25d0   :  { %v5997_v32 = vpop.f32.mrf.mxu1 }
0x25d1   :  { %v5998_v34 = vadd.f32 %v11034_v33, %v5997_v32 }
0x25d2   :  { %v9251_v35 = vpop.f32.mrf.mxu1 }
0x25d3   :  { %v6071_v17 = vadd.f32 %v6068_v24, %v5998_v34 }
0x25d5   :  { %v8339_v38 = vmul.f32 -1.442695, %v6071_v17 }
0x25d7   :  { %9630 = vpow2.f32 %v8339_v38 }
0x25e4   :  { %v9631_v40 = vpop.eup %9630 }
0x25e5   :  { %v6075_v41 = vadd.f32 1.0, %v9631_v40 }
0x25e7   :  { %9632 = vrcp.f32 %v6075_v41 }
0x25f4   :  { %v9633_v43 = vpop.eup %9632 }
0x25f5   :  { %v6082_v42 = vmul.f32 %v9633_v43, %v6080_v44  ;;  %v6089_v14 = vsub.f32 1.0, %v9633_v43  ;;  %v6095_v50 = vmul.f32 %v9633_v43, %v10786_v36 }
0x25f7   :  { %6084 = vrot.lane.b32.xlu1 %v6082_v42, %s9713_s16 }
0x2669   :  { %v6085_v59 = vpop.permute.xlu1 %6084 }
0x266a   :  { %v6087_v61 = vadd.f32 %v6085_v59, %v5998_v34 }
0x266c   :  { %9634 = vtanh.f32 %v6087_v61 }
0x2679   :  { %v9635_v46 = vpop.eup %9634 }
0x267a   :  { %6091 = vrot.lane.b32.xlu0 %v9635_v46, %s9715_s0 }
0x267e   :  { %6101 = vrot.lane.b32.xlu0 %v5923_v20, %s9714_s17 }
0x26ec   :  { %v6092_v51 = vpop.permute.xlu0 %6091 }
0x26ed   :  { %v6094_v57 = vmul.f32 %v6092_v51, %v6089_v14 }
0x26ef   :  { %v11041_v58 = vadd.f32 %v6095_v50, %v6094_v57 }
0x26f0   :  { %v6102_v36 = vpop.permute.xlu0 %6101 }
0x26f1   :  { %6098 = vrot.lane.b32.xlu1 %v11041_v58, %s9715_s0 }
0x26f5   :  { %6105 = vrot.lane.b32.xlu1 %v8316_v29, %s9716_s9 }
0x2763   :  { %v11046_v62 = vpop.permute.xlu1 %6098 }
0x2764   :  { %9289 = vmatmul.mubr.msk.f32.vlgmr.msra.gmra.mxu1 %vm2136_vm8, %v11046_v62  ;;  %v6108_v15 = vsel %vm2136_vm8, %v11046_v62, %v6102_v36 }
0x2765   :  { %9292 = vmatpush3.xpose.msk.msra.mxu1 %vm1795_vm6, %v10185_v47  ;;  %9293 = vmatprep.mubr.msk.f32.mxu1 %vm9706_vm2, %v9705_v0 }
0x2766   :  { %9296 = vmatprep.subr.mxu1 %v9705_v0 }
0x2767   :  { %v6106_v18 = vpop.permute.xlu1 %6105 }
0x2768   :  { %v6109_v55 = vsel %vm3106_vm3, %v6108_v15, %v6106_v18 }
0x2769   :  { %9280 = vmatmul.mubr.msk.f32.vlgmr.msra.gmra.mxu0 %vm3112_vm4, %v6109_v55 }
0x276a   :  { %9302 = vmatpush3.xpose.msk.msra.mxu0 %vm1795_vm6, %v10193_v53  ;;  %9303 = vmatprep.mubr.msk.f32.mxu0 %vm9706_vm2, %v9705_v0 }
0x276b   :  { %9311 = vmatprep.subr.mxu0 %v9705_v0 }
0x2824   :  { %v6255_v11 = vpop.f32.mrf.mxu1 }
0x2825   :  { %v6266_v27 = vrot.slane %v6255_v11, %v10139_v39 }
0x2826   :  { %v9290_v25 = vpop.f32.mrf.mxu1 }
0x2827   :  { %v6267_v49 = vcombine.high %v6266_v27, %v6266_v27  ;;  %v6274_v20 = vrot.slane %v6266_v27, %v10139_v39 }
0x2829   :  { %v6282_v22 = vcombine.high %v6274_v20, %v6274_v20  ;;  %v6179_v24 = vpop.f32.mrf.mxu0  ;;  %9294 = vmatmul.mubr.msk.f32.vlgmr.msra.gmra.mxu1 %vm1795_vm6, %v6274_v20  ;;  %v6281_v30 = vrot.slane %v6267_v49, %v10139_v39 }
0x282a   :  { %v6180_v29 = vadd.f32 %v11070_v28, %v6179_v24  ;;  %9297 = vmatpush3.xpose.msk.msra.mxu1 %vm1795_vm6, %v10190_v52  ;;  %9298 = vmatprep.mubr.msk.f32.mxu1 %vm9706_vm2, %v9705_v0 }
0x282b   :  { %v9281_v31 = vpop.f32.mrf.mxu0  ;;  %9304 = vmatmul.mubr.msk.f32.vlgmr.msra.gmra.mxu0 %vm1795_vm6, %v6282_v22  ;;  %9306 = vmatprep.subr.mxu1 %v9705_v0  ;;  %v6283_v32 = vcombine.high %v6281_v30, %v6281_v30 }
0x282c   :  { %8342 = vst [vmem:[%s11347_s3 + $0xc] sm:$0xf] %v6180_v29  ;;  %9312 = vmatpush3.msk.msra.mxu0 %vm2591_vm9, %v10185_v47  ;;  %9313 = vmatprep.mubr.msk.f32.mxu0 %vm9706_vm2, %v9705_v0 }
0x282d   :  { %9299 = vmatmul.mubr.msk.f32.vlgmr.msra.gmra.mxu1 %vm1795_vm6, %v6281_v30  ;;  %9321 = vmatprep.subr.mxu0 %v9705_v0 }
0x282e   :  { %9307 = vmatpush3.xpose.msk.msra.mxu1 %vm1795_vm6, %v10197_v54  ;;  %9308 = vmatprep.mubr.msk.f32.mxu1 %vm9706_vm2, %v9705_v0 }
0x282f   :  { %9316 = vmatprep.subr.mxu1 %v9705_v0 }
0x2831   :  { %9309 = vmatmul.mubr.msk.f32.vlgmr.msra.gmra.mxu1 %vm1795_vm6, %v6283_v32 }
0x2832   :  { %9317 = vmatpush3.msk.msra.mxu1 %vm2591_vm9, %v10190_v52  ;;  %9318 = vmatprep.mubr.msk.f32.mxu1 %vm9706_vm2, %v9705_v0 }
0x2833   :  { %9326 = vmatprep.subr.mxu1 %v9705_v0 }
0x28e9   :  { %v6352_v34 = vpop.f32.mrf.mxu1 }
0x28ea   :  { %v6572_v35 = vmul.f32 0.17149858, %v6352_v34 }
0x28eb   :  { %v9295_v17 = vpop.f32.mrf.mxu1  ;;  %v6496_v38 = vpop.f32.mrf.mxu0 }
0x28ec   :  { %v6574_v40 = vmul.f32 0.17149858, %v6496_v38  ;;  %v6576_v41 = vsel %vm2542_vm10, %v6572_v35, -inf }
0x28ed   :  { %6577 = vmax.xlane.f32.xlu0 %v6576_v41  ;;  %v6424_v43 = vpop.f32.mrf.mxu1  ;;  %v9305_v44 = vpop.f32.mrf.mxu0 }
0x28ee   :  { %v6573_v42 = vmul.f32 0.17149858, %v6424_v43  ;;  %v6582_v46 = vsel %vm2542_vm10, %v6574_v40, -inf }
0x28ef   :  { %v9300_v59 = vpop.f32.mrf.mxu1 }
0x28f0   :  { %v6579_v61 = vsel %vm2542_vm10, %v6573_v42, -inf }
0x28f1   :  { %6580 = vmax.xlane.f32.xlu1 %v6579_v61  ;;  %v6568_v14 = vpop.f32.mrf.mxu1  ;;  %6583 = vmax.xlane.f32.xlu0 %v6582_v46 }
0x28f2   :  { %v6575_v51 = vmul.f32 0.17149858, %v6568_v14 }
0x28f3   :  { %v9310_v50 = vpop.f32.mrf.mxu1 }
0x28f4   :  { %v6585_v57 = vsel %vm2542_vm10, %v6575_v51, -inf }
0x28f5   :  { %6586 = vmax.xlane.f32.xlu0 %v6585_v57 }
0x2976   :  { %v6578_v36 = vpop.xlane.xlu0 %6577 }
0x2977   :  { %v6588_v15 = vsub.f32 %v6572_v35, %v6578_v36 }
0x2979   :  { %v6592_v18 = vmul.f32 1.442695, %v6588_v15 }
0x297a   :  { %v6581_v55 = vpop.xlane.xlu1 %6580  ;;  %v6584_v11 = vpop.xlane.xlu0 %6583 }
0x297b   :  { %9636 = vpow2.f32 %v6592_v18  ;;  %v6589_v27 = vsub.f32 %v6573_v42, %v6581_v55  ;;  %v6590_v25 = vsub.f32 %v6574_v40, %v6584_v11 }
0x297d   :  { %v6594_v49 = vmul.f32 1.442695, %v6589_v27  ;;  %v6596_v20 = vmul.f32 1.442695, %v6590_v25 }
0x297e   :  { %v6587_v22 = vpop.xlane.xlu0 %6586 }
0x297f   :  { %9638 = vpow2.f32 %v6594_v49  ;;  %v6591_v24 = vsub.f32 %v6575_v51, %v6587_v22 }
0x2980   :  { %9640 = vpow2.f32 %v6596_v20 }
0x2981   :  { %v6598_v29 = vmul.f32 1.442695, %v6591_v24 }
0x2983   :  { %9642 = vpow2.f32 %v6598_v29 }
0x2988   :  { %v9637_v30 = vpop.eup %9636 }
0x2989   :  { %v6600_v31 = vsel %vm2542_vm10, %v9637_v30, 0.0 }
0x298a   :  { %6601 = vadd.xlane.f32.xlu1 %v6600_v31 }
0x298c   :  { %v9639_v32 = vpop.eup %9638 }
0x298d   :  { %v9641_v34 = vpop.eup %9640  ;;  %v6603_v35 = vsel %vm2542_vm10, %v9639_v32, 0.0 }
0x298e   :  { %6604 = vadd.xlane.f32.xlu0 %v6603_v35  ;;  %v6606_v17 = vsel %vm2542_vm10, %v9641_v34, 0.0 }
0x298f   :  { %6607 = vadd.xlane.f32.xlu1 %v6606_v17  ;;  %v8343_v17 = vld [vmem:[%s11346_s1 + $0x10] sm:$0xf] }
0x2990   :  { %v9643_v38 = vpop.eup %9642 }
0x2991   :  { %v6609_v40 = vsel %vm2542_vm10, %v9643_v38, 0.0 }
0x2992   :  { %6610 = vadd.xlane.f32.xlu0 %v6609_v40 }
0x2a13   :  { %v6602_v41 = vpop.xlane.xlu1 %6601 }
0x2a14   :  { %9644 = vrcp.f32 %v6602_v41 }
0x2a17   :  { %v6605_v43 = vpop.xlane.xlu0 %6604 }
0x2a18   :  { %v6608_v44 = vpop.xlane.xlu1 %6607  ;;  %9646 = vrcp.f32 %v6605_v43 }
0x2a19   :  { %9648 = vrcp.f32 %v6608_v44 }
0x2a1b   :  { %v6611_v42 = vpop.xlane.xlu0 %6610 }
0x2a1c   :  { %9650 = vrcp.f32 %v6611_v42 }
0x2a21   :  { %v9645_v59 = vpop.eup %9644 }
0x2a22   :  { %v6616_v61 = vmul.f32 %v9645_v59, %v9637_v30 }
0x2a24   :  { %9314 = vmatmul.mubr.msk.f32.vlgmr.msra.gmra.mxu0 %vm2587_vm11, %v6616_v61 }
0x2a25   :  { %v9647_v46 = vpop.eup %9646  ;;  %9322 = vmatpush3.msk.msra.mxu0 %vm2591_vm9, %v10193_v53  ;;  %9323 = vmatprep.mubr.msk.f32.mxu0 %vm9706_vm2, %v9705_v0 }
0x2a26   :  { %v9649_v14 = vpop.eup %9648  ;;  %v6617_v51 = vmul.f32 %v9647_v46, %v9639_v32  ;;  %9331 = vmatprep.subr.mxu0 %v9705_v0 }
0x2a27   :  { %v6618_v50 = vmul.f32 %v9649_v14, %v9641_v34 }
0x2a28   :  { %9319 = vmatmul.mubr.msk.f32.vlgmr.msra.gmra.mxu1 %vm2587_vm11, %v6617_v51 }
0x2a29   :  { %v9651_v57 = vpop.eup %9650  ;;  %9324 = vmatmul.mubr.msk.f32.vlgmr.msra.gmra.mxu0 %vm2587_vm11, %v6618_v50  ;;  %9327 = vmatpush3.msk.msra.mxu1 %vm2591_vm9, %v10197_v54 }
0x2a2a   :  { %9328 = vmatprep.mubr.msk.f32.mxu1 %vm9706_vm2, %v9705_v0  ;;  %9348 = vmatprep.subr.mxu1 %v9705_v0  ;;  %v6619_v36 = vmul.f32 %v9651_v57, %v9643_v38 }
0x2a2b   :  { %9332 = vmatpush3.msk.msra.mxu0 %vm2105_vm7, %v10865_v2  ;;  %9345 = vmatprep.mubr.msk.f32.mxu0 %vm9706_vm2, %v9705_v0 }
0x2a2c   :  { %9329 = vmatmul.mubr.msk.f32.vlgmr.msra.gmra.mxu1 %vm2587_vm11, %v6619_v36  ;;  %9333 = vmatprep.subr.mxu0 %v9705_v0 }
0x2a2d   :  { %9349 = vmatpush3.msk.msra.mxu1 %vm2100_vm5, %v10872_v19  ;;  %9354 = vmatprep.mubr.msk.f32.mxu1 %vm9706_vm2, %v9705_v0 }
0x2a2e   :  { %9350 = vmatprep.subr.mxu1 %v9705_v0  ;;  %9334 = vmatpush3.msra.mxu0 %v10889_v56 }
0x2a2f   :  { %9351 = vmatpush3.msra.mxu1 %v10883_v9  ;;  %9335 = vmatprep.subr.mxu0 %v9705_v0 }
0x2a30   :  { %9352 = vmatprep.subr.mxu1 %v9705_v0  ;;  %9336 = vmatpush3.msra.mxu0 %v10903_v60 }
0x2a31   :  { %9353 = vmatpush3.msra.mxu1 %v10897_v26  ;;  %9337 = vmatprep.subr.mxu0 %v9705_v0 }
0x2a32   :  { %9355 = vmatmul.mubr.msk.f32.vlgmr.msra.gmra.mxu1 %vm2136_vm8, %v11046_v62  ;;  %9338 = vmatpush3.msra.mxu0 %v10912_v48 }
0x2a33   :  { %9339 = vmatprep.subr.mxu0 %v9705_v0  ;;  %9357 = vmatprep.subr.mxu1 %v9705_v0 }
0x2a34   :  { %9340 = vmatpush3.msra.mxu0 %v10922_v37  ;;  %9358 = vmatpush3.msk.msra.mxu1 %vm3116_vm1, %v10928_v1 }
0x2a35   :  { %9341 = vmatprep.subr.mxu0 %v9705_v0  ;;  %9359 = vmatprep.subr.mxu1 %v9705_v0 }
0x2a36   :  { %9342 = vmatpush3.msra.mxu0 %v10937_v3  ;;  %9360 = vmatpush3.msra.mxu1 %v10943_v4 }
0x2a37   :  { %9343 = vmatprep.subr.mxu0 %v9705_v0  ;;  %9361 = vmatprep.subr.mxu1 %v9705_v0 }
0x2a38   :  { %9344 = vmatpush3.msra.mxu0 %v10951_v5  ;;  %9362 = vmatpush3.msra.mxu1 %v10957_v6 }
0x2a39   :  { %9363 = vmatprep.subr.mxu1 %v9705_v0  ;;  %9378 = vmatprep.subr.mxu0 %v9705_v0 }
0x2a3a   :  { %9364 = vmatpush3.msra.mxu1 %v10965_v13  ;;  %9375 = vmatprep.mubr.msk.f32.mxu1 %vm9706_vm2, %v9705_v0 }
0x2a3b   :  { %9365 = vmatprep.subr.mxu1 %v9705_v0 }
0x2a3c   :  { %9366 = vmatpush3.msra.mxu1 %v10974_v7 }
0x2a3d   :  { %9367 = vmatprep.subr.mxu1 %v9705_v0 }
0x2a3e   :  { %9368 = vmatpush3.msra.mxu1 %v10981_v8 }
0x2a3f   :  { %9369 = vmatprep.subr.mxu1 %v9705_v0 }
0x2a40   :  { %9370 = vmatpush3.msra.mxu1 %v10988_v10 }
0x2a41   :  { %9371 = vmatprep.subr.mxu1 %v9705_v0 }
0x2a42   :  { %9372 = vmatpush3.msra.mxu1 %v10995_v45 }
0x2a43   :  { %9373 = vmatprep.subr.mxu1 %v9705_v0 }
0x2a44   :  { %9374 = vmatpush3.msra.mxu1 %v11002_v16 }
0x2a45   :  { %9397 = vmatprep.subr.mxu1 %v9705_v0 }
0x2ae4   :  { %v6689_v62 = vpop.f32.mrf.mxu0 }
0x2ae6   :  { %v9315_v15 = vpop.f32.mrf.mxu0 }
0x2ae8   :  { %v6762_v18 = vpop.f32.mrf.mxu1 }
0x2ae9   :  { %v6916_v55 = vrot.slane %v6762_v18, 7  ;;  %v6835_v11 = vpop.f32.mrf.mxu0 }
0x2aea   :  { %v6918_v27 = vrot.slane %v6835_v11, 6  ;;  %v9320_v25 = vpop.f32.mrf.mxu1 }
0x2aeb   :  { %v6917_v49 = vsel %vm2894_vm12, %v6916_v55, %v6689_v62  ;;  %v9325_v20 = vpop.f32.mrf.mxu0 }
0x2aec   :  { %v6908_v22 = vpop.f32.mrf.mxu1  ;;  %v6919_v29 = vsel %vm2897_vm13, %v6918_v27, %v6917_v49 }
0x2aed   :  { %v6920_v24 = vrot.slane %v6908_v22, 5 }
0x2aee   :  { %v9330_v30 = vpop.f32.mrf.mxu1 }
0x2aef   :  { %v6921_v31 = vsel %vm2900_vm14, %v6920_v24, %v6919_v29 }
0x2af0   :  { %6922 = vrot.lane.b32.xlu1 %v6921_v31, %s9711_s10 }
0x2af2   :  { %v7065_v32 = vpop.f32.mrf.mxu1 }
0x2af3   :  { %v7066_v34 = vadd.f32 %v11013_v23, %v7065_v32 }
0x2af4   :  { %v9356_v35 = vpop.f32.mrf.mxu1 }
0x2af5   :  { %7077 = vrot.lane.b32.xlu0 %v7066_v34, %s9712_s11 }
0x2b62   :  { %v6923_v38 = vpop.permute.xlu1 %6922 }
0x2b63   :  { %v6925_v40 = vsel %vm2905_vm15, %v8343_v17, %v6923_v38 }
0x2b64   :  { %9346 = vmatmul.mubr.msk.f32.vlgmr.msra.gmra.mxu0 %vm2911_vm0, %v6925_v40 }
0x2b65   :  { %9379 = vmatpush3.msk.msra.mxu0 %vm2100_vm5, %v10760_v63  ;;  %9384 = vmatprep.mubr.msk.f32.mxu0 %vm9706_vm2, %v9705_v0 }
0x2b66   :  { %9380 = vmatprep.subr.mxu0 %v9705_v0 }
0x2b67   :  { %9381 = vmatpush3.msra.mxu0 %v10770_v21  ;;  %v7078_v14 = vpop.permute.xlu0 %7077 }
0x2b68   :  { %9382 = vmatprep.subr.mxu0 %v9705_v0 }
0x2b69   :  { %9383 = vmatpush3.msra.mxu0 %v10777_v12 }
0x2b6a   :  { %9387 = vmatprep.subr.mxu0 %v9705_v0 }
0x2c24   :  { %v6995_v41 = vpop.f32.mrf.mxu0 }
0x2c25   :  { %v6996_v43 = vadd.f32 %v11034_v33, %v6995_v41 }
0x2c26   :  { %v9347_v44 = vpop.f32.mrf.mxu0 }
0x2c27   :  { %v7069_v42 = vadd.f32 %v7066_v34, %v6996_v43 }
0x2c29   :  { %v8366_v59 = vmul.f32 -1.442695, %v7069_v42 }
0x2c2b   :  { %9652 = vpow2.f32 %v8366_v59 }
0x2c38   :  { %v9653_v63 = vpop.eup %9652 }
0x2c39   :  { %v7073_v61 = vadd.f32 1.0, %v9653_v63 }
0x2c3b   :  { %9654 = vrcp.f32 %v7073_v61 }
0x2c48   :  { %v9655_v46 = vpop.eup %9654 }
0x2c49   :  { %v7080_v51 = vmul.f32 %v9655_v46, %v7078_v14  ;;  %v7087_v57 = vsub.f32 1.0, %v9655_v46  ;;  %v7093_v62 = vmul.f32 %v9655_v46, %v11041_v58 }
0x2c4b   :  { %7082 = vrot.lane.b32.xlu1 %v7080_v51, %s9713_s16 }
0x2cbd   :  { %v7083_v21 = vpop.permute.xlu1 %7082 }
0x2cbe   :  { %v7085_v50 = vadd.f32 %v7083_v21, %v6996_v43 }
0x2cc0   :  { %9656 = vtanh.f32 %v7085_v50 }
0x2ccd   :  { %v9657_v12 = vpop.eup %9656 }
0x2cce   :  { %7089 = vrot.lane.b32.xlu1 %v9657_v12, %s9715_s0 }
0x2cd2   :  { %7099 = vrot.lane.b32.xlu1 %v6921_v31, %s9714_s17 }
0x2d40   :  { %v7090_v36 = vpop.permute.xlu1 %7089 }
0x2d41   :  { %v7092_v15 = vmul.f32 %v7090_v36, %v7087_v57 }
0x2d43   :  { %v11196_v18 = vadd.f32 %v7093_v62, %v7092_v15 }
0x2d44   :  { %v7100_v58 = vpop.permute.xlu1 %7099 }
0x2d45   :  { %7096 = vrot.lane.b32.xlu0 %v11196_v18, %s9715_s0 }
0x2d49   :  { %7103 = vrot.lane.b32.xlu0 %v8343_v17, %s9716_s9 }
0x2db7   :  { %v11201_v55 = vpop.permute.xlu0 %7096 }
0x2db8   :  { %9385 = vmatmul.mubr.msk.f32.vlgmr.msra.gmra.mxu0 %vm2136_vm8, %v11201_v55  ;;  %v7106_v11 = vsel %vm2136_vm8, %v11201_v55, %v7100_v58 }
0x2db9   :  { %9388 = vmatpush3.xpose.msk.msra.mxu0 %vm1795_vm6, %v10185_v47  ;;  %9389 = vmatprep.mubr.msk.f32.mxu0 %vm9706_vm2, %v9705_v0 }
0x2dba   :  { %9392 = vmatprep.subr.mxu0 %v9705_v0 }
0x2dbb   :  { %v7104_v27 = vpop.permute.xlu0 %7103 }
0x2dbc   :  { %v7107_v25 = vsel %vm3106_vm3, %v7106_v11, %v7104_v27 }
0x2dbd   :  { %9376 = vmatmul.mubr.msk.f32.vlgmr.msra.gmra.mxu1 %vm3112_vm4, %v7107_v25 }
0x2dbe   :  { %9398 = vmatpush3.xpose.msk.msra.mxu1 %vm1795_vm6, %v10193_v53  ;;  %9399 = vmatprep.mubr.msk.f32.mxu1 %vm9706_vm2, %v9705_v0 }
0x2dbf   :  { %9407 = vmatprep.subr.mxu1 %v9705_v0 }
0x2e78   :  { %v7253_v49 = vpop.f32.mrf.mxu0 }
0x2e79   :  { %v7264_v20 = vrot.slane %v7253_v49, %v10139_v39 }
0x2e7a   :  { %v9386_v22 = vpop.f32.mrf.mxu0 }
0x2e7b   :  { %v7265_v24 = vcombine.high %v7264_v20, %v7264_v20  ;;  %v7272_v29 = vrot.slane %v7264_v20, %v10139_v39 }
0x2e7d   :  { %v7280_v30 = vcombine.high %v7272_v29, %v7272_v29  ;;  %v7177_v31 = vpop.f32.mrf.mxu1  ;;  %9390 = vmatmul.mubr.msk.f32.vlgmr.msra.gmra.mxu0 %vm1795_vm6, %v7272_v29  ;;  %v7279_v34 = vrot.slane %v7265_v24, %v10139_v39 }
0x2e7e   :  { %v7178_v32 = vadd.f32 %v11070_v28, %v7177_v31  ;;  %9393 = vmatpush3.xpose.msk.msra.mxu0 %vm1795_vm6, %v10190_v52  ;;  %9394 = vmatprep.mubr.msk.f32.mxu0 %vm9706_vm2, %v9705_v0 }
0x2e7f   :  { %v9377_v35 = vpop.f32.mrf.mxu1  ;;  %9400 = vmatmul.mubr.msk.f32.vlgmr.msra.gmra.mxu1 %vm1795_vm6, %v7280_v30  ;;  %9402 = vmatprep.subr.mxu0 %v9705_v0  ;;  %v7281_v39 = vcombine.high %v7279_v34, %v7279_v34 }
0x2e80   :  { %8369 = vst [vmem:[%s11347_s3 + $0x10] sm:$0xf] %v7178_v32  ;;  %9408 = vmatpush3.msk.msra.mxu1 %vm2591_vm9, %v10185_v47  ;;  %9409 = vmatprep.mubr.msk.f32.mxu1 %vm9706_vm2, %v9705_v0 }
0x2e81   :  { %9395 = vmatmul.mubr.msk.f32.vlgmr.msra.gmra.mxu0 %vm1795_vm6, %v7279_v34  ;;  %9417 = vmatprep.subr.mxu1 %v9705_v0 }
0x2e82   :  { %9403 = vmatpush3.xpose.msk.msra.mxu0 %vm1795_vm6, %v10197_v54  ;;  %9404 = vmatprep.mubr.msk.f32.mxu0 %vm9706_vm2, %v9705_v0 }
0x2e83   :  { %9412 = vmatprep.subr.mxu0 %v9705_v0 }
0x2e85   :  { %9405 = vmatmul.mubr.msk.f32.vlgmr.msra.gmra.mxu0 %vm1795_vm6, %v7281_v39 }
0x2e86   :  { %9413 = vmatpush3.msk.msra.mxu0 %vm2591_vm9, %v10190_v52  ;;  %9414 = vmatprep.mubr.msk.f32.mxu0 %vm9706_vm2, %v9705_v0 }
0x2e87   :  { %9422 = vmatprep.subr.mxu0 %v9705_v0 }
0x2f3d   :  { %v7350_v47 = vpop.f32.mrf.mxu0 }
0x2f3e   :  { %v7570_v17 = vmul.f32 0.17149858, %v7350_v47 }
0x2f3f   :  { %v9391_v38 = vpop.f32.mrf.mxu0  ;;  %v7494_v40 = vpop.f32.mrf.mxu1 }
0x2f40   :  { %v7574_v41 = vsel %vm2542_vm10, %v7570_v17, -inf  ;;  %v7572_v63 = vmul.f32 0.17149858, %v7494_v40 }
0x2f41   :  { %v9401_v43 = vpop.f32.mrf.mxu1  ;;  %7575 = vmax.xlane.f32.xlu1 %v7574_v41  ;;  %v7422_v44 = vpop.f32.mrf.mxu0 }
0x2f42   :  { %v7571_v42 = vmul.f32 0.17149858, %v7422_v44  ;;  %v7580_v51 = vsel %vm2542_vm10, %v7572_v63, -inf }
0x2f43   :  { %v9396_v59 = vpop.f32.mrf.mxu0 }
0x2f44   :  { %v7577_v61 = vsel %vm2542_vm10, %v7571_v42, -inf }
0x2f45   :  { %7578 = vmax.xlane.f32.xlu0 %v7577_v61  ;;  %v7566_v52 = vpop.f32.mrf.mxu0 }
0x2f46   :  { %v7573_v46 = vmul.f32 0.17149858, %v7566_v52 }
0x2f47   :  { %v9406_v14 = vpop.f32.mrf.mxu0 }
0x2f48   :  { %v7583_v21 = vsel %vm2542_vm10, %v7573_v46, -inf }
0x2f49   :  { %7581 = vmax.xlane.f32.xlu0 %v7580_v51  ;;  %7584 = vmax.xlane.f32.xlu1 %v7583_v21 }
0x2fca   :  { %v7576_v50 = vpop.xlane.xlu1 %7575 }
0x2fcb   :  { %v7586_v12 = vsub.f32 %v7570_v17, %v7576_v50 }
0x2fcd   :  { %v7590_v57 = vmul.f32 1.442695, %v7586_v12 }
0x2fce   :  { %v7579_v36 = vpop.xlane.xlu0 %7578 }
0x2fcf   :  { %9658 = vpow2.f32 %v7590_v57  ;;  %v7587_v62 = vsub.f32 %v7571_v42, %v7579_v36 }
0x2fd1   :  { %v7592_v15 = vmul.f32 1.442695, %v7587_v62 }
0x2fd2   :  { %v7582_v58 = vpop.xlane.xlu0 %7581  ;;  %v7585_v11 = vpop.xlane.xlu1 %7584 }
0x2fd3   :  { %9660 = vpow2.f32 %v7592_v15  ;;  %v7588_v27 = vsub.f32 %v7572_v63, %v7582_v58  ;;  %v7589_v25 = vsub.f32 %v7573_v46, %v7585_v11 }
0x2fd5   :  { %v7594_v49 = vmul.f32 1.442695, %v7588_v27  ;;  %v7596_v20 = vmul.f32 1.442695, %v7589_v25 }
0x2fd7   :  { %9662 = vpow2.f32 %v7594_v49 }
0x2fd8   :  { %9664 = vpow2.f32 %v7596_v20 }
0x2fdc   :  { %v9659_v22 = vpop.eup %9658 }
0x2fdd   :  { %v7598_v24 = vsel %vm2542_vm10, %v9659_v22, 0.0 }
0x2fde   :  { %7599 = vadd.xlane.f32.xlu0 %v7598_v24 }
0x2fe0   :  { %v9661_v29 = vpop.eup %9660 }
0x2fe1   :  { %v7601_v30 = vsel %vm2542_vm10, %v9661_v29, 0.0 }
0x2fe2   :  { %7602 = vadd.xlane.f32.xlu1 %v7601_v30 }
0x2fe4   :  { %v9663_v31 = vpop.eup %9662 }
0x2fe5   :  { %v9665_v32 = vpop.eup %9664  ;;  %v7604_v34 = vsel %vm2542_vm10, %v9663_v31, 0.0 }
0x2fe6   :  { %7605 = vadd.xlane.f32.xlu0 %v7604_v34  ;;  %v7607_v35 = vsel %vm2542_vm10, %v9665_v32, 0.0 }
0x2fe7   :  { %7608 = vadd.xlane.f32.xlu1 %v7607_v35 }
0x3067   :  { %v7600_v39 = vpop.xlane.xlu0 %7599 }
0x3068   :  { %9666 = vrcp.f32 %v7600_v39 }
0x306b   :  { %v7603_v47 = vpop.xlane.xlu1 %7602 }
0x306c   :  { %9668 = vrcp.f32 %v7603_v47 }
0x306f   :  { %v7606_v17 = vpop.xlane.xlu0 %7605 }
0x3070   :  { %9670 = vrcp.f32 %v7606_v17  ;;  %v7609_v38 = vpop.xlane.xlu1 %7608 }
0x3071   :  { %9672 = vrcp.f32 %v7609_v38 }
0x3075   :  { %v9667_v40 = vpop.eup %9666 }
0x3076   :  { %v7614_v41 = vmul.f32 %v9667_v40, %v9659_v22 }
0x3078   :  { %9410 = vmatmul.mubr.msk.f32.vlgmr.msra.gmra.mxu1 %vm2587_vm11, %v7614_v41 }
0x3079   :  { %v9669_v43 = vpop.eup %9668  ;;  %9418 = vmatpush3.msk.msra.mxu1 %vm2591_vm9, %v10193_v53  ;;  %9419 = vmatprep.mubr.msk.f32.mxu1 %vm9706_vm2, %v9705_v0 }
0x307a   :  { %v7615_v44 = vmul.f32 %v9669_v43, %v9661_v29  ;;  %9427 = vmatprep.subr.mxu1 %v9705_v0 }
0x307c   :  { %9415 = vmatmul.mubr.msk.f32.vlgmr.msra.gmra.mxu0 %vm2587_vm11, %v7615_v44 }
0x307d   :  { %v9671_v42 = vpop.eup %9670  ;;  %9423 = vmatpush3.msk.msra.mxu0 %vm2591_vm9, %v10197_v54  ;;  %9424 = vmatprep.mubr.msk.f32.mxu0 %vm9706_vm2, %v9705_v0 }
0x307e   :  { %v9673_v59 = vpop.eup %9672  ;;  %9444 = vmatprep.subr.mxu0 %v9705_v0  ;;  %v7616_v63 = vmul.f32 %v9671_v42, %v9663_v31 }
0x307f   :  { %v7617_v53 = vmul.f32 %v9673_v59, %v9665_v32 }
0x3080   :  { %9420 = vmatmul.mubr.msk.f32.vlgmr.msra.gmra.mxu1 %vm2587_vm11, %v7616_v63 }
0x3081   :  { %9425 = vmatmul.mubr.msk.f32.vlgmr.msra.gmra.mxu0 %vm2587_vm11, %v7617_v53  ;;  %9428 = vmatpush3.msk.msra.mxu1 %vm2105_vm7, %v10865_v2 }
0x3082   :  { %9445 = vmatpush3.msk.msra.mxu0 %vm2100_vm5, %v10872_v19  ;;  %9450 = vmatprep.mubr.msk.f32.mxu0 %vm9706_vm2, %v9705_v0 }
0x3083   :  { %9446 = vmatprep.subr.mxu0 %v9705_v0  ;;  %9429 = vmatprep.subr.mxu1 %v9705_v0 }
0x3084   :  { %9447 = vmatpush3.msra.mxu0 %v10883_v9  ;;  %9430 = vmatpush3.msra.mxu1 %v10889_v56 }
0x3085   :  { %9448 = vmatprep.subr.mxu0 %v9705_v0  ;;  %9431 = vmatprep.subr.mxu1 %v9705_v0 }
0x3086   :  { %9449 = vmatpush3.msra.mxu0 %v10897_v26  ;;  %9432 = vmatpush3.msra.mxu1 %v10903_v60 }
0x3087   :  { %9451 = vmatmul.mubr.msk.f32.vlgmr.msra.gmra.mxu0 %vm2136_vm8, %v11201_v55  ;;  %9433 = vmatprep.subr.mxu1 %v9705_v0 }
0x3088   :  { %9434 = vmatpush3.msra.mxu1 %v10912_v48  ;;  %9441 = vmatprep.mubr.msk.f32.mxu1 %vm9706_vm2, %v9705_v0 }
0x3089   :  { %9435 = vmatprep.subr.mxu1 %v9705_v0  ;;  %9453 = vmatprep.subr.mxu0 %v9705_v0 }
0x308a   :  { %9436 = vmatpush3.msra.mxu1 %v10922_v37  ;;  %9454 = vmatpush3.msk.msra.mxu0 %vm3116_vm1, %v10928_v1 }
0x308b   :  { %9437 = vmatprep.subr.mxu1 %v9705_v0  ;;  %9455 = vmatprep.subr.mxu0 %v9705_v0 }
0x308c   :  { %9438 = vmatpush3.msra.mxu1 %v10937_v3  ;;  %9456 = vmatpush3.msra.mxu0 %v10943_v4 }
0x308d   :  { %9439 = vmatprep.subr.mxu1 %v9705_v0  ;;  %9457 = vmatprep.subr.mxu0 %v9705_v0 }
0x308e   :  { %9440 = vmatpush3.msra.mxu1 %v10951_v5  ;;  %9458 = vmatpush3.msra.mxu0 %v10957_v6 }
0x308f   :  { %9459 = vmatprep.subr.mxu0 %v9705_v0  ;;  %9471 = vmatprep.mubr.msk.f32.mxu0 %vm9706_vm2, %v9705_v0 }
0x3090   :  { %9460 = vmatpush3.msra.mxu0 %v10965_v13 }
0x3091   :  { %9461 = vmatprep.subr.mxu0 %v9705_v0 }
0x3092   :  { %9462 = vmatpush3.msra.mxu0 %v10974_v7 }
0x3093   :  { %9463 = vmatprep.subr.mxu0 %v9705_v0 }
0x3094   :  { %9464 = vmatpush3.msra.mxu0 %v10981_v8  ;;  %v8370_v8 = vld [vmem:[%s11346_s1 + $0x14] sm:$0xf] }
0x3095   :  { %9465 = vmatprep.subr.mxu0 %v9705_v0 }
0x3096   :  { %9466 = vmatpush3.msra.mxu0 %v10988_v10 }
0x3097   :  { %9467 = vmatprep.subr.mxu0 %v9705_v0 }
0x3098   :  { %9468 = vmatpush3.msra.mxu0 %v10995_v45 }
0x3099   :  { %9469 = vmatprep.subr.mxu0 %v9705_v0 }
0x309a   :  { %9470 = vmatpush3.msra.mxu0 %v11002_v16 }
0x3138   :  { %v7687_v54 = vpop.f32.mrf.mxu1 }
0x313a   :  { %v9411_v2 = vpop.f32.mrf.mxu1 }
0x313c   :  { %v7760_v19 = vpop.f32.mrf.mxu0 }
0x313d   :  { %v7914_v9 = vrot.slane %v7760_v19, 7 }
0x313e   :  { %v9416_v56 = vpop.f32.mrf.mxu0 }
0x313f   :  { %v7915_v37 = vsel %vm2894_vm12, %v7914_v9, %v7687_v54 }
0x3140   :  { %v7833_v26 = vpop.f32.mrf.mxu1 }
0x3141   :  { %v7916_v60 = vrot.slane %v7833_v26, 6  ;;  %v7906_v48 = vpop.f32.mrf.mxu0 }
0x3142   :  { %v7918_v1 = vrot.slane %v7906_v48, 5  ;;  %v9421_v3 = vpop.f32.mrf.mxu1 }
0x3143   :  { %v7917_v4 = vsel %vm2897_vm13, %v7916_v60, %v7915_v37  ;;  %v9426_v5 = vpop.f32.mrf.mxu0 }
0x3144   :  { %v7919_v6 = vsel %vm2900_vm14, %v7918_v1, %v7917_v4 }
0x3145   :  { %7920 = vrot.lane.b32.xlu0 %v7919_v6, %s9711_s10 }
0x3147   :  { %v8063_v0 = vpop.f32.mrf.mxu0 }
0x3148   :  { %v8064_v13 = vadd.f32 %v11013_v23, %v8063_v0 }
0x3149   :  { %v9452_v7 = vpop.f32.mrf.mxu0 }
0x314a   :  { %8075 = vrot.lane.b32.xlu1 %v8064_v13, %s9712_s11 }
0x31b7   :  { %v7921_v10 = vpop.permute.xlu0 %7920 }
0x31b8   :  { %v7923_v45 = vsel %vm2905_vm15, %v8370_v8, %v7921_v10 }
0x31b9   :  { %9442 = vmatmul.mubr.msk.f32.vlgmr.msra.gmra.mxu1 %vm2911_vm0, %v7923_v45 }
0x31bc   :  { %v8076_v21 = vpop.permute.xlu1 %8075 }
0x3279   :  { %v7993_v16 = vpop.f32.mrf.mxu1 }
0x327a   :  { %v7994_v55 = vadd.f32 %v11034_v33, %v7993_v16 }
0x327b   :  { %v9443_v61 = vpop.f32.mrf.mxu1 }
0x327c   :  { %v8067_v52 = vadd.f32 %v8064_v13, %v7994_v55 }
0x327e   :  { %v8393_v46 = vmul.f32 -1.442695, %v8067_v52 }
0x3280   :  { %9674 = vpow2.f32 %v8393_v46 }
0x328d   :  { %v9675_v23 = vpop.eup %9674 }
0x328e   :  { %v8071_v14 = vadd.f32 1.0, %v9675_v23 }
0x3290   :  { %9676 = vrcp.f32 %v8071_v14 }
0x329d   :  { %v9677_v51 = vpop.eup %9676 }
0x329e   :  { %v8078_v50 = vmul.f32 %v9677_v51, %v8076_v21  ;;  %v8085_v33 = vsub.f32 1.0, %v9677_v51  ;;  %v8091_v15 = vmul.f32 %v9677_v51, %v11196_v18 }
0x32a0   :  { %8080 = vrot.lane.b32.xlu1 %v8078_v50, %s9713_s16 }
0x3312   :  { %v8081_v12 = vpop.permute.xlu1 %8080 }
0x3313   :  { %v8083_v57 = vadd.f32 %v8081_v12, %v7994_v55 }
0x3315   :  { %9678 = vtanh.f32 %v8083_v57 }
0x3322   :  { %v9679_v36 = vpop.eup %9678 }
0x3323   :  { %8087 = vrot.lane.b32.xlu0 %v9679_v36, %s9715_s0 }
0x3327   :  { %8097 = vrot.lane.b32.xlu0 %v7919_v6, %s9714_s17 }
0x3395   :  { %v8088_v62 = vpop.permute.xlu0 %8087 }
0x3396   :  { %v8090_v58 = vmul.f32 %v8088_v62, %v8085_v33 }
0x3398   :  { %v8092_v11 = vadd.f32 %v8091_v15, %v8090_v58 }
0x3399   :  { %v8098_v25 = vpop.permute.xlu0 %8097 }
0x339a   :  { %8094 = vrot.lane.b32.xlu1 %v8092_v11, %s9715_s0 }
0x339e   :  { %8101 = vrot.lane.b32.xlu1 %v8370_v8, %s9716_s9 }
0x340c   :  { %v8095_v27 = vpop.permute.xlu1 %8094 }
0x340d   :  { %v8104_v49 = vsel %vm2136_vm8, %v8095_v27, %v8098_v25 }
0x3410   :  { %v8102_v20 = vpop.permute.xlu1 %8101 }
0x3411   :  { %v8105_v22 = vsel %vm3106_vm3, %v8104_v49, %v8102_v20 }
0x3412   :  { %9472 = vmatmul.mubr.msk.f32.vlgmr.msra.gmra.mxu0 %vm3112_vm4, %v8105_v22 }
0x34d2   :  { %v8175_v24 = vpop.f32.mrf.mxu0 }
0x34d3   :  { %v8176_v29 = vadd.f32 %v11070_v28, %v8175_v24 }
0x34d4   :  { %v9473_v30 = vpop.f32.mrf.mxu0 }
0x34d5   :  { %8396 = vst [vmem:[%s11347_s3 + $0x14] sm:$0xf] %v8176_v29 }

</bundles_post_ra>
